<compile_context>
chip_gen: v5e
topology: v5e:2x2
jax: 0.10.0
libtpu: 0.0.40
codegen_flags: <defaults>
</compile_context>

<pallas_src>
import functools

import jax
import jax.numpy as jnp
from jax import lax
from jax.experimental import pallas as pl
from jax.experimental.pallas import tpu as pltpu


# --------------------------- in-kernel helpers ---------------------------

def _shift_lanes(a, s):
    """b[..., k] = a[..., k + s] where in range, else 0 (s is a static int)."""
    if s == 0:
        return a
    pad = jnp.zeros(a.shape[:-1] + (abs(s),), a.dtype)
    if s > 0:
        return jnp.concatenate([a[..., s:], pad], axis=-1)
    return jnp.concatenate([pad, a[..., :s]], axis=-1)


def _conv3x3_accumulate(act_bf, w_ref, acc_ref, col, H, W):
    """3x3 conv (stride 1, pad 1) on a CHW-flat tile.

    act_bf : (Cp, H*W)      bf16 activation (C = sublane, H*W = lane)
    w_ref  : (3, Cp, 3*Cp)  bf16 weights, [kh, cout, kw*Cp + cin]
    acc_ref: (Cp, H*W)      f32 VMEM accumulator (overwritten)
    col    : (1, H*W)       int32 column index of each flattened pixel
    """
    # Build the three kw taps and stack them along the (aligned) K axis.
    cols = []
    for kw in range(3):
        sw = kw - 1
        t = _shift_lanes(act_bf, sw)                      # act[., k + sw]
        if sw != 0:
            valid = (col + sw >= 0) & (col + sw < W)      # column in range
            t = jnp.where(valid, t, 0)
        cols.append(t)
    a3 = jnp.concatenate(cols, axis=0)                    # (3*Cp, H*W)

    # One fat matmul per kh tap; the zero fill of the +/-W lane shift is
    # exactly the row-validity mask, so no extra masking is needed.
    for kh in range(3):
        sh = kh - 1
        tap = _shift_lanes(a3, sh * W)                    # (3*Cp, H*W)
        contrib = jnp.dot(w_ref[kh], tap,
                          preferred_element_type=jnp.float32)
        if kh == 0:
            acc_ref[...] = contrib                        # no zero-init store
        else:
            acc_ref[...] = acc_ref[...] + contrib


def _basic_block_kernel(x_ref, w1_ref, b1_ref, w2_ref, b2_ref,
                        out_ref, acc_ref, *, H, W):
    """One grid step = one batch element.

    x_ref  : (1, Cp, H*W) f32     b*_ref : (Cp, 1) f32 (folded BN bias)
    w*_ref : (3, Cp, 3*Cp) bf16   (BN scale already folded into weights)
    out_ref: (1, Cp, H*W) f32     acc_ref: (Cp, H*W) f32 VMEM scratch
    """
    HW = x_ref.shape[2]
    x = x_ref[0]                                          # (Cp, H*W) f32
    col = lax.broadcasted_iota(jnp.int32, (1, HW), 1) % W

    # conv1 (3x3) -> bias -> ReLU
    _conv3x3_accumulate(x.astype(jnp.bfloat16), w1_ref, acc_ref, col, H, W)
    h = jnp.maximum(acc_ref[...] + b1_ref[...], 0.0)

    # conv2 (3x3) -> bias -> + identity -> ReLU
    _conv3x3_accumulate(h.astype(jnp.bfloat16), w2_ref, acc_ref, col, H, W)
    out = jnp.maximum(acc_ref[...] + b2_ref[...] + x, 0.0)
    out_ref[0] = out.astype(out_ref.dtype)


# ------------------------------ wrapper ----------------------------------

def basic_block_pallas(x_nchw, w1k, b1k, w2k, b2k):
    """x_nchw: (B, C, H, W) f32.  Returns (B, C, H, W) f32."""
    B, C, H, W = x_nchw.shape
    Cp = w1k.shape[1]
    HW = H * W
    assert HW % 128 == 0, "flattened spatial dim must be a multiple of 128"

    x_flat = x_nchw.reshape(B, C, HW)                     # free reshape, no transpose
    if Cp != C:
        x_flat = jnp.pad(x_flat, ((0, 0), (0, Cp - C), (0, 0)))

    kernel = functools.partial(_basic_block_kernel, H=H, W=W)
    # NOTE: weight/bias blocks are grid-constant; Pallas keeps them resident
    # (their index_map never changes), so no per-step refetch happens.
    out_flat = pl.pallas_call(
        kernel,
        out_shape=jax.ShapeDtypeStruct((B, Cp, HW), jnp.float32),
        grid=(B,),
        in_specs=[
            pl.BlockSpec((1, Cp, HW), lambda b: (b, 0, 0)),   # x
            pl.BlockSpec(w1k.shape, lambda b: (0, 0, 0)),     # conv1 weights
            pl.BlockSpec(b1k.shape, lambda b: (0, 0)),        # conv1 bias
            pl.BlockSpec(w2k.shape, lambda b: (0, 0, 0)),     # conv2 weights
            pl.BlockSpec(b2k.shape, lambda b: (0, 0)),        # conv2 bias
        ],
        out_specs=pl.BlockSpec((1, Cp, HW), lambda b: (b, 0, 0)),
        scratch_shapes=[pltpu.VMEM((Cp, HW), jnp.float32)],
        compiler_params=pltpu.CompilerParams(
            dimension_semantics=("parallel",)),
    )(x_flat, w1k, b1k, w2k, b2k)

    return out_flat[:, :C, :].reshape(B, C, H, W)


# ---------------------- parameter prep (host side) -----------------------

def _round_up(n, m):
    return (n + m - 1) // m * m


def fold_bn_into_conv(w, gamma, beta, mean, var, eps=1e-5):
    """Eval-mode BN folded into the preceding conv: scale -> weights, bias out."""
    s = gamma * lax.rsqrt(var + eps)                      # (Cout,)
    return w * s[:, None, None, None], beta - mean * s    # (Cout,Cin,3,3), (Cout,)


def prepare_conv_for_kernel(w_eff, b_eff, cp):
    """(Cout,Cin,3,3)/ (Cout,) -> kernel layout (3, Cp, 3*Cp) bf16 / (Cp,1) f32."""
    cout, cin = w_eff.shape[:2]
    w_pad = jnp.pad(w_eff, ((0, cp - cout), (0, cp - cin), (0, 0), (0, 0)))
    # [kh, cout, kw*Cp + cin]  so each kh tap is one (Cp, 3*Cp) matmul weight.
    wk = jnp.transpose(w_pad, (2, 0, 3, 1)).reshape(3, cp, 3 * cp)
    wk = wk.astype(jnp.bfloat16)
    bk = jnp.pad(b_eff, (0, cp - cout)).reshape(cp, 1).astype(jnp.float32)
    return wk, bk


def make_params(key, planes):
    """Deterministic conv weights (PyTorch OIHW layout) + BN running stats."""
    ks = jax.random.split(key, 10)
    w1 = 0.08 * jax.random.normal(ks[0], (planes, planes, 3, 3), jnp.float32)
    w2 = 0.08 * jax.random.normal(ks[1], (planes, planes, 3, 3), jnp.float32)

    def bn(kg, kb, km, kv, c):
        gamma = 1.0 + 0.1 * jax.random.normal(kg, (c,), jnp.float32)
        beta = 0.1 * jax.random.normal(kb, (c,), jnp.float32)
        mean = 0.1 * jax.random.normal(km, (c,), jnp.float32)
        var = 0.5 + jax.random.uniform(kv, (c,), jnp.float32)
        return gamma, beta, mean, var

    bn1 = bn(ks[2], ks[3], ks[4], ks[5], planes)
    bn2 = bn(ks[6], ks[7], ks[8], ks[9], planes)
    return w1, bn1, w2, bn2


# -------------------- pure-JAX reference (verification) ------------------

def basic_block_ref(x, w1_eff, b1_eff, w2_eff, b2_eff):
    """Same math as the kernel: bf16 conv operands, f32 accumulation."""
    def conv(a, w):
        return lax.conv_general_dilated(
            a.astype(jnp.bfloat16), w.astype(jnp.bfloat16),
            window_strides=(1, 1), padding=((1, 1), (1, 1)),
            dimension_numbers=("NCHW", "OIHW", "NCHW"),
            preferred_element_type=jnp.float32)

    h = jax.nn.relu(conv(x, w1_eff) + b1_eff.reshape(1, -1, 1, 1))
    out = conv(h, w2_eff) + b2_eff.reshape(1, -1, 1, 1)
    return jax.nn.relu(out + x)


if __name__ == "__main__":
    # BasicBlock defaults: stride=1, downsample=None -> inplanes == planes.
    B, planes, H, W = 2, 16, 16, 16
    key = jax.random.PRNGKey(0)
    kx, kp = jax.random.split(key)
    x = jax.random.normal(kx, (B, planes, H, W), jnp.float32)

    w1, bn1, w2, bn2 = make_params(kp, planes)
    w1e, b1e = fold_bn_into_conv(w1, *bn1)
    w2e, b2e = fold_bn_into_conv(w2, *bn2)

    Cp = _round_up(max(planes, 128), 128)       # MXU / alignment padding
    w1k, b1k = prepare_conv_for_kernel(w1e, b1e, Cp)
    w2k, b2k = prepare_conv_for_kernel(w2e, b2e, Cp)

    out = jax.block_until_ready(basic_block_pallas(x, w1k, b1k, w2k, b2k))
    ref = jax.block_until_ready(basic_block_ref(x, w1e, b1e, w2e, b2e))

    assert out.shape == (B, planes, H, W)
    max_err = float(jnp.max(jnp.abs(out - ref)))
    assert jnp.allclose(out, ref, atol=1e-2, rtol=1e-2), max_err
    print("KERNEL_OK")
</pallas_src>

<mosaic_0001>
module attributes {stable_mosaic.version = 11 : i64} {
  func.func @_basic_block_kernel(%arg0: i32, %arg1: memref<1x128x256xf32, #tpu.memory_space<vmem>>, %arg2: memref<3x128x384xbf16, #tpu.memory_space<vmem>>, %arg3: memref<128x1xf32, #tpu.memory_space<vmem>>, %arg4: memref<3x128x384xbf16, #tpu.memory_space<vmem>>, %arg5: memref<128x1xf32, #tpu.memory_space<vmem>>, %arg6: memref<1x128x256xf32, #tpu.memory_space<vmem>>, %arg7: memref<128x256xf32, #tpu.memory_space<vmem>>) attributes {dimension_semantics = [#tpu.dimension_semantics<parallel>], iteration_bounds = array<i64: 2>, scalar_prefetch = 0 : i64, scratch_operands = 1 : i64, tpu.core_type = #tpu.core_type<tc>, window_params = [{transform_indices = @transform_0, window_bounds = array<i64: 1, 128, 256>}, {pipeline_mode = #tpu.pipeline_mode<synchronous>, transform_indices = @transform_1, window_bounds = array<i64: 3, 128, 384>}, {pipeline_mode = #tpu.pipeline_mode<synchronous>, transform_indices = @transform_2, window_bounds = array<i64: 128, 1>}, {pipeline_mode = #tpu.pipeline_mode<synchronous>, transform_indices = @transform_3, window_bounds = array<i64: 3, 128, 384>}, {pipeline_mode = #tpu.pipeline_mode<synchronous>, transform_indices = @transform_4, window_bounds = array<i64: 128, 1>}, {transform_indices = @transform_5, window_bounds = array<i64: 1, 128, 256>}]} {
    %c0 = arith.constant 0 : index
    %c0_0 = arith.constant 0 : index
    %c0_1 = arith.constant 0 : index
    %0 = vector.load %arg1[%c0, %c0_0, %c0_1] : memref<1x128x256xf32, #tpu.memory_space<vmem>>, vector<1x128x256xf32>
    %1 = vector.shape_cast %0 : vector<1x128x256xf32> to vector<128x256xf32>
    %2 = tpu.iota {dimensions = array<i32: 1>} : vector<1x256xi32>
    %c16_i32 = arith.constant 16 : i32
    %c0_i32 = arith.constant 0 : i32
    %3 = arith.cmpi eq, %c16_i32, %c0_i32 : i32
    %c1_i32 = arith.constant 1 : i32
    %4 = arith.select %3, %c1_i32, %c16_i32 : i32
    %5 = vector.broadcast %4 : i32 to vector<1x256xi32>
    %6 = arith.remsi %2, %5 : vector<1x256xi32>
    %c0_i32_2 = arith.constant 0 : i32
    %7 = vector.broadcast %c0_i32_2 : i32 to vector<1x256xi32>
    %8 = arith.cmpi ne, %6, %7 : vector<1x256xi32>
    %c0_i32_3 = arith.constant 0 : i32
    %9 = vector.broadcast %c0_i32_3 : i32 to vector<1x256xi32>
    %10 = arith.cmpi slt, %6, %9 : vector<1x256xi32>
    %c0_i32_4 = arith.constant 0 : i32
    %11 = arith.cmpi slt, %4, %c0_i32_4 : i32
    %12 = vector.broadcast %11 : i1 to vector<1x256xi1>
    %13 = vector.broadcast %12 : vector<1x256xi1> to vector<1x256xi1>
    %14 = arith.xori %10, %13 : vector<1x256xi1>
    %15 = arith.andi %14, %8 : vector<1x256xi1>
    %16 = vector.broadcast %4 : i32 to vector<1x256xi32>
    %17 = arith.addi %6, %16 : vector<1x256xi32>
    %18 = arith.select %15, %17, %6 : vector<1x256xi1>, vector<1x256xi32>
    %19 = arith.truncf %1 : vector<128x256xf32> to vector<128x256xbf16>
    %cst = arith.constant 0.000000e+00 : bf16
    %20 = vector.broadcast %cst : bf16 to vector<128x1xbf16>
    %21 = vector.extract_strided_slice %19 {offsets = [0, 0], sizes = [128, 255], strides = [1, 1]} : vector<128x256xbf16> to vector<128x255xbf16>
    %22 = tpu.concatenate %20, %21 in 1 : vector<128x1xbf16>, vector<128x255xbf16> -> vector<128x256xbf16>
    %c-1_i32 = arith.constant -1 : i32
    %23 = vector.broadcast %c-1_i32 : i32 to vector<1x256xi32>
    %24 = arith.addi %18, %23 : vector<1x256xi32>
    %c0_i32_5 = arith.constant 0 : i32
    %25 = vector.broadcast %c0_i32_5 : i32 to vector<1x256xi32>
    %26 = arith.cmpi sge, %24, %25 : vector<1x256xi32>
    %c-1_i32_6 = arith.constant -1 : i32
    %27 = vector.broadcast %c-1_i32_6 : i32 to vector<1x256xi32>
    %28 = arith.addi %18, %27 : vector<1x256xi32>
    %c16_i32_7 = arith.constant 16 : i32
    %29 = vector.broadcast %c16_i32_7 : i32 to vector<1x256xi32>
    %30 = arith.cmpi slt, %28, %29 : vector<1x256xi32>
    %31 = arith.andi %26, %30 : vector<1x256xi1>
    %c0_i32_8 = arith.constant 0 : i32
    %32 = arith.sitofp %c0_i32_8 : i32 to bf16
    %33 = vector.shape_cast %31 : vector<1x256xi1> to vector<1x256xi1>
    %34 = vector.broadcast %33 : vector<1x256xi1> to vector<128x256xi1>
    %35 = vector.broadcast %32 : bf16 to vector<128x256xbf16>
    %36 = arith.select %34, %22, %35 : vector<128x256xi1>, vector<128x256xbf16>
    %cst_9 = arith.constant 0.000000e+00 : bf16
    %37 = vector.broadcast %cst_9 : bf16 to vector<128x1xbf16>
    %38 = vector.extract_strided_slice %19 {offsets = [0, 1], sizes = [128, 255], strides = [1, 1]} : vector<128x256xbf16> to vector<128x255xbf16>
    %39 = tpu.concatenate %38, %37 in 1 : vector<128x255xbf16>, vector<128x1xbf16> -> vector<128x256xbf16>
    %c1_i32_10 = arith.constant 1 : i32
    %40 = vector.broadcast %c1_i32_10 : i32 to vector<1x256xi32>
    %41 = arith.addi %18, %40 : vector<1x256xi32>
    %c0_i32_11 = arith.constant 0 : i32
    %42 = vector.broadcast %c0_i32_11 : i32 to vector<1x256xi32>
    %43 = arith.cmpi sge, %41, %42 : vector<1x256xi32>
    %c1_i32_12 = arith.constant 1 : i32
    %44 = vector.broadcast %c1_i32_12 : i32 to vector<1x256xi32>
    %45 = arith.addi %18, %44 : vector<1x256xi32>
    %c16_i32_13 = arith.constant 16 : i32
    %46 = vector.broadcast %c16_i32_13 : i32 to vector<1x256xi32>
    %47 = arith.cmpi slt, %45, %46 : vector<1x256xi32>
    %48 = arith.andi %43, %47 : vector<1x256xi1>
    %c0_i32_14 = arith.constant 0 : i32
    %49 = arith.sitofp %c0_i32_14 : i32 to bf16
    %50 = vector.shape_cast %48 : vector<1x256xi1> to vector<1x256xi1>
    %51 = vector.broadcast %50 : vector<1x256xi1> to vector<128x256xi1>
    %52 = vector.broadcast %49 : bf16 to vector<128x256xbf16>
    %53 = arith.select %51, %39, %52 : vector<128x256xi1>, vector<128x256xbf16>
    %54 = tpu.concatenate %36, %19, %53 in 0 : vector<128x256xbf16>, vector<128x256xbf16>, vector<128x256xbf16> -> vector<384x256xbf16>
    %cst_15 = arith.constant 0.000000e+00 : bf16
    %55 = vector.broadcast %cst_15 : bf16 to vector<384x16xbf16>
    %56 = vector.extract_strided_slice %54 {offsets = [0, 0], sizes = [384, 240], strides = [1, 1]} : vector<384x256xbf16> to vector<384x240xbf16>
    %57 = tpu.concatenate %55, %56 in 1 : vector<384x16xbf16>, vector<384x240xbf16> -> vector<384x256xbf16>
    %c0_16 = arith.constant 0 : index
    %c0_17 = arith.constant 0 : index
    %c0_18 = arith.constant 0 : index
    %58 = vector.load %arg2[%c0_16, %c0_17, %c0_18] : memref<3x128x384xbf16, #tpu.memory_space<vmem>>, vector<1x128x384xbf16>
    %59 = vector.shape_cast %58 : vector<1x128x384xbf16> to vector<128x384xbf16>
    %cst_19 = arith.constant dense<0.000000e+00> : vector<128x256xf32>
    %60 = tpu.matmul %59, %57, %cst_19 {dimension_numbers = #tpu.dot_dimension_numbers<[1], [0], [0], [1], [0, 0, 1, 1], [], []>} : vector<128x384xbf16>, vector<384x256xbf16>, vector<128x256xf32> -> vector<128x256xf32>
    %c0_20 = arith.constant 0 : index
    %c0_21 = arith.constant 0 : index
    %61 = vector.load %arg7[%c0_20, %c0_21] : memref<128x256xf32, #tpu.memory_space<vmem>>, vector<128x256xf32>
    tpu.vector_store %arg7[%c0_20, %c0_21], %60 {strides = array<i32>} : memref<128x256xf32, #tpu.memory_space<vmem>>, vector<128x256xf32>,
    %c1 = arith.constant 1 : index
    %c0_22 = arith.constant 0 : index
    %c0_23 = arith.constant 0 : index
    %62 = vector.load %arg2[%c1, %c0_22, %c0_23] : memref<3x128x384xbf16, #tpu.memory_space<vmem>>, vector<1x128x384xbf16>
    %63 = vector.shape_cast %62 : vector<1x128x384xbf16> to vector<128x384xbf16>
    %cst_24 = arith.constant dense<0.000000e+00> : vector<128x256xf32>
    %64 = tpu.matmul %63, %54, %cst_24 {dimension_numbers = #tpu.dot_dimension_numbers<[1], [0], [0], [1], [0, 0, 1, 1], [], []>} : vector<128x384xbf16>, vector<384x256xbf16>, vector<128x256xf32> -> vector<128x256xf32>
    %c0_25 = arith.constant 0 : index
    %c0_26 = arith.constant 0 : index
    %65 = vector.load %arg7[%c0_25, %c0_26] : memref<128x256xf32, #tpu.memory_space<vmem>>, vector<128x256xf32>
    %66 = arith.addf %65, %64 : vector<128x256xf32>
    %c0_27 = arith.constant 0 : index
    %c0_28 = arith.constant 0 : index
    %67 = vector.load %arg7[%c0_27, %c0_28] : memref<128x256xf32, #tpu.memory_space<vmem>>, vector<128x256xf32>
    tpu.vector_store %arg7[%c0_27, %c0_28], %66 {strides = array<i32>} : memref<128x256xf32, #tpu.memory_space<vmem>>, vector<128x256xf32>,
    %cst_29 = arith.constant 0.000000e+00 : bf16
    %68 = vector.broadcast %cst_29 : bf16 to vector<384x16xbf16>
    %69 = vector.extract_strided_slice %54 {offsets = [0, 16], sizes = [384, 240], strides = [1, 1]} : vector<384x256xbf16> to vector<384x240xbf16>
    %70 = tpu.concatenate %69, %68 in 1 : vector<384x240xbf16>, vector<384x16xbf16> -> vector<384x256xbf16>
    %c2 = arith.constant 2 : index
    %c0_30 = arith.constant 0 : index
    %c0_31 = arith.constant 0 : index
    %71 = vector.load %arg2[%c2, %c0_30, %c0_31] : memref<3x128x384xbf16, #tpu.memory_space<vmem>>, vector<1x128x384xbf16>
    %72 = vector.shape_cast %71 : vector<1x128x384xbf16> to vector<128x384xbf16>
    %cst_32 = arith.constant dense<0.000000e+00> : vector<128x256xf32>
    %73 = tpu.matmul %72, %70, %cst_32 {dimension_numbers = #tpu.dot_dimension_numbers<[1], [0], [0], [1], [0, 0, 1, 1], [], []>} : vector<128x384xbf16>, vector<384x256xbf16>, vector<128x256xf32> -> vector<128x256xf32>
    %c0_33 = arith.constant 0 : index
    %c0_34 = arith.constant 0 : index
    %74 = vector.load %arg7[%c0_33, %c0_34] : memref<128x256xf32, #tpu.memory_space<vmem>>, vector<128x256xf32>
    %75 = arith.addf %74, %73 : vector<128x256xf32>
    %c0_35 = arith.constant 0 : index
    %c0_36 = arith.constant 0 : index
    %76 = vector.load %arg7[%c0_35, %c0_36] : memref<128x256xf32, #tpu.memory_space<vmem>>, vector<128x256xf32>
    tpu.vector_store %arg7[%c0_35, %c0_36], %75 {strides = array<i32>} : memref<128x256xf32, #tpu.memory_space<vmem>>, vector<128x256xf32>,
    %c0_37 = arith.constant 0 : index
    %c0_38 = arith.constant 0 : index
    %77 = vector.load %arg7[%c0_37, %c0_38] : memref<128x256xf32, #tpu.memory_space<vmem>>, vector<128x256xf32>
    %c0_39 = arith.constant 0 : index
    %c0_40 = arith.constant 0 : index
    %78 = vector.load %arg3[%c0_39, %c0_40] : memref<128x1xf32, #tpu.memory_space<vmem>>, vector<128x1xf32>
    %79 = vector.broadcast %78 : vector<128x1xf32> to vector<128x256xf32>
    %80 = arith.addf %77, %79 : vector<128x256xf32>
    %cst_41 = arith.constant 0.000000e+00 : f32
    %81 = vector.broadcast %cst_41 : f32 to vector<128x256xf32>
    %82 = arith.maximumf %80, %81 : vector<128x256xf32>
    %83 = arith.truncf %82 : vector<128x256xf32> to vector<128x256xbf16>
    %cst_42 = arith.constant 0.000000e+00 : bf16
    %84 = vector.broadcast %cst_42 : bf16 to vector<128x1xbf16>
    %85 = vector.extract_strided_slice %83 {offsets = [0, 0], sizes = [128, 255], strides = [1, 1]} : vector<128x256xbf16> to vector<128x255xbf16>
    %86 = tpu.concatenate %84, %85 in 1 : vector<128x1xbf16>, vector<128x255xbf16> -> vector<128x256xbf16>
    %c-1_i32_43 = arith.constant -1 : i32
    %87 = vector.broadcast %c-1_i32_43 : i32 to vector<1x256xi32>
    %88 = arith.addi %18, %87 : vector<1x256xi32>
    %c0_i32_44 = arith.constant 0 : i32
    %89 = vector.broadcast %c0_i32_44 : i32 to vector<1x256xi32>
    %90 = arith.cmpi sge, %88, %89 : vector<1x256xi32>
    %c-1_i32_45 = arith.constant -1 : i32
    %91 = vector.broadcast %c-1_i32_45 : i32 to vector<1x256xi32>
    %92 = arith.addi %18, %91 : vector<1x256xi32>
    %c16_i32_46 = arith.constant 16 : i32
    %93 = vector.broadcast %c16_i32_46 : i32 to vector<1x256xi32>
    %94 = arith.cmpi slt, %92, %93 : vector<1x256xi32>
    %95 = arith.andi %90, %94 : vector<1x256xi1>
    %c0_i32_47 = arith.constant 0 : i32
    %96 = arith.sitofp %c0_i32_47 : i32 to bf16
    %97 = vector.shape_cast %95 : vector<1x256xi1> to vector<1x256xi1>
    %98 = vector.broadcast %97 : vector<1x256xi1> to vector<128x256xi1>
    %99 = vector.broadcast %96 : bf16 to vector<128x256xbf16>
    %100 = arith.select %98, %86, %99 : vector<128x256xi1>, vector<128x256xbf16>
    %cst_48 = arith.constant 0.000000e+00 : bf16
    %101 = vector.broadcast %cst_48 : bf16 to vector<128x1xbf16>
    %102 = vector.extract_strided_slice %83 {offsets = [0, 1], sizes = [128, 255], strides = [1, 1]} : vector<128x256xbf16> to vector<128x255xbf16>
    %103 = tpu.concatenate %102, %101 in 1 : vector<128x255xbf16>, vector<128x1xbf16> -> vector<128x256xbf16>
    %c1_i32_49 = arith.constant 1 : i32
    %104 = vector.broadcast %c1_i32_49 : i32 to vector<1x256xi32>
    %105 = arith.addi %18, %104 : vector<1x256xi32>
    %c0_i32_50 = arith.constant 0 : i32
    %106 = vector.broadcast %c0_i32_50 : i32 to vector<1x256xi32>
    %107 = arith.cmpi sge, %105, %106 : vector<1x256xi32>
    %c1_i32_51 = arith.constant 1 : i32
    %108 = vector.broadcast %c1_i32_51 : i32 to vector<1x256xi32>
    %109 = arith.addi %18, %108 : vector<1x256xi32>
    %c16_i32_52 = arith.constant 16 : i32
    %110 = vector.broadcast %c16_i32_52 : i32 to vector<1x256xi32>
    %111 = arith.cmpi slt, %109, %110 : vector<1x256xi32>
    %112 = arith.andi %107, %111 : vector<1x256xi1>
    %c0_i32_53 = arith.constant 0 : i32
    %113 = arith.sitofp %c0_i32_53 : i32 to bf16
    %114 = vector.shape_cast %112 : vector<1x256xi1> to vector<1x256xi1>
    %115 = vector.broadcast %114 : vector<1x256xi1> to vector<128x256xi1>
    %116 = vector.broadcast %113 : bf16 to vector<128x256xbf16>
    %117 = arith.select %115, %103, %116 : vector<128x256xi1>, vector<128x256xbf16>
    %118 = tpu.concatenate %100, %83, %117 in 0 : vector<128x256xbf16>, vector<128x256xbf16>, vector<128x256xbf16> -> vector<384x256xbf16>
    %cst_54 = arith.constant 0.000000e+00 : bf16
    %119 = vector.broadcast %cst_54 : bf16 to vector<384x16xbf16>
    %120 = vector.extract_strided_slice %118 {offsets = [0, 0], sizes = [384, 240], strides = [1, 1]} : vector<384x256xbf16> to vector<384x240xbf16>
    %121 = tpu.concatenate %119, %120 in 1 : vector<384x16xbf16>, vector<384x240xbf16> -> vector<384x256xbf16>
    %c0_55 = arith.constant 0 : index
    %c0_56 = arith.constant 0 : index
    %c0_57 = arith.constant 0 : index
    %122 = vector.load %arg4[%c0_55, %c0_56, %c0_57] : memref<3x128x384xbf16, #tpu.memory_space<vmem>>, vector<1x128x384xbf16>
    %123 = vector.shape_cast %122 : vector<1x128x384xbf16> to vector<128x384xbf16>
    %cst_58 = arith.constant dense<0.000000e+00> : vector<128x256xf32>
    %124 = tpu.matmul %123, %121, %cst_58 {dimension_numbers = #tpu.dot_dimension_numbers<[1], [0], [0], [1], [0, 0, 1, 1], [], []>} : vector<128x384xbf16>, vector<384x256xbf16>, vector<128x256xf32> -> vector<128x256xf32>
    %c0_59 = arith.constant 0 : index
    %c0_60 = arith.constant 0 : index
    %125 = vector.load %arg7[%c0_59, %c0_60] : memref<128x256xf32, #tpu.memory_space<vmem>>, vector<128x256xf32>
    tpu.vector_store %arg7[%c0_59, %c0_60], %124 {strides = array<i32>} : memref<128x256xf32, #tpu.memory_space<vmem>>, vector<128x256xf32>,
    %c1_61 = arith.constant 1 : index
    %c0_62 = arith.constant 0 : index
    %c0_63 = arith.constant 0 : index
    %126 = vector.load %arg4[%c1_61, %c0_62, %c0_63] : memref<3x128x384xbf16, #tpu.memory_space<vmem>>, vector<1x128x384xbf16>
    %127 = vector.shape_cast %126 : vector<1x128x384xbf16> to vector<128x384xbf16>
    %cst_64 = arith.constant dense<0.000000e+00> : vector<128x256xf32>
    %128 = tpu.matmul %127, %118, %cst_64 {dimension_numbers = #tpu.dot_dimension_numbers<[1], [0], [0], [1], [0, 0, 1, 1], [], []>} : vector<128x384xbf16>, vector<384x256xbf16>, vector<128x256xf32> -> vector<128x256xf32>
    %c0_65 = arith.constant 0 : index
    %c0_66 = arith.constant 0 : index
    %129 = vector.load %arg7[%c0_65, %c0_66] : memref<128x256xf32, #tpu.memory_space<vmem>>, vector<128x256xf32>
    %130 = arith.addf %129, %128 : vector<128x256xf32>
    %c0_67 = arith.constant 0 : index
    %c0_68 = arith.constant 0 : index
    %131 = vector.load %arg7[%c0_67, %c0_68] : memref<128x256xf32, #tpu.memory_space<vmem>>, vector<128x256xf32>
    tpu.vector_store %arg7[%c0_67, %c0_68], %130 {strides = array<i32>} : memref<128x256xf32, #tpu.memory_space<vmem>>, vector<128x256xf32>,
    %cst_69 = arith.constant 0.000000e+00 : bf16
    %132 = vector.broadcast %cst_69 : bf16 to vector<384x16xbf16>
    %133 = vector.extract_strided_slice %118 {offsets = [0, 16], sizes = [384, 240], strides = [1, 1]} : vector<384x256xbf16> to vector<384x240xbf16>
    %134 = tpu.concatenate %133, %132 in 1 : vector<384x240xbf16>, vector<384x16xbf16> -> vector<384x256xbf16>
    %c2_70 = arith.constant 2 : index
    %c0_71 = arith.constant 0 : index
    %c0_72 = arith.constant 0 : index
    %135 = vector.load %arg4[%c2_70, %c0_71, %c0_72] : memref<3x128x384xbf16, #tpu.memory_space<vmem>>, vector<1x128x384xbf16>
    %136 = vector.shape_cast %135 : vector<1x128x384xbf16> to vector<128x384xbf16>
    %cst_73 = arith.constant dense<0.000000e+00> : vector<128x256xf32>
    %137 = tpu.matmul %136, %134, %cst_73 {dimension_numbers = #tpu.dot_dimension_numbers<[1], [0], [0], [1], [0, 0, 1, 1], [], []>} : vector<128x384xbf16>, vector<384x256xbf16>, vector<128x256xf32> -> vector<128x256xf32>
    %c0_74 = arith.constant 0 : index
    %c0_75 = arith.constant 0 : index
    %138 = vector.load %arg7[%c0_74, %c0_75] : memref<128x256xf32, #tpu.memory_space<vmem>>, vector<128x256xf32>
    %139 = arith.addf %138, %137 : vector<128x256xf32>
    %c0_76 = arith.constant 0 : index
    %c0_77 = arith.constant 0 : index
    %140 = vector.load %arg7[%c0_76, %c0_77] : memref<128x256xf32, #tpu.memory_space<vmem>>, vector<128x256xf32>
    tpu.vector_store %arg7[%c0_76, %c0_77], %139 {strides = array<i32>} : memref<128x256xf32, #tpu.memory_space<vmem>>, vector<128x256xf32>,
    %c0_78 = arith.constant 0 : index
    %c0_79 = arith.constant 0 : index
    %141 = vector.load %arg7[%c0_78, %c0_79] : memref<128x256xf32, #tpu.memory_space<vmem>>, vector<128x256xf32>
    %c0_80 = arith.constant 0 : index
    %c0_81 = arith.constant 0 : index
    %142 = vector.load %arg5[%c0_80, %c0_81] : memref<128x1xf32, #tpu.memory_space<vmem>>, vector<128x1xf32>
    %143 = vector.broadcast %142 : vector<128x1xf32> to vector<128x256xf32>
    %144 = arith.addf %141, %143 : vector<128x256xf32>
    %145 = arith.addf %144, %1 : vector<128x256xf32>
    %cst_82 = arith.constant 0.000000e+00 : f32
    %146 = vector.broadcast %cst_82 : f32 to vector<128x256xf32>
    %147 = arith.maximumf %145, %146 : vector<128x256xf32>
    %c0_83 = arith.constant 0 : index
    %c0_84 = arith.constant 0 : index
    %c0_85 = arith.constant 0 : index
    %148 = vector.load %arg6[%c0_83, %c0_84, %c0_85] : memref<1x128x256xf32, #tpu.memory_space<vmem>>, vector<1x128x256xf32>
    %149 = vector.shape_cast %148 : vector<1x128x256xf32> to vector<128x256xf32>
    %150 = vector.shape_cast %147 : vector<128x256xf32> to vector<1x128x256xf32>
    tpu.vector_store %arg6[%c0_83, %c0_84, %c0_85], %150 {strides = array<i32>} : memref<1x128x256xf32, #tpu.memory_space<vmem>>, vector<1x128x256xf32>,
    return
  }
  func.func @transform_0(%arg0: i32) -> (i32, i32, i32) {
    %c0_i32 = arith.constant 0 : i32
    %c0_i32_0 = arith.constant 0 : i32
    %c0_i32_1 = arith.constant 0 : i32
    return %arg0, %c0_i32, %c0_i32_0 : i32, i32, i32
  }
  func.func @transform_1(%arg0: i32) -> (i32, i32, i32) {
    %c0_i32 = arith.constant 0 : i32
    %c0_i32_0 = arith.constant 0 : i32
    %c0_i32_1 = arith.constant 0 : i32
    %c0_i32_2 = arith.constant 0 : i32
    return %c0_i32, %c0_i32_0, %c0_i32_1 : i32, i32, i32
  }
  func.func @transform_2(%arg0: i32) -> (i32, i32) {
    %c0_i32 = arith.constant 0 : i32
    %c0_i32_0 = arith.constant 0 : i32
    %c0_i32_1 = arith.constant 0 : i32
    return %c0_i32, %c0_i32_0 : i32, i32
  }
  func.func @transform_3(%arg0: i32) -> (i32, i32, i32) {
    %c0_i32 = arith.constant 0 : i32
    %c0_i32_0 = arith.constant 0 : i32
    %c0_i32_1 = arith.constant 0 : i32
    %c0_i32_2 = arith.constant 0 : i32
    return %c0_i32, %c0_i32_0, %c0_i32_1 : i32, i32, i32
  }
  func.func @transform_4(%arg0: i32) -> (i32, i32) {
    %c0_i32 = arith.constant 0 : i32
    %c0_i32_0 = arith.constant 0 : i32
    %c0_i32_1 = arith.constant 0 : i32
    return %c0_i32, %c0_i32_0 : i32, i32
  }
  func.func @transform_5(%arg0: i32) -> (i32, i32, i32) {
    %c0_i32 = arith.constant 0 : i32
    %c0_i32_0 = arith.constant 0 : i32
    %c0_i32_1 = arith.constant 0 : i32
    return %arg0, %c0_i32, %c0_i32_0 : i32, i32, i32
  }
}

</mosaic_0001>

<bundles_post_ra>
// kernel: tpu_custom_call.1
= control target key start
LH: loop header
LB: loop body
LE: loop exit
PB: predicated region body
PF: predicated region fallthrough
CT: control target
= control target key end

     0   :  { %10 = vsyncpa [#allocation4], 0  ;;  %s10062_s0 = inlined_call_operand.hbm [shape: f32[2,128,256], index: 0, kind: input, shape index: {}]   ;;  %s10063_s1 = inlined_call_operand.hbm [shape: bf16[3,128,384], index: 1, kind: input, shape index: {}]   ;;  %s10064_s2 = inlined_call_operand.vmem [shape: f32[128,1], index: 2, kind: input, shape index: {}]   ;;  %s10065_s3 = inlined_call_operand.hbm [shape: bf16[3,128,384], index: 3, kind: input, shape index: {}]   ;;  %s10066_s4 = inlined_call_operand.vmem [shape: f32[128,1], index: 4, kind: input, shape index: {}]   ;;  %s10067_s5 = inlined_call_operand.hbm [shape: f32[2,128,256], index: 5, kind: output, shape index: {}]  }
   0x1   :  { %12 = vsyncpa [#allocation4 + $0x1], 0 }
   0x2   :  { %13 = vsyncpa [#allocation7], 0 }
   0x3   :  { %14 = vsyncpa [#allocation5], 0 }
   0x4   :  { %16 = vsyncpa [#allocation5 + $0x1], 0  ;;  %s6765_s18 = smov 0   ;;  %s6767_s19 = smov 0  }
   0x5   :  { %s6769_s20 = smov 0   ;;  %s6771_s21 = smov 0  }
   0x6 LB: > { %s6786_s22 = sadd.s32 4294967295, %s6721_s21   ;;  %s5613_s23 = sadd.s32 4294967294, %s6721_s21   ;;  %s6721_s21 = sphi %s6771_s21, %s10453_s21   ;;  %s6717_s20 = sphi %s6769_s20, %s10452_s20   ;;  %s6713_s19 = sphi %s6767_s19, %s10451_s19   ;;  %s6709_s18 = sphi %s6765_s18, %s10450_s18  }
   0x7   : > { %p42_p0 = scmp.ne.s32.totalorder %s6713_s19, %s6709_s18  ;;  %p43_p1 = scmp.eq.s32.totalorder %s6786_s22, 0 }
   0x8   : > { %p150_p2 = scmp.eq.s32.totalorder %s6786_s22, 1  ;;  %p156_p3 = scmp.eq.s32.totalorder %s5613_s23, 1 }
   0x9   : > { %p6795_p4 = por %p43_p1, %p42_p0  ;;  %p5614_p5 = scmp.ge.s32.totalorder %s6721_s21, 1 }
   0xa   : > { %p6800_p6 = por %p156_p3, %p42_p0  ;;  %p163_p7 = scmp.lt.s32.totalorder %s6721_s21, 3 }
   0xb   : > { %s174_s28 = sshll.u32 %s10063_s1, 4  ;;  %s6723_s30 = smov [#allocation6]   ;;  %s175_s28 = int_to_ptr.hbm [resolvable:$true] %s174_s28 }
   0xc   : > { %p6808_p8 = pnand %p5614_p5, %p163_p7  ;;  %s176_s6 = sshll.u32 %s6723_s30, 4  ;;  %s177_s6 = int_to_ptr.vmem [resolvable:$true] %s176_s6 }
   0xd   : > { %s191_s9 = sshll.u32 %s10065_s3, 4  ;;  %s6724_s10 = smov 192   ;;  %s192_s9 = int_to_ptr.hbm [resolvable:$true] %s191_s9 }
   0xe   : > { %p6461_p9 = pneg %p6808_p8  ;;  %s6725_s11 = smov 12  }
   0xf   : > { %s6726_s12 = smov [#allocation8]   ;;  %s6821_s14 = sadd.s32 1, %s6721_s21  }
  0x10   : > { %p6462_p10 = pnand %p6461_p9, %p43_p1  ;;  %s193_s13 = sshll.u32 %s6726_s12, 4  ;;  %s194_s13 = int_to_ptr.vmem [resolvable:$true] %s193_s13 }
  0x11   : > { %s29_s15 = sadd.s32 1, %s6717_s20  ;;  %s26_s16 = ssub.s32 %s6721_s21, %s6821_s14 }
  0x12   : > { %6464 = dma.hbm_to_vmem [thread:$0]  (!%p6462_p10), %s175_s28, 9216, %s177_s6, [#allocation7], %s6724_s10, %s6724_s10, %s6725_s11  }
  0x13   : > { %6467 = dma.hbm_to_vmem [thread:$0]  (!%p6462_p10), %s192_s9, 9216, %s194_s13, [#allocation7], %s6724_s10, %s6724_s10, %s6725_s11  }
  0x14   : > { %p36_p12 = scmp.ne.s32.totalorder %s6717_s20, %s6713_s19  ;;  %p27_p13 = scmp.eq.s32.totalorder %s26_s16, 0 }
  0x15   : > { %p37_p0 = scmp.eq.s32.totalorder %s6721_s21, 0  ;;  %p6478_p5 = scmp.lt.s32.totalorder %s6721_s21, 2 }
  0x16   : > { %p6831_p3 = por %p150_p2, %p36_p12  ;;  %s210_s26 = sand.u32 1, %s6717_s20  }
  0x17   : > { %s6837_s23 = scalar_select %p27_p13, %s6717_s20, %s29_s15  }
  0x18   : > { %p38_p7 = por %p37_p0, %p36_p12  ;;  %s5618_s27 = sshll.u32 %s210_s26, 8 }
  0x19   : > { %s6303_s28 = sshll.u32 %s6721_s21, 8  ;;  %s214_s8 = scalar_lea.vmem [#allocation3], %s5618_s27 }
  0x1a   : > { %s219_s7 = scalar_lea.hbm %s10062_s0, %s6303_s28  ;;  %s222_s9 = sshll.u32 %s214_s8, 4  ;;  %s223_s9 = int_to_ptr.vmem [resolvable:$true] %s222_s9 }
  0x1b   : > { %s220_s10 = sshll.u32 %s219_s7, 4  ;;  %p6844_p2 = pnand %p6478_p5, %p38_p7  ;;  %s221_s10 = int_to_ptr.hbm [resolvable:$true] %s220_s10 }
  0x1c   : > { %s211_s12 = scalar_lea.sflag [#allocation4], %s210_s26  ;;  %s6621_s13 = sshra.s32 %s221_s10, 4  ;;  %s6622_s13 = int_to_ptr.hbm [resolvable:$true] %s6621_s13 }
  0x1d   : > { %s6623_s15 = scalar_lea.hbm %s6622_s13, 256  ;;  %p6625_p10 = pneg %p6844_p2 }
  0x1e   : > { %p6624_p9 = scmp.ne.s32.totalorder %s6622_s13, %s6623_s15  ;;  %s6628_s28 = scalar_lea.hbm %s10062_s0, 512 }
  0x1f   : > { %p6629_p0 = scmp.lt.s32.totalorder %s6622_s13, %s10062_s0  ;;  %p6630_p5 = scmp.lt.s32.totalorder %s6628_s28, %s6623_s15 }
  0x20   : > { %p6626_p12 = pnand %p6625_p10, %p6624_p9 }
  0x21   : > { %p6631_p7 = por %p6630_p5, %p6629_p0 }
  0x22   : > { %p6627_p13 = pneg %p6626_p12 }
  0x24   : > { %p6632_p11 = pnand %p6631_p7, %p6627_p13 }
  0x26   : > { %6635 = shalt.err (!%p6632_p11)
}
  0x27   : > { %s6727_s26 = smov 256   ;;  %s6728_s7 = smov 16  }
  0x28   : > { %6471 = dma.hbm_to_vmem [thread:$0]  (!%p6844_p2), %s221_s10, 4096, %s223_s9, %s211_s12, %s6727_s26, %s6727_s26, %s6728_s7  }
  0x29   : > { %234 = sbr.rel (%p6808_p8) target bundleno = 2258 (0x8d2), region = 40 }
  0x2e   : > { %s6861_s8 = sand.u32 1, %s6713_s19  }
  0x2f   : > { %s5622_s13 = sshll.u32 %s6861_s8, 8  ;;  %s237_s15 = scalar_lea.sflag [#allocation4], %s6861_s8 }
  0x30   : > { %s6867_s16 = scalar_lea.vmem [#allocation3], %s5622_s13 }
  0x31   : > { %6696 = dma.done.wait (%p6795_p4), %s237_s15, 4096  }
  0x32   : > { %6698 = vsyncadd (%p6795_p4), %s237_s15, 4294963200 }
  0x33   : > { %6700 = dma.done.wait (%p43_p1), [#allocation7], 18432  }
  0x34   : > { %6702 = vsyncadd (%p43_p1), [#allocation7], 4294948864  ;;  %v309_v0 = vld [vmem:[%s6867_s16 + $0xe0] sm:$0xff]  ;;  %v310_v1 = vld [vmem:[%s6867_s16 + $0xe8] sm:$0xff]  ;;  %s6729_s24 = smov 1   ;;  %s6730_s29 = smov 16  }
  0x35   : > { %v311_v2 = vld [vmem:[%s6867_s16 + $0xf0] sm:$0xff]  ;;  %v312_v3 = vld [vmem:[%s6867_s16 + $0xf8] sm:$0xff]  ;;  %v6881_v4 = vpack.c.bf16 %v310_v1, %v309_v0  ;;  %v301_v5 = vld [vmem:[%s6867_s16 + $0xa0] sm:$0xff]  ;;  %s6731_s9 = smov 127   ;;  %vm452_vm5 = vcmask 7168   ;;  %vm805_vm7 = vcmask 130048  }
  0x36   : > { %v302_v6 = vld [vmem:[%s6867_s16 + $0xa8] sm:$0xff]  ;;  %v6885_v7 = vpack.c.bf16 %v312_v3, %v311_v2  ;;  %v303_v8 = vld [vmem:[%s6867_s16 + $0xb0] sm:$0xff]  ;;  %v304_v9 = vld [vmem:[%s6867_s16 + $0xb8] sm:$0xff]  ;;  %s6733_s10 = smov 112   ;;  %s9918_s12 = scalar_lea.vmem [#allocation9], %s5622_s13 }
  0x37   : > { %v6889_v10 = vpack.c.bf16 %v302_v6, %v301_v5  ;;  %v305_v11 = vld [vmem:[%s6867_s16 + $0xc0] sm:$0xff]  ;;  %v400_v12 = vunpack.c.l.b16 %v6881_v4  ;;  %v6893_v13 = vpack.c.bf16 %v304_v9, %v303_v8  ;;  %v306_v14 = vld [vmem:[%s6867_s16 + $0xc8] sm:$0xff]  ;;  %v307_v15 = vld [vmem:[%s6867_s16 + $0xd0] sm:$0xff]  ;;  %s6448_s13 = sshll.u32 %s6786_s22, 8  ;;  %s5506_s22 = scalar_lea.sflag [#allocation5], %s6861_s8 }
  0x38   : > { %v308_v16 = vld [vmem:[%s6867_s16 + $0xd8] sm:$0xff]  ;;  %v402_v17 = vunpack.c.l.b16 %v6885_v7  ;;  %v6900_v19 = vpack.c.bf16 %v306_v14, %v305_v11  ;;  %v297_v22 = vld [vmem:[%s6867_s16 + $0x80] sm:$0xff]  ;;  %v298_v23 = vld [vmem:[%s6867_s16 + $0x88] sm:$0xff]  ;;  %v401_v11 = vunpack.c.h.b16 %v6881_v4  ;;  %s5517_s30 = scalar_lea.hbm %s10067_s5, %s6448_s13 }
  0x39   : > { %v392_v18 = vunpack.c.l.b16 %v6889_v10  ;;  %v6902_v20 = vpack.c.bf16 %v308_v16, %v307_v15  ;;  %v394_v21 = vunpack.c.l.b16 %v6893_v13  ;;  %v299_v25 = vld [vmem:[%s6867_s16 + $0x90] sm:$0xff]  ;;  %v300_v26 = vld [vmem:[%s6867_s16 + $0x98] sm:$0xff]  ;;  %v293_v27 = vld [vmem:[%s6867_s16 + $0x60] sm:$0xff]  ;;  %v6917_v32 = vpack.c.bf16 %v298_v23, %v297_v22 }
  0x3a   : > { %v6907_v24 = vpack.c.b16 %v402_v17, %v400_v12  ;;  %v285_v29 = vld [vmem:[%s6867_s16 + $0x20] sm:$0xff]  ;;  %v286_v30 = vld [vmem:[%s6867_s16 + $0x28] sm:$0xff]  ;;  %v287_v31 = vld [vmem:[%s6867_s16 + $0x30] sm:$0xff]  ;;  %v6919_v33 = vpack.c.bf16 %v300_v26, %v299_v25  ;;  %v396_v37 = vunpack.c.l.b16 %v6900_v19  ;;  %v403_v12 = vunpack.c.h.b16 %v6885_v7 }
  0x3b   : > { %v6912_v28 = vpack.c.b16 %v394_v21, %v392_v18  ;;  %v294_v34 = vld [vmem:[%s6867_s16 + $0x68] sm:$0xff]  ;;  %v295_v35 = vld [vmem:[%s6867_s16 + $0x70] sm:$0xff]  ;;  %v296_v36 = vld [vmem:[%s6867_s16 + $0x78] sm:$0xff]  ;;  %v398_v38 = vunpack.c.l.b16 %v6902_v20  ;;  %v388_v44 = vunpack.c.l.b16 %v6917_v32  ;;  %v6953_v57 = vpack.c.bf16 %v286_v30, %v285_v29 }
  0x3c   : > { %448 = vrot.lane.b32.xlu0 %v6907_v24, %s6729_s24  ;;  %v288_v39 = vld [vmem:[%s6867_s16 + $0x38] sm:$0xff]  ;;  %v6929_v40 = vpack.c.bf16 %v294_v34, %v293_v27  ;;  %v6931_v41 = vpack.c.bf16 %v296_v36, %v295_v35  ;;  %v281_v42 = vld [vmem:[%s6867_s16] sm:$0xff]  ;;  %v282_v43 = vld [vmem:[%s6867_s16 + $0x8] sm:$0xff]  ;;  %v390_v45 = vunpack.c.l.b16 %v6919_v33  ;;  %v7009_v14 = vpack.c.b16 %v403_v12, %v401_v11 }
  0x3d   : > { %440 = vrot.lane.b32.xlu1 %v6912_v28, %s6729_s24  ;;  %v283_v46 = vld [vmem:[%s6867_s16 + $0x10] sm:$0xff]  ;;  %v289_v47 = vld [vmem:[%s6867_s16 + $0x40] sm:$0xff]  ;;  %v290_v48 = vld [vmem:[%s6867_s16 + $0x48] sm:$0xff]  ;;  %v6951_v56 = vpack.c.b16 %v398_v38, %v396_v37  ;;  %v6955_v58 = vpack.c.bf16 %v288_v39, %v287_v31  ;;  %v6961_v61 = vpack.c.bf16 %v282_v43, %v281_v42  ;;  %v376_v1 = vunpack.c.l.b16 %v6953_v57 }
  0x3e   : > { %v384_v49 = vunpack.c.l.b16 %v6929_v40  ;;  %v386_v50 = vunpack.c.l.b16 %v6931_v41  ;;  %v284_v51 = vld [vmem:[%s6867_s16 + $0x18] sm:$0xff]  ;;  %v291_v52 = vld [vmem:[%s6867_s16 + $0x50] sm:$0xff]  ;;  %v6947_v54 = vpack.c.bf16 %v290_v48, %v289_v47  ;;  %v6959_v60 = vpack.c.b16 %v390_v45, %v388_v44  ;;  %vm7162_vm8 = vmneg %vm805_vm7 }
  0x3f   : > { %v292_v53 = vld [vmem:[%s6867_s16 + $0x58] sm:$0xff]  ;;  %v6963_v62 = vpack.c.bf16 %v284_v51, %v283_v46  ;;  %v378_v2 = vunpack.c.l.b16 %v6955_v58  ;;  %v372_v3 = vunpack.c.l.b16 %v6961_v61  ;;  %v313_v15 = vlaneseq }
  0x40   : > { %v6949_v55 = vpack.c.bf16 %v292_v53, %v291_v52  ;;  %v6957_v59 = vpack.c.b16 %v386_v50, %v384_v49  ;;  %v380_v63 = vunpack.c.l.b16 %v6947_v54  ;;  %v6732_v17 = vmov 0  }
  0x41   : > { %v374_v5 = vunpack.c.l.b16 %v6963_v62  ;;  %v6979_v8 = vpack.c.b16 %v378_v2, %v376_v1  ;;  %v7013_v16 = vand.u32 127, %v313_v15  ;;  %6527 = vset.pattern.permute.xlu0 %v6732_v17  ;;  %6526 = vset.pattern.permute.xlu2 %v6732_v17  ;;  %v7032_v29 = vunpack.c.l.b16 %v6732_v17 }
  0x42   : > { %432 = vrot.lane.b32.xlu2 %v6957_v59, %s6729_s24  ;;  %v382_v0 = vunpack.c.l.b16 %v6949_v55  ;;  %6528 = vset.pattern.permute.xlu1 %v6732_v17  ;;  %v7035_v30 = vunpack.c.h.b16 %v6732_v17  ;;  %v10165_v31 = vmov 0  ;;  %v397_v43 = vunpack.c.h.b16 %v6900_v19 }
  0x43   : > { %v6981_v9 = vpack.c.b16 %v374_v5, %v372_v3  ;;  %v7019_v4 = vadd.s32 128, %v7013_v16  ;;  %v320_v7 = vand.u32 15, %v7013_v16  ;;  %v399_v44 = vunpack.c.h.b16 %v6902_v20 }
  0x44   : > { %444 = vrot.lane.b32.xlu0 %v6951_v56, %s6729_s24  ;;  %v6977_v6 = vpack.c.b16 %v382_v0, %v380_v63  ;;  %v393_v63 = vunpack.c.h.b16 %v6889_v10  ;;  %v395_v0 = vunpack.c.h.b16 %v6893_v13  ;;  %v389_v10 = vunpack.c.h.b16 %v6917_v32 }
  0x45   : > { %436 = vrot.lane.b32.xlu1 %v6959_v60, %s6729_s24  ;;  %v327_v18 = vand.u32 15, %v7019_v4  ;;  %v495_v21 = vadd.s32 4294967295, %v320_v7  ;;  %v7069_v46 = vpack.c.b16 %v399_v44, %v397_v43  ;;  %v391_v13 = vunpack.c.h.b16 %v6919_v33 }
  0x46   : > { %v7113_v3 = vpack.c.b16 %v395_v0, %v393_v63  ;;  %v385_v32 = vunpack.c.h.b16 %v6929_v40  ;;  %v387_v33 = vunpack.c.h.b16 %v6931_v41  ;;  %v383_v40 = vunpack.c.h.b16 %v6949_v55 }
  0x47   : > { %v496_v22 = vadd.s32 4294967295, %v327_v18  ;;  %vm497_vm0 = vcmp.ge.s32.totalorder %v495_v21, 0  ;;  %v7135_v21 = vpack.c.b16 %v391_v13, %v389_v10  ;;  %v10168_v41 = vmov 0 }
  0x48   : > { %v10169_v41 = vsel %vm7162_vm8, 4294967295, %v10168_v41  ;;  %v379_v55 = vunpack.c.h.b16 %v6955_v58  ;;  %v375_v58 = vunpack.c.h.b16 %v6963_v62 }
  0x49   : > { %vm498_vm1 = vcmp.ge.s32.totalorder %v496_v22, 0  ;;  %10170 = vst [vmem:[#allocation14_spill] sm:$0xff] %v10169_v41  ;;  %v6346_v41 = vld [vmem:[#allocation6 + $0x154] sm:$0xf] }
  0x4a   : > { %428 = vrot.lane.b32.xlu2 %v6977_v6, %s6729_s24  ;;  %vm507_vm2 = vmpackc.low %vm498_vm1, %vm497_vm0 }
  0x4b   : > { %v7028_v23 = vsel %vm507_vm2, 65537, %v6732_v17 }
  0x4c   : > { %424 = vrot.lane.b32.xlu0 %v6979_v8, %s6729_s24  ;;  %v509_v25 = vperm.slane %v7028_v23, 0  ;;  %v510_v63 = vperm.slane %v7028_v23, 4  ;;  %v10173_v23 = vmov 0 }
  0x4d   : > { %420 = vrot.lane.b32.xlu1 %v6981_v9, %s6729_s24 }
  0x4e   : > { %v511_v26 = vunpack.c.l.b16 %v509_v25  ;;  %v512_v27 = vunpack.c.h.b16 %v509_v25  ;;  %v519_v10 = vunpack.c.h.b16 %v510_v63 }
  0x50   : > { %vm515_vm3 = vcmp.ne.s32.totalorder %v511_v26, %v7032_v29  ;;  %vm516_vm4 = vcmp.ne.s32.totalorder %v512_v27, %v7035_v30  ;;  %v7151_v26 = vpack.c.b16 %v387_v33, %v385_v32  ;;  %v381_v27 = vunpack.c.h.b16 %v6947_v54 }
  0x51   : > { %vm7039_vm6 = vmpackc.low %vm516_vm4, %vm515_vm3  ;;  %v377_v54 = vunpack.c.h.b16 %v6953_v57  ;;  %v373_v57 = vunpack.c.h.b16 %v6961_v61  ;;  %vm523_vm10 = vcmp.ne.s32.totalorder %v519_v10, %v7035_v30  ;;  %v616_v32 = vadd.s32 1, %v327_v18 }
  0x52   : > { %765 = vrot.lane.b32.xlu2 %v6951_v56, %s6730_s29  ;;  %v10166_v31 = vsel %vm7039_vm6, 4294967295, %v10165_v31  ;;  %vm573_vm3 = vcmask 1039360  }
  0x53   : > { %10167 = vst [vmem:[#allocation13_spill] sm:$0xff] %v10166_v31  ;;  %vm620_vm13 = vcmp.lt.s32.totalorder %v616_v32, 16 }
  0x54   : > { %769 = vrot.lane.b32.xlu0 %v6907_v24, %s6730_s29 }
  0x55   : > { %761 = vrot.lane.b32.xlu1 %v6912_v28, %s6730_s29 }
  0x5a   : > { %753 = vrot.lane.b32.xlu2 %v6957_v59, %s6730_s29 }
  0x5c   : > { %757 = vrot.lane.b32.xlu0 %v6959_v60, %s6730_s29 }
  0x5d   : > { %749 = vrot.lane.b32.xlu1 %v6977_v6, %s6730_s29 }
  0x62   : > { %741 = vrot.lane.b32.xlu2 %v6981_v9, %s6730_s29 }
  0x64   : > { %745 = vrot.lane.b32.xlu0 %v6979_v8, %s6730_s29 }
  0x65   : > { %569 = vrot.lane.b32.xlu1 %v6907_v24, %s6731_s9 }
  0x6c   : > { %450 = vrot.lane.b32.xlu0 %v7009_v14, %s6729_s24 }
  0x9c   : > { %v7049_v37 = vpop.permute.xlu2 %432 }
  0x9d   : > { %v481_v2 = vsel %vm452_vm5, 0, %v7049_v37 }
  0x9e   : > { %v7121_v11 = vsel %vm7039_vm6, %v481_v2, 0  ;;  %v518_v2 = vunpack.c.l.b16 %v510_v63 }
  0xa0   : > { %vm522_vm9 = vcmp.ne.s32.totalorder %v518_v2, %v7032_v29 }
  0xa1   : > { %vm7232_vm11 = vmpackc.low %vm523_vm10, %vm522_vm9  ;;  %vm2060_vm10 = vcmask 916480  }
  0xa2   : > { %v10174_v23 = vsel %vm7232_vm11, 4294967295, %v10173_v23 }
  0xa3   : > { %10175 = vst [vmem:[#allocation17_spill] sm:$0xff] %v10174_v23 }
  0xa4   : > { %v7081_v50 = vpop.permute.xlu2 %428 }
  0xa5   : > { %v478_v20 = vsel %vm452_vm5, 0, %v7081_v50 }
  0xa6   : > { %v7097_v52 = vsel %vm7039_vm6, %v478_v20, 0 }
  0xae   : > { %v7043_v34 = vpop.permute.xlu0 %448 }
  0xaf   : > { %v7045_v35 = vpop.permute.xlu1 %440  ;;  %v493_v36 = vsel %vm452_vm5, 0, %v7043_v34 }
  0xb0   : > { %v487_v38 = vsel %vm452_vm5, 0, %v7045_v35  ;;  %v7055_v39 = vsel %vm7039_vm6, %v493_v36, 0  ;;  %v7169_v36 = vpack.c.b16 %v383_v40, %v381_v27 }
  0xb1   : > { %v7059_v42 = vsel %vm7039_vm6, %v487_v38, 0  ;;  %737 = vrot.lane.b32.xlu2 %v7055_v39, %s6730_s29  ;;  %v7171_v38 = vpop.permute.xlu2 %765 }
  0xb2   : > { %729 = vrot.lane.b32.xlu0 %v7059_v42, %s6730_s29 }
  0xb6   : > { %v7067_v45 = vpop.permute.xlu0 %444 }
  0xb7   : > { %v490_v47 = vsel %vm452_vm5, 0, %v7067_v45  ;;  %v7077_v49 = vpop.permute.xlu1 %436 }
  0xb8   : > { %v7075_v48 = vsel %vm7039_vm6, %v490_v47, 0  ;;  %v484_v19 = vsel %vm452_vm5, 0, %v7077_v49  ;;  %v7191_v47 = vpack.c.b16 %v379_v55, %v377_v54  ;;  %v10177_v55 = vmov 0 }
  0xb9   : > { %733 = vrot.lane.b32.xlu1 %v7075_v48, %s6730_s29  ;;  %571 = vrot.lane.b32.xlu2 %v7009_v14, %s6731_s9  ;;  %v7093_v51 = vsel %vm7039_vm6, %v484_v19, 0  ;;  %v7206_v20 = vpop.permute.xlu2 %753 }
  0xba   : > { %446 = vrot.lane.b32.xlu0 %v7069_v46, %s6729_s24 }
  0xbe   : > { %v7103_v53 = vpop.permute.xlu0 %424 }
  0xbf   : > { %v475_v1 = vsel %vm452_vm5, 0, %v7103_v53  ;;  %v7123_v12 = vpop.permute.xlu1 %420 }
  0xc0   : > { %v7117_v5 = vsel %vm7039_vm6, %v475_v1, 0  ;;  %v472_v15 = vsel %vm452_vm5, 0, %v7123_v12  ;;  %v7214_v1 = vpack.c.b16 %v375_v58, %v373_v57  ;;  %v10180_v57 = vmov 0 }
  0xc1   : > { %565 = vrot.lane.b32.xlu1 %v6951_v56, %s6731_s9  ;;  %725 = vrot.lane.b32.xlu2 %v7093_v51, %s6730_s29  ;;  %v7139_v22 = vsel %vm7039_vm6, %v472_v15, 0  ;;  %v7236_v13 = vpop.permute.xlu2 %741 }
  0xc2   : > { %717 = vrot.lane.b32.xlu0 %v7097_v52, %s6730_s29  ;;  %10176 = vst [vmem:[#allocation18_spill] sm:$0xff] %v7236_v13 }
  0xc6   : > { %v7149_v25 = vpop.permute.xlu0 %769 }
  0xc7   : > { %5739 = vmatpush.bf16.msk.msra.mxu1 %vm7162_vm8, %v7149_v25  ;;  %v7186_v44 = vpop.permute.xlu1 %761 }
  0xc9   : > { %721 = vrot.lane.b32.xlu1 %v7121_v11, %s6730_s29  ;;  %713 = vrot.lane.b32.xlu2 %v7117_v5, %s6730_s29 }
  0xca   : > { %442 = vrot.lane.b32.xlu0 %v7113_v3, %s6729_s24 }
  0xcb   : > { %5741 = vmatpush.bf16.msk.msra.mxu1 %vm7162_vm8, %v7171_v38 }
  0xce   : > { %v7173_v43 = vpop.permute.xlu0 %757 }
  0xcf   : > { %5743 = vmatpush.bf16.msk.msra.mxu1 %vm7162_vm8, %v7186_v44  ;;  %v7212_v0 = vpop.permute.xlu1 %749 }
  0xd0   : > { %10172 = vst [vmem:[#allocation16_spill] sm:$0xff] %v7212_v0 }
  0xd1   : > { %709 = vrot.lane.b32.xlu1 %v7139_v22, %s6730_s29  ;;  %567 = vrot.lane.b32.xlu2 %v7069_v46, %s6731_s9 }
  0xd2   : > { %438 = vrot.lane.b32.xlu0 %v7135_v21, %s6729_s24 }
  0xd3   : > { %5745 = vmatpush.bf16.msk.msra.mxu1 %vm7162_vm8, %v7173_v43 }
  0xd6   : > { %v7196_v19 = vpop.permute.xlu0 %745 }
  0xd7   : > { %10171 = vst [vmem:[#allocation15_spill] sm:$0xff] %v7196_v19  ;;  %5747 = vmatpush.bf16.msk.msra.mxu1 %vm7162_vm8, %v7206_v20 }
  0xd9   : > { %561 = vrot.lane.b32.xlu1 %v6912_v28, %s6731_s9  ;;  %563 = vrot.lane.b32.xlu2 %v7113_v3, %s6731_s9 }
  0xda   : > { %434 = vrot.lane.b32.xlu0 %v7151_v26, %s6729_s24 }
  0xdb   : > { %5749 = vmatpush.bf16.msk.msra.mxu1 %vm7162_vm8, %v7212_v0 }
  0xde   : > { %v451_v61 = vpop.permute.xlu0 %450 }
  0xdf   : > { %5751 = vmatpush.bf16.msk.msra.mxu1 %vm7162_vm8, %v7196_v19  ;;  %v460_v62 = vsel %vm452_vm5, %v7043_v34, %v451_v61  ;;  %v615_v34 = vadd.s32 1, %v320_v7  ;;  %v6305_v19 = vld [vmem:[#allocation6 + $0x8] sm:$0xf0] }
  0xe0   : > { %v7243_v15 = vsel %vm7232_vm11, %v460_v62, 0 }
  0xe1   : > { %557 = vrot.lane.b32.xlu1 %v6959_v60, %s6731_s9  ;;  %559 = vrot.lane.b32.xlu2 %v7135_v21, %s6731_s9  ;;  %vm619_vm12 = vcmp.lt.s32.totalorder %v615_v34, 16 }
  0xe2   : > { %430 = vrot.lane.b32.xlu0 %v7169_v36, %s6729_s24  ;;  %vm627_vm14 = vmpackc.low %vm620_vm13, %vm619_vm12 }
  0xe3   : > { %5753 = vmatpush.bf16.msk.msra.mxu1 %vm7162_vm8, %v7236_v13  ;;  %v628_v33 = vsel %vm627_vm14, 65537, %v6732_v17  ;;  %v570_v17 = vpop.permute.xlu1 %569 }
  0xe4   : > { %v630_v27 = vperm.slane %v628_v33, 4  ;;  %v629_v16 = vperm.slane %v628_v33, 0 }
  0xe6   : > { %v638_v7 = vunpack.c.l.b16 %v630_v27  ;;  %v639_v40 = vunpack.c.h.b16 %v630_v27  ;;  %v631_v18 = vunpack.c.l.b16 %v629_v16  ;;  %v632_v54 = vunpack.c.h.b16 %v629_v16 }
  0xe8   : > { %vm642_vm15 = vcmp.ne.s32.totalorder %v638_v7, %v7032_v29  ;;  %vm643_vm0 = vcmp.ne.s32.totalorder %v639_v40, %v7035_v30  ;;  %vm635_vm1 = vcmp.ne.s32.totalorder %v631_v18, %v7032_v29  ;;  %vm636_vm2 = vcmp.ne.s32.totalorder %v632_v54, %v7035_v30 }
  0xe9   : > { %553 = vrot.lane.b32.xlu1 %v6957_v59, %s6731_s9  ;;  %555 = vrot.lane.b32.xlu2 %v7151_v26, %s6731_s9  ;;  %vm7271_vm4 = vmpackc.low %vm643_vm0, %vm642_vm15 }
  0xea   : > { %426 = vrot.lane.b32.xlu0 %v7191_v47, %s6729_s24  ;;  %v10178_v55 = vsel %vm7271_vm4, 4294967295, %v10177_v55  ;;  %vm7275_vm9 = vmpackc.low %vm636_vm2, %vm635_vm1 }
  0xeb   : > { %10179 = vst [vmem:[#allocation19_spill] sm:$0xff] %v10178_v55  ;;  %v10181_v57 = vsel %vm7275_vm9, 4294967295, %v10180_v57  ;;  %v6322_v55 = vld [vmem:[#allocation6 + $0x94] sm:$0xf] }
  0xec   : > { %10182 = vst [vmem:[#allocation20_spill] sm:$0xff] %v10181_v57  ;;  %v5678_v57 = vld [vmem:[#allocation6 + $0x6c] sm:$0xf0] }
  0xf1   : > { %549 = vrot.lane.b32.xlu1 %v6977_v6, %s6731_s9  ;;  %551 = vrot.lane.b32.xlu2 %v7169_v36, %s6731_s9 }
  0xf2   : > { %422 = vrot.lane.b32.xlu0 %v7214_v1, %s6729_s24 }
  0xf9   : > { %545 = vrot.lane.b32.xlu1 %v6979_v8, %s6731_s9  ;;  %547 = vrot.lane.b32.xlu2 %v7191_v47, %s6731_s9 }
  0xfa   : > { %739 = vrot.lane.b32.xlu0 %v7243_v15, %s6730_s29 }
 0x101   : > { %541 = vrot.lane.b32.xlu1 %v6981_v9, %s6731_s9  ;;  %543 = vrot.lane.b32.xlu2 %v7214_v1, %s6731_s9 }
 0x102   : > { %771 = vrot.lane.b32.xlu0 %v7009_v14, %s6730_s29 }
 0x10b   : > { %v7262_v4 = vpop.permute.xlu2 %737 }
 0x10c   : > { %5723 = vmatpush.bf16.msk.msra.mxu0 %vm7162_vm8, %v7262_v4 }
 0x113   : > { %v572_v58 = vpop.permute.xlu2 %571 }
 0x114   : > { %v581_v63 = vsel %vm573_vm3, %v570_v17, %v572_v58  ;;  %v613_v2 = vsel %vm573_vm3, %v572_v58, 0 }
 0x115   : > { %v7283_v29 = vsel %vm7271_vm4, %v613_v2, 0  ;;  %v7287_v30 = vsel %vm7275_vm9, %v581_v63, 0 }
 0x116   : > { %10183 = vst [vmem:[#allocation21_spill] sm:$0xff] %v7283_v29  ;;  %803 = vrot.lane.b32.xlu0 %v7283_v29, %s6730_s29  ;;  %801 = vrot.lane.b32.xlu1 %v7287_v30, %s6730_s29 }
 0x117   : > { %10184 = vst [vmem:[#allocation22_spill] sm:$0xff] %v7287_v30 }
 0x11b   : > { %v7293_v10 = vpop.permute.xlu2 %725 }
 0x123   : > { %v7297_v62 = vpop.permute.xlu2 %713 }
 0x124   : > { %v7295_v61 = vpop.permute.xlu0 %729  ;;  %10185 = vst [vmem:[#allocation23_spill] sm:$0xff] %v7297_v62 }
 0x12b   : > { %v7299_v34 = vpop.permute.xlu1 %733  ;;  %v568_v16 = vpop.permute.xlu2 %567 }
 0x12c   : > { %v447_v32 = vpop.permute.xlu0 %446  ;;  %5725 = vmatpush.bf16.msk.msra.mxu0 %vm7162_vm8, %v7299_v34  ;;  %v610_v2 = vsel %vm573_vm3, %v568_v16, 0 }
 0x12d   : > { %v459_v33 = vsel %vm452_vm5, %v7067_v45, %v447_v32 }
 0x12e   : > { %v7308_v27 = vsel %vm7232_vm11, %v459_v33, 0 }
 0x12f   : > { %735 = vrot.lane.b32.xlu2 %v7308_v27, %s6730_s29 }
 0x130   : > { %5727 = vmatpush.bf16.msk.msra.mxu0 %vm7162_vm8, %v7295_v61 }
 0x133   : > { %v566_v7 = vpop.permute.xlu1 %565 }
 0x134   : > { %v7315_v40 = vpop.permute.xlu0 %717  ;;  %v580_v18 = vsel %vm573_vm3, %v566_v7, %v568_v16  ;;  %5729 = vmatpush.bf16.msk.msra.mxu0 %vm7162_vm8, %v7293_v10  ;;  %v7355_v7 = vsel %vm7271_vm4, %v610_v2, 0 }
 0x135   : > { %v7323_v45 = vsel %vm7275_vm9, %v580_v18, 0  ;;  %10188 = vst [vmem:[#allocation26_spill] sm:$0xff] %v7355_v7  ;;  %v564_v18 = vpop.permute.xlu2 %563 }
 0x136   : > { %10186 = vst [vmem:[#allocation24_spill] sm:$0xff] %v7323_v45  ;;  %797 = vrot.lane.b32.xlu1 %v7323_v45, %s6730_s29 }
 0x13b   : > { %v7327_v54 = vpop.permute.xlu1 %721 }
 0x13c   : > { %v443_v17 = vpop.permute.xlu0 %442  ;;  %5731 = vmatpush.bf16.msk.msra.mxu0 %vm7162_vm8, %v7327_v54 }
 0x13d   : > { %v458_v58 = vsel %vm452_vm5, %v7045_v35, %v443_v17  ;;  %v560_v31 = vpop.permute.xlu2 %559 }
 0x13e   : > { %v7336_v63 = vsel %vm7232_vm11, %v458_v58, 0  ;;  %767 = vrot.lane.b32.xlu1 %v7069_v46, %s6730_s29 }
 0x13f   : > { %731 = vrot.lane.b32.xlu2 %v7336_v63, %s6730_s29 }
 0x140   : > { %5733 = vmatpush.bf16.msk.msra.mxu0 %vm7162_vm8, %v7315_v40 }
 0x143   : > { %v7346_v32 = vpop.permute.xlu1 %709 }
 0x144   : > { %10187 = vst [vmem:[#allocation25_spill] sm:$0xff] %v7346_v32  ;;  %v439_v33 = vpop.permute.xlu0 %438  ;;  %5735 = vmatpush.bf16.msk.msra.mxu0 %vm7162_vm8, %v7297_v62 }
 0x145   : > { %v457_v35 = vsel %vm452_vm5, %v7077_v49, %v439_v33 }
 0x146   : > { %v7359_v17 = vsel %vm7232_vm11, %v457_v35, 0  ;;  %799 = vrot.lane.b32.xlu1 %v7355_v7, %s6730_s29  ;;  %v5630_v7 = vld [vmem:[#allocation6 + $0xc] sm:$0xf0] }
 0x147   : > { %727 = vrot.lane.b32.xlu0 %v7359_v17, %s6730_s29 }
 0x148   : > { %5737 = vmatpush.bf16.msk.msra.mxu0 %vm7162_vm8, %v7346_v32  ;;  %v6304_v32 = vld [vmem:[#allocation6 + $0x4] sm:$0xf] }
 0x149   : > { %v7390_v29 = vor.u32 %v6304_v32, %v5630_v7 }
 0x14b   : > { %v562_v49 = vpop.permute.xlu1 %561  ;;  %10192 = vst [vmem:[#allocation30_spill] sm:$0xff] %v7390_v29  ;;  %1144 = vmatmul.bf16.vlgmr.msra.gmra.mxu1 %v7390_v29  ;;  %v6308_v29 = vld [vmem:[#allocation6 + $0x20] sm:$0xf0] }
 0x14c   : > { %v435_v16 = vpop.permute.xlu0 %434  ;;  %v579_v58 = vsel %vm573_vm3, %v562_v49, %v564_v18  ;;  %v5628_v49 = vld [vmem:[#allocation6] sm:$0xf] }
 0x14d   : > { %v456_v2 = vsel %vm452_vm5, %v7049_v37, %v435_v16  ;;  %v7373_v33 = vsel %vm7275_vm9, %v579_v58, 0  ;;  %v7384_v58 = vor.u32 %v6305_v19, %v5628_v49  ;;  %v607_v19 = vsel %vm573_vm3, %v564_v18, 0  ;;  %v5640_v18 = vld [vmem:[#allocation6 + $0x18] sm:$0xf] }
 0x14e   : > { %10189 = vst [vmem:[#allocation27_spill] sm:$0xff] %v7373_v33  ;;  %v7377_v35 = vsel %vm7232_vm11, %v456_v2, 0  ;;  %793 = vrot.lane.b32.xlu2 %v7373_v33, %s6730_s29  ;;  %v7402_v32 = vsel %vm7271_vm4, %v607_v19, 0  ;;  %v7417_v62 = vor.u32 %v6308_v29, %v5640_v18 }
 0x14f   : > { %723 = vrot.lane.b32.xlu1 %v7377_v35, %s6730_s29  ;;  %10190 = vst [vmem:[#allocation28_spill] sm:$0xff] %v7384_v58  ;;  %1095 = vmatmul.bf16.vlgmr.msra.gmra.mxu0 %v7384_v58  ;;  %v5642_v58 = vld [vmem:[#allocation6 + $0x24] sm:$0xf0] }
 0x150   : > { %10193 = vst [vmem:[#allocation31_spill] sm:$0xff] %v7402_v32 }
 0x153   : > { %v558_v13 = vpop.permute.xlu1 %557 }
 0x154   : > { %v431_v37 = vpop.permute.xlu0 %430  ;;  %v578_v16 = vsel %vm573_vm3, %v558_v13, %v560_v31  ;;  %v556_v13 = vpop.permute.xlu2 %555 }
 0x155   : > { %v7388_v2 = vsel %vm7275_vm9, %v578_v16, 0  ;;  %v455_v19 = vsel %vm452_vm5, %v7081_v50, %v431_v37  ;;  %v601_v29 = vsel %vm573_vm3, %v556_v13, 0 }
 0x156   : > { %10191 = vst [vmem:[#allocation29_spill] sm:$0xff] %v7388_v2  ;;  %763 = vrot.lane.b32.xlu2 %v7113_v3, %s6730_s29  ;;  %789 = vrot.lane.b32.xlu0 %v7388_v2, %s6730_s29  ;;  %v6307_v2 = vld [vmem:[#allocation6 + $0x1c] sm:$0xf]  ;;  %v7423_v30 = vsel %vm7232_vm11, %v455_v19, 0 }
 0x157   : > { %v7419_v0 = vor.u32 %v6307_v2, %v5642_v58 }
 0x159   : > { %10195 = vst [vmem:[#allocation33_spill] sm:$0xff] %v7419_v0 }
 0x15b   : > { %v554_v49 = vpop.permute.xlu1 %553  ;;  %1149 = vmatmul.bf16.gmra.mxu1 %v7419_v0 }
 0x15c   : > { %v427_v33 = vpop.permute.xlu0 %426  ;;  %v577_v16 = vsel %vm573_vm3, %v554_v49, %v556_v13  ;;  %v552_v49 = vpop.permute.xlu2 %551  ;;  %v6310_v13 = vld [vmem:[#allocation6 + $0x34] sm:$0xf] }
 0x15d   : > { %v7406_v7 = vsel %vm7275_vm9, %v577_v16, 0  ;;  %v604_v16 = vsel %vm573_vm3, %v560_v31, 0  ;;  %v454_v50 = vsel %vm452_vm5, %v7103_v53, %v427_v33  ;;  %v7455_v53 = vsel %vm7271_vm4, %v601_v29, 0  ;;  %v6311_v33 = vld [vmem:[#allocation6 + $0x38] sm:$0xf0] }
 0x15e   : > { %10194 = vst [vmem:[#allocation32_spill] sm:$0xff] %v7406_v7  ;;  %795 = vrot.lane.b32.xlu2 %v7402_v32, %s6730_s29  ;;  %759 = vrot.lane.b32.xlu0 %v7135_v21, %s6730_s29 }
 0x15f   : > { %785 = vrot.lane.b32.xlu1 %v7406_v7, %s6730_s29  ;;  %v7427_v7 = vsel %vm7271_vm4, %v604_v16, 0  ;;  %1100 = vmatmul.bf16.gmra.mxu0 %v7417_v62  ;;  %v7449_v16 = vsel %vm7232_vm11, %v454_v50, 0 }
 0x163   : > { %v550_v45 = vpop.permute.xlu1 %549 }
 0x164   : > { %v423_v32 = vpop.permute.xlu0 %422  ;;  %v576_v31 = vsel %vm573_vm3, %v550_v45, %v552_v49  ;;  %v548_v37 = vpop.permute.xlu2 %547  ;;  %v5652_v45 = vld [vmem:[#allocation6 + $0x30] sm:$0xf] }
 0x165   : > { %v7443_v2 = vsel %vm7275_vm9, %v576_v31, 0  ;;  %v5654_v31 = vld [vmem:[#allocation6 + $0x3c] sm:$0xf0]  ;;  %v453_v50 = vsel %vm452_vm5, %v7123_v12, %v423_v32 }
 0x166   : > { %719 = vrot.lane.b32.xlu2 %v7423_v30, %s6730_s29  ;;  %791 = vrot.lane.b32.xlu0 %v7427_v7, %s6730_s29  ;;  %10196 = vst [vmem:[#allocation34_spill] sm:$0xff] %v7443_v2  ;;  %v7470_v0 = vor.u32 %v6310_v13, %v5654_v31  ;;  %v6314_v13 = vld [vmem:[#allocation6 + $0x50] sm:$0xf0]  ;;  %v5666_v31 = vld [vmem:[#allocation6 + $0x54] sm:$0xf0] }
 0x167   : > { %755 = vrot.lane.b32.xlu1 %v7151_v26, %s6730_s29 }
 0x16b   : > { %v546_v18 = vpop.permute.xlu1 %545  ;;  %1154 = vmatmul.bf16.gmra.mxu1 %v7470_v0 }
 0x16c   : > { %v740_v58 = vpop.permute.xlu0 %739  ;;  %v544_v12 = vpop.permute.xlu2 %543 }
 0x16d   : > { %v813_v19 = vsel %vm805_vm7, %v7262_v4, %v740_v58  ;;  %v575_v4 = vsel %vm573_vm3, %v546_v18, %v548_v37  ;;  %v7476_v18 = vsel %vm7232_vm11, %v453_v50, 0  ;;  %v595_v50 = vsel %vm573_vm3, %v548_v37, 0 }
 0x16e   : > { %1234 = vmatpush.bf16.msra.mxu3 %v813_v19  ;;  %715 = vrot.lane.b32.xlu0 %v7449_v16, %s6730_s29  ;;  %v7466_v58 = vsel %vm7275_vm9, %v575_v4, 0  ;;  %v7468_v19 = vor.u32 %v6311_v33, %v5652_v45  ;;  %v5664_v33 = vld [vmem:[#allocation6 + $0x48] sm:$0xf] }
 0x16f   : > { %787 = vrot.lane.b32.xlu1 %v7455_v53, %s6730_s29  ;;  %781 = vrot.lane.b32.xlu2 %v7443_v2, %s6730_s29 }
 0x170   : > { %1105 = vmatmul.bf16.gmra.mxu0 %v7468_v19 }
 0x173   : > { %v542_v32 = vpop.permute.xlu1 %541 }
 0x174   : > { %v772_v29 = vpop.permute.xlu0 %771 }
 0x175   : > { %v821_v2 = vsel %vm805_vm7, %v7149_v25, %v772_v29  ;;  %v574_v25 = vsel %vm573_vm3, %v542_v32, %v544_v12  ;;  %v592_v29 = vsel %vm573_vm3, %v544_v12, 0  ;;  %v7504_v32 = vor.u32 %v6314_v13, %v5664_v33 }
 0x176   : > { %1283 = vmatpush.bf16.msrb.mxu0 %v821_v2  ;;  %777 = vrot.lane.b32.xlu0 %v7466_v58, %s6730_s29  ;;  %v598_v2 = vsel %vm573_vm3, %v552_v49, 0  ;;  %v7490_v4 = vsel %vm7275_vm9, %v574_v25, 0  ;;  %v6313_v49 = vld [vmem:[#allocation6 + $0x4c] sm:$0xf]  ;;  %v7516_v23 = vsel %vm7271_vm4, %v592_v29, 0 }
 0x177   : > { %711 = vrot.lane.b32.xlu1 %v7476_v18, %s6730_s29  ;;  %751 = vrot.lane.b32.xlu2 %v7169_v36, %s6730_s29  ;;  %v7494_v45 = vsel %vm7271_vm4, %v598_v2, 0  ;;  %v7506_v25 = vor.u32 %v6313_v49, %v5666_v31  ;;  %v7510_v2 = vsel %vm7271_vm4, %v595_v50, 0  ;;  %v5676_v31 = vld [vmem:[#allocation6 + $0x60] sm:$0xf]  ;;  %v6317_v50 = vld [vmem:[#allocation6 + $0x68] sm:$0xf0] }
 0x178   : > { %v6316_v29 = vld [vmem:[#allocation6 + $0x64] sm:$0xf] }
 0x17b   : > { %1159 = vmatmul.bf16.gmra.mxu1 %v7506_v25 }
 0x17e   : > { %747 = vrot.lane.b32.xlu0 %v7191_v47, %s6730_s29 }
 0x17f   : > { %783 = vrot.lane.b32.xlu2 %v7494_v45, %s6730_s29  ;;  %773 = vrot.lane.b32.xlu1 %v7490_v4, %s6730_s29 }
 0x180   : > { %1110 = vmatmul.bf16.gmra.mxu0 %v7504_v32 }
 0x186   : > { %743 = vrot.lane.b32.xlu0 %v7214_v1, %s6730_s29 }
 0x187   : > { %779 = vrot.lane.b32.xlu2 %v7510_v2, %s6730_s29  ;;  %775 = vrot.lane.b32.xlu1 %v7516_v23, %s6730_s29 }
 0x188   : > { %v804_v37 = vpop.permute.xlu0 %803  ;;  %v802_v12 = vpop.permute.xlu1 %801 }
 0x189   : > { %v736_v33 = vpop.permute.xlu2 %735  ;;  %5755 = vmatpush.bf16.msk.msra.mxu2 %vm7162_vm8, %v802_v12  ;;  %v829_v13 = vsel %vm805_vm7, %v802_v12, %v804_v37  ;;  %v7535_v37 = vor.u32 %v6317_v50, %v5676_v31  ;;  %v7537_v12 = vor.u32 %v6316_v29, %v5678_v57  ;;  %v5688_v57 = vld [vmem:[#allocation6 + $0x78] sm:$0xf]  ;;  %v5690_v50 = vld [vmem:[#allocation6 + $0x84] sm:$0xf0] }
 0x18a   : > { %v812_v49 = vsel %vm805_vm7, %v7299_v34, %v736_v33  ;;  %1332 = vmatpush.bf16.msrb.mxu1 %v829_v13  ;;  %v6320_v13 = vld [vmem:[#allocation6 + $0x80] sm:$0xf0] }
 0x18b   : > { %1235 = vmatpush.bf16.msra.mxu3 %v812_v49  ;;  %10197 = vst [vmem:[#allocation35_spill] sm:$0xff] %v7535_v37  ;;  %1164 = vmatmul.bf16.gmra.mxu1 %v7537_v12  ;;  %v6319_v49 = vld [vmem:[#allocation6 + $0x7c] sm:$0xf]  ;;  %v7555_v31 = vor.u32 %v6320_v13, %v5688_v57 }
 0x18c   : > { %10198 = vst [vmem:[#allocation36_spill] sm:$0xff] %v7537_v12  ;;  %v7557_v29 = vor.u32 %v6319_v49, %v5690_v50  ;;  %v5700_v49 = vld [vmem:[#allocation6 + $0x90] sm:$0xf]  ;;  %v6323_v50 = vld [vmem:[#allocation6 + $0x98] sm:$0xf0] }
 0x18d   : > { %10199 = vst [vmem:[#allocation37_spill] sm:$0xff] %v7555_v31 }
 0x18e   : > { %1994 = vrot.lane.b32.xlu0 %v7243_v15, %s6733_s10  ;;  %10200 = vst [vmem:[#allocation38_spill] sm:$0xff] %v7557_v29 }
 0x18f   : > { %1992 = vrot.lane.b32.xlu2 %v7055_v39, %s6733_s10  ;;  %2024 = vrot.lane.b32.xlu1 %v6907_v24, %s6733_s10 }
 0x190   : > { %1115 = vmatmul.bf16.gmra.mxu0 %v7535_v37 }
 0x196   : > { %1988 = vrot.lane.b32.xlu0 %v7075_v48, %s6733_s10 }
 0x197   : > { %2026 = vrot.lane.b32.xlu2 %v7009_v14, %s6733_s10  ;;  %1990 = vrot.lane.b32.xlu1 %v7308_v27, %s6733_s10 }
 0x199   : > { %v732_v34 = vpop.permute.xlu2 %731 }
 0x19a   : > { %v811_v33 = vsel %vm805_vm7, %v7295_v61, %v732_v34 }
 0x19b   : > { %1236 = vmatpush.bf16.msra.mxu3 %v811_v33  ;;  %1169 = vmatmul.bf16.gmra.mxu1 %v7557_v29  ;;  %v5702_v29 = vld [vmem:[#allocation6 + $0x9c] sm:$0xf0] }
 0x19c   : > { %v7581_v12 = vor.u32 %v6322_v55, %v5702_v29 }
 0x19e   : > { %2022 = vrot.lane.b32.xlu0 %v7069_v46, %s6733_s10  ;;  %10201 = vst [vmem:[#allocation39_spill] sm:$0xff] %v7581_v12 }
 0x19f   : > { %2020 = vrot.lane.b32.xlu2 %v6951_v56, %s6733_s10  ;;  %1984 = vrot.lane.b32.xlu1 %v7059_v42, %s6733_s10 }
 0x1a0   : > { %1120 = vmatmul.bf16.gmra.mxu0 %v7555_v31  ;;  %v7579_v31 = vor.u32 %v6323_v50, %v5700_v49  ;;  %v6326_v49 = vld [vmem:[#allocation6 + $0xb0] sm:$0xf0]  ;;  %v6325_v50 = vld [vmem:[#allocation6 + $0xac] sm:$0xf] }
 0x1a6   : > { %2016 = vrot.lane.b32.xlu0 %v6912_v28, %s6733_s10 }
 0x1a7   : > { %1986 = vrot.lane.b32.xlu2 %v7336_v63, %s6733_s10  ;;  %2018 = vrot.lane.b32.xlu1 %v7113_v3, %s6733_s10 }
 0x1a8   : > { %v794_v61 = vpop.permute.xlu2 %793  ;;  %v798_v34 = vpop.permute.xlu1 %797 }
 0x1a9   : > { %5757 = vmatpush.bf16.msk.msra.mxu2 %vm7162_vm8, %v798_v34 }
 0x1ab   : > { %1174 = vmatmul.bf16.gmra.mxu1 %v7581_v12 }
 0x1ad   : > { %5759 = vmatpush.bf16.msk.msra.mxu2 %vm7162_vm8, %v794_v61 }
 0x1ae   : > { %1982 = vrot.lane.b32.xlu0 %v7359_v17, %s6733_s10 }
 0x1af   : > { %1980 = vrot.lane.b32.xlu2 %v7093_v51, %s6733_s10  ;;  %2012 = vrot.lane.b32.xlu1 %v6959_v60, %s6733_s10 }
 0x1b0   : > { %v764_v33 = vpop.permute.xlu2 %763  ;;  %v768_v57 = vpop.permute.xlu1 %767  ;;  %1125 = vmatmul.bf16.gmra.mxu0 %v7579_v31 }
 0x1b1   : > { %v820_v13 = vsel %vm805_vm7, %v7171_v38, %v768_v57  ;;  %v819_v37 = vsel %vm805_vm7, %v7186_v44, %v764_v33 }
 0x1b2   : > { %1284 = vmatpush.bf16.msrb.mxu0 %v820_v13 }
 0x1b6   : > { %1976 = vrot.lane.b32.xlu0 %v7121_v11, %s6733_s10  ;;  %1285 = vmatpush.bf16.msrb.mxu0 %v819_v37 }
 0x1b7   : > { %2014 = vrot.lane.b32.xlu2 %v7135_v21, %s6733_s10  ;;  %1978 = vrot.lane.b32.xlu1 %v7377_v35, %s6733_s10 }
 0x1b8   : > { %v796_v38 = vpop.permute.xlu2 %795  ;;  %v800_v57 = vpop.permute.xlu1 %799 }
 0x1b9   : > { %v728_v55 = vpop.permute.xlu0 %727  ;;  %v828_v29 = vsel %vm805_vm7, %v798_v34, %v800_v57  ;;  %v827_v37 = vsel %vm805_vm7, %v794_v61, %v796_v38  ;;  %v5714_v38 = vld [vmem:[#allocation6 + $0xb4] sm:$0xf0] }
 0x1ba   : > { %v810_v44 = vsel %vm805_vm7, %v7293_v10, %v728_v55  ;;  %1333 = vmatpush.bf16.msrb.mxu1 %v828_v29  ;;  %v5712_v10 = vld [vmem:[#allocation6 + $0xa8] sm:$0xf]  ;;  %v7607_v57 = vor.u32 %v6325_v50, %v5714_v38 }
 0x1bb   : > { %1237 = vmatpush.bf16.msra.mxu3 %v810_v44  ;;  %v7605_v61 = vor.u32 %v6326_v49, %v5712_v10 }
 0x1bc   : > { %10203 = vst [vmem:[#allocation41_spill] sm:$0xff] %v7607_v57  ;;  %1179 = vmatmul.bf16.gmra.mxu1 %v7607_v57  ;;  %v10210_v57 = vld [vmem:[#allocation24_spill] sm:$0xff] }
 0x1bd   : > { %10202 = vst [vmem:[#allocation40_spill] sm:$0xff] %v7605_v61 }
 0x1be   : > { %2010 = vrot.lane.b32.xlu0 %v7151_v26, %s6733_s10  ;;  %1334 = vmatpush.bf16.msrb.mxu1 %v827_v37 }
 0x1bf   : > { %2008 = vrot.lane.b32.xlu2 %v6957_v59, %s6733_s10  ;;  %1972 = vrot.lane.b32.xlu1 %v7097_v52, %s6733_s10 }
 0x1c0   : > { %v720_v33 = vpop.permute.xlu2 %719  ;;  %1130 = vmatmul.bf16.gmra.mxu0 %v7605_v61 }
 0x1c1   : > { %v724_v13 = vpop.permute.xlu1 %723 }
 0x1c2   : > { %v809_v34 = vsel %vm805_vm7, %v7327_v54, %v724_v13  ;;  %v808_v54 = vsel %vm805_vm7, %v7315_v40, %v720_v33 }
 0x1c3   : > { %1238 = vmatpush.bf16.msra.mxu3 %v809_v34 }
 0x1c6   : > { %2004 = vrot.lane.b32.xlu0 %v6977_v6, %s6733_s10 }
 0x1c7   : > { %1974 = vrot.lane.b32.xlu2 %v7423_v30, %s6733_s10  ;;  %2006 = vrot.lane.b32.xlu1 %v7169_v36, %s6733_s10 }
 0x1c8   : > { %1239 = vmatpush.bf16.msra.mxu3 %v808_v54  ;;  %v790_v55 = vpop.permute.xlu0 %789  ;;  %v1145_v34 = vpop.f32.mrf.mxu1 }
 0x1c9   : > { %v782_v29 = vpop.permute.xlu2 %781  ;;  %5761 = vmatpush.bf16.msk.msra.mxu2 %vm7162_vm8, %v790_v55 }
 0x1cc   : > { %v1096_v13 = vpop.f32.mrf.mxu0 }
 0x1cd   : > { %v7631_v10 = vadd.f32 %v1145_v34, %v1096_v13  ;;  %v10207_v13 = vld [vmem:[#allocation22_spill] sm:$0xff]  ;;  %v10208_v34 = vld [vmem:[#allocation16_spill] sm:$0xff] }
 0x1ce   : > { %1970 = vrot.lane.b32.xlu0 %v7449_v16, %s6733_s10 }
 0x1cf   : > { %1968 = vrot.lane.b32.xlu2 %v7117_v5, %s6733_s10  ;;  %2000 = vrot.lane.b32.xlu1 %v6979_v8, %s6733_s10  ;;  %10204 = vst [vmem:[#allocation42_spill] sm:$0xff] %v7631_v10 }
 0x1d0   : > { %v760_v40 = vpop.permute.xlu0 %759 }
 0x1d1   : > { %v752_v44 = vpop.permute.xlu2 %751  ;;  %v786_v37 = vpop.permute.xlu1 %785  ;;  %v818_v33 = vsel %vm805_vm7, %v7173_v43, %v760_v40 }
 0x1d2   : > { %5763 = vmatpush.bf16.msk.msra.mxu2 %vm7162_vm8, %v786_v37  ;;  %1286 = vmatpush.bf16.msrb.mxu0 %v818_v33  ;;  %v7646_v33 = vpop.f32.mrf.mxu1 }
 0x1d3   : > { %10206 = vst [vmem:[#allocation44_spill] sm:$0xff] %v7646_v33 }
 0x1d4   : > { %v7644_v40 = vpop.f32.mrf.mxu0 }
 0x1d5   : > { %10205 = vst [vmem:[#allocation43_spill] sm:$0xff] %v7644_v40 }
 0x1d6   : > { %5765 = vmatpush.bf16.msk.msra.mxu2 %vm7162_vm8, %v782_v29  ;;  %1964 = vrot.lane.b32.xlu0 %v7139_v22, %s6733_s10 }
 0x1d7   : > { %2002 = vrot.lane.b32.xlu2 %v7191_v47, %s6733_s10  ;;  %1966 = vrot.lane.b32.xlu1 %v7476_v18, %s6733_s10 }
 0x1d8   : > { %v792_v43 = vpop.permute.xlu0 %791 }
 0x1d9   : > { %v784_v49 = vpop.permute.xlu2 %783  ;;  %v756_v50 = vpop.permute.xlu1 %755  ;;  %v826_v38 = vsel %vm805_vm7, %v790_v55, %v792_v43  ;;  %v816_v55 = vsel %vm805_vm7, %v10208_v34, %v752_v44  ;;  %v10212_v44 = vld [vmem:[#allocation21_spill] sm:$0xff]  ;;  %v10213_v34 = vld [vmem:[#allocation26_spill] sm:$0xff] }
 0x1da   : > { %v817_v54 = vsel %vm805_vm7, %v7206_v20, %v756_v50  ;;  %1335 = vmatpush.bf16.msrb.mxu1 %v826_v38  ;;  %v10209_v38 = vld [vmem:[#allocation23_spill] sm:$0xff]  ;;  %v1150_v10 = vpop.f32.mrf.mxu1 }
 0x1db   : > { %1287 = vmatpush.bf16.msrb.mxu0 %v817_v54 }
 0x1dc   : > { %v1101_v40 = vpop.f32.mrf.mxu0 }
 0x1dd   : > { %v7661_v61 = vadd.f32 %v1150_v10, %v1101_v40  ;;  %v10214_v10 = vld [vmem:[#allocation25_spill] sm:$0xff] }
 0x1de   : > { %1998 = vrot.lane.b32.xlu0 %v7214_v1, %s6733_s10 }
 0x1df   : > { %1996 = vrot.lane.b32.xlu2 %v6981_v9, %s6733_s10  ;;  %2056 = vrot.lane.b32.xlu1 %v10207_v13, %s6733_s10  ;;  %10211 = vst [vmem:[#allocation22_spill] sm:$0xff] %v7661_v61 }
 0x1e0   : > { %1288 = vmatpush.bf16.msrb.mxu0 %v816_v55  ;;  %v716_v20 = vpop.permute.xlu0 %715  ;;  %v824_v55 = vsel %vm805_vm7, %v782_v29, %v784_v49  ;;  %v10217_v49 = vld [vmem:[#allocation28_spill] sm:$0xff] }
 0x1e1   : > { %v780_v43 = vpop.permute.xlu2 %779  ;;  %v788_v50 = vpop.permute.xlu1 %787  ;;  %v807_v54 = vsel %vm805_vm7, %v10209_v38, %v716_v20 }
 0x1e2   : > { %1240 = vmatpush.bf16.msra.mxu3 %v807_v54  ;;  %v825_v33 = vsel %vm805_vm7, %v786_v37, %v788_v50  ;;  %v7678_v29 = vpop.f32.mrf.mxu1  ;;  %v10218_v54 = vld [vmem:[#allocation31_spill] sm:$0xff] }
 0x1e3   : > { %1336 = vmatpush.bf16.msrb.mxu1 %v825_v33  ;;  %10216 = vst [vmem:[#allocation23_spill] sm:$0xff] %v7678_v29 }
 0x1e4   : > { %v7676_v50 = vpop.f32.mrf.mxu0 }
 0x1e5   : > { %10215 = vst [vmem:[#allocation16_spill] sm:$0xff] %v7676_v50 }
 0x1e6   : > { %2052 = vrot.lane.b32.xlu0 %v10210_v57, %s6733_s10 }
 0x1e7   : > { %2058 = vrot.lane.b32.xlu2 %v10212_v44, %s6733_s10  ;;  %2054 = vrot.lane.b32.xlu1 %v10213_v34, %s6733_s10 }
 0x1e8   : > { %1337 = vmatpush.bf16.msrb.mxu1 %v824_v55  ;;  %v778_v20 = vpop.permute.xlu0 %777  ;;  %v5636_v55 = vld [vmem:[#allocation6 + $0x8] sm:$0xf] }
 0x1e9   : > { %v712_v38 = vpop.permute.xlu1 %711  ;;  %5767 = vmatpush.bf16.msk.msra.mxu2 %vm7162_vm8, %v778_v20  ;;  %v823_v37 = vsel %vm805_vm7, %v778_v20, %v780_v43  ;;  %v7671_v33 = vpop.permute.xlu2 %1992  ;;  %v6306_v43 = vld [vmem:[#allocation6 + $0x10] sm:$0xf0] }
 0x1ea   : > { %v806_v40 = vsel %vm805_vm7, %v10214_v10, %v712_v38  ;;  %v10219_v20 = vld [vmem:[#allocation27_spill] sm:$0xff]  ;;  %v10220_v38 = vld [vmem:[#allocation29_spill] sm:$0xff]  ;;  %v5637_v29 = vor.u32 %v6306_v43, %v5636_v55  ;;  %v1155_v61 = vpop.f32.mrf.mxu1  ;;  %v10223_v55 = vld [vmem:[#allocation18_spill] sm:$0xff] }
 0x1eb   : > { %1241 = vmatpush.bf16.msra.mxu3 %v806_v40  ;;  %v10221_v10 = vld [vmem:[#allocation15_spill] sm:$0xff] }
 0x1ec   : > { %1338 = vmatpush.bf16.msrb.mxu1 %v823_v37 }
 0x1ed   : > { %v1106_v50 = vpop.f32.mrf.mxu0 }
 0x1ee   : > { %1242 = vmatmul.bf16.vlgmr.msra.gmra.mxu3 %v10217_v49  ;;  %2050 = vrot.lane.b32.xlu0 %v10218_v54, %s6733_s10  ;;  %v7698_v12 = vadd.f32 %v1155_v61, %v1106_v50 }
 0x1ef   : > { %1623 = vmatpush.bf16.msrb.mxu3 %v6907_v24  ;;  %2048 = vrot.lane.b32.xlu2 %v10219_v20, %s6733_s10 }
 0x1f0   : > { %2044 = vrot.lane.b32.xlu1 %v10220_v38, %s6733_s10  ;;  %v748_v24 = vpop.permute.xlu0 %747 }
 0x1f1   : > { %v774_v37 = vpop.permute.xlu1 %773  ;;  %v815_v40 = vsel %vm805_vm7, %v10221_v10, %v748_v24  ;;  %v7693_v49 = vpop.permute.xlu2 %2026 }
 0x1f2   : > { %5769 = vmatpush.bf16.msk.msra.mxu2 %vm7162_vm8, %v774_v37  ;;  %1289 = vmatpush.bf16.msrb.mxu0 %v815_v40  ;;  %v7716_v61 = vpop.f32.mrf.mxu1 }
 0x1f3   : > { %1624 = vmatpush.bf16.msrb.mxu3 %v6951_v56  ;;  %v10222_v56 = vld [vmem:[#allocation32_spill] sm:$0xff] }
 0x1f5   : > { %1193 = vmatmul.bf16.vlgmr.msra.gmra.mxu2 %v5637_v29 }
 0x1f6   : > { %1574 = vmatpush.bf16.msrb.mxu2 %v7055_v39  ;;  %2040 = vrot.lane.b32.xlu0 %v10222_v56, %s6733_s10 }
 0x1f7   : > { %1625 = vmatpush.bf16.msrb.mxu3 %v6912_v28  ;;  %2046 = vrot.lane.b32.xlu2 %v7427_v7, %s6733_s10 }
 0x1f8   : > { %2042 = vrot.lane.b32.xlu1 %v7455_v53, %s6733_s10  ;;  %v744_v39 = vpop.permute.xlu0 %743 }
 0x1f9   : > { %v776_v28 = vpop.permute.xlu1 %775  ;;  %v814_v43 = vsel %vm805_vm7, %v10223_v55, %v744_v39  ;;  %v7718_v50 = vpop.permute.xlu2 %2020  ;;  %v6318_v55 = vld [vmem:[#allocation6 + $0x70] sm:$0xf0] }
 0x1fa   : > { %1575 = vmatpush.bf16.msrb.mxu2 %v7075_v48  ;;  %1290 = vmatpush.bf16.msrb.mxu0 %v814_v43  ;;  %v822_v24 = vsel %vm805_vm7, %v774_v37, %v776_v28  ;;  %v10224_v48 = vld [vmem:[#allocation30_spill] sm:$0xff]  ;;  %v1160_v10 = vpop.f32.mrf.mxu1 }
 0x1fb   : > { %1626 = vmatpush.bf16.msrb.mxu3 %v6959_v60  ;;  %1339 = vmatpush.bf16.msrb.mxu1 %v822_v24  ;;  %v7714_v60 = vpop.f32.mrf.mxu0  ;;  %v10225_v37 = vld [vmem:[#allocation34_spill] sm:$0xff] }
 0x1fd   : > { %1291 = vmatmul.bf16.vlgmr.msrb.gmra.mxu0 %v10224_v48 }
 0x1fe   : > { %1672 = vmatpush.bf16.msra.mxu0 %v10207_v13  ;;  %1576 = vmatpush.bf16.msrb.mxu2 %v7059_v42  ;;  %v6309_v42 = vld [vmem:[#allocation6 + $0x28] sm:$0xf0] }
 0x1ff   : > { %1627 = vmatpush.bf16.msrb.mxu3 %v6957_v59  ;;  %1721 = vmatpush.bf16.msra.mxu1 %v7243_v15  ;;  %v5648_v59 = vld [vmem:[#allocation6 + $0x20] sm:$0xf] }
 0x200   : > { %1247 = vmatmul.bf16.gmra.mxu3 %v7417_v62  ;;  %1340 = vmatmul.bf16.vlgmr.msrb.gmra.mxu1 %v5637_v29  ;;  %v7728_v15 = vpop.permute.xlu0 %1994  ;;  %v5649_v13 = vor.u32 %v6309_v42, %v5648_v59 }
 0x201   : > { %2036 = vrot.lane.b32.xlu2 %v10225_v37, %s6733_s10  ;;  %2038 = vrot.lane.b32.xlu0 %v7494_v45, %s6733_s10  ;;  %v2025_v62 = vpop.permute.xlu1 %2024 }
 0x202   : > { %2032 = vrot.lane.b32.xlu1 %v7466_v58, %s6733_s10  ;;  %1577 = vmatpush.bf16.msrb.mxu2 %v7093_v51 }
 0x203   : > { %1628 = vmatpush.bf16.msrb.mxu3 %v6977_v6  ;;  %1673 = vmatpush.bf16.msra.mxu0 %v10210_v57  ;;  %v1111_v29 = vpop.f32.mrf.mxu0  ;;  %v7743_v6 = vpop.permute.xlu2 %1986 }
 0x204   : > { %1722 = vmatpush.bf16.msra.mxu1 %v7308_v27  ;;  %v7737_v51 = vadd.f32 %v1160_v10, %v1111_v29  ;;  %v10228_v10 = vld [vmem:[#allocation36_spill] sm:$0xff] }
 0x205   : > { %1198 = vmatmul.bf16.gmra.mxu2 %v5649_v13 }
 0x206   : > { %1578 = vmatpush.bf16.msrb.mxu2 %v7121_v11 }
 0x207   : > { %1629 = vmatpush.bf16.msrb.mxu3 %v6979_v8  ;;  %1674 = vmatpush.bf16.msra.mxu0 %v10219_v20 }
 0x208   : > { %1723 = vmatpush.bf16.msra.mxu1 %v7336_v63  ;;  %v1989_v8 = vpop.permute.xlu0 %1988  ;;  %v7758_v63 = vpop.f32.mrf.mxu1 }
 0x209   : > { %2034 = vrot.lane.b32.xlu2 %v7510_v2, %s6733_s10  ;;  %2028 = vrot.lane.b32.xlu0 %v7490_v4, %s6733_s10  ;;  %v7750_v11 = vpop.permute.xlu1 %1990 }
 0x20a   : > { %2030 = vrot.lane.b32.xlu1 %v7516_v23, %s6733_s10  ;;  %1579 = vmatpush.bf16.msrb.mxu2 %v7097_v52  ;;  %v5660_v52 = vld [vmem:[#allocation6 + $0x38] sm:$0xf] }
 0x20b   : > { %1630 = vmatpush.bf16.msrb.mxu3 %v6981_v9  ;;  %1675 = vmatpush.bf16.msra.mxu0 %v10220_v38  ;;  %v7756_v27 = vpop.f32.mrf.mxu0  ;;  %v10226_v9 = vld [vmem:[#allocation33_spill] sm:$0xff] }
 0x20c   : > { %1724 = vmatpush.bf16.msra.mxu1 %v7359_v17  ;;  %v6312_v17 = vld [vmem:[#allocation6 + $0x40] sm:$0xf0] }
 0x20d   : > { %1296 = vmatmul.bf16.gmra.mxu0 %v10226_v9  ;;  %v6321_v9 = vld [vmem:[#allocation6 + $0x88] sm:$0xf0] }
 0x20e   : > { %1580 = vmatpush.bf16.msrb.mxu2 %v7117_v5 }
 0x20f   : > { %1819 = vmatpush.bf16.msra.mxu3 %v10212_v44  ;;  %1676 = vmatpush.bf16.msra.mxu0 %v10222_v56  ;;  %v1981_v44 = vpop.permute.xlu2 %1980 }
 0x210   : > { %1725 = vmatpush.bf16.msra.mxu1 %v7377_v35  ;;  %1252 = vmatmul.bf16.gmra.mxu3 %v7468_v19  ;;  %v7765_v5 = vpop.permute.xlu0 %2022  ;;  %v5661_v35 = vor.u32 %v6312_v17, %v5660_v52  ;;  %v10229_v17 = vld [vmem:[#allocation37_spill] sm:$0xff] }
 0x211   : > { %1345 = vmatmul.bf16.gmra.mxu1 %v5649_v13  ;;  %v1985_v57 = vpop.permute.xlu1 %1984 }
 0x212   : > { %1581 = vmatpush.bf16.msrb.mxu2 %v7139_v22 }
 0x213   : > { %1820 = vmatpush.bf16.msra.mxu3 %v10213_v34  ;;  %1677 = vmatpush.bf16.msra.mxu0 %v10225_v37  ;;  %v1116_v19 = vpop.f32.mrf.mxu0  ;;  %v1165_v34 = vpop.f32.mrf.mxu1 }
 0x214   : > { %1726 = vmatpush.bf16.msra.mxu1 %v7423_v30  ;;  %v7774_v22 = vadd.f32 %v1165_v34, %v1116_v19 }
 0x215   : > { %1203 = vmatmul.bf16.gmra.mxu2 %v5661_v35 }
 0x216   : > { %1770 = vmatpush.bf16.msra.mxu2 %v7009_v14  ;;  %v2076_v14 = vsel %vm2060_vm10, %v2025_v62, %v7693_v49 }
 0x217   : > { %1821 = vmatpush.bf16.msra.mxu3 %v10218_v54  ;;  %1678 = vmatpush.bf16.msra.mxu0 %v7466_v58  ;;  %v2068_v58 = vsel %vm2060_vm10, %v7671_v33, %v7728_v15  ;;  %v2066_v33 = vsel %vm2060_vm10, %v1985_v57, %v7743_v6 }
 0x218   : > { %1727 = vmatpush.bf16.msra.mxu1 %v7449_v16  ;;  %v7779_v30 = vpop.permute.xlu0 %2016  ;;  %v2067_v16 = vsel %vm2060_vm10, %v1989_v8, %v7750_v11  ;;  %v5696_v8 = vld [vmem:[#allocation6 + $0x80] sm:$0xf] }
 0x219   : > { %v5697_v19 = vor.u32 %v6321_v9, %v5696_v8  ;;  %v6328_v9 = vld [vmem:[#allocation6 + $0xc4] sm:$0xf] }
 0x21a   : > { %1771 = vmatpush.bf16.msra.mxu2 %v7069_v46  ;;  %v7785_v46 = vpop.permute.xlu1 %2018 }
 0x21b   : > { %1822 = vmatpush.bf16.msra.mxu3 %v7427_v7  ;;  %1679 = vmatpush.bf16.msra.mxu0 %v7490_v4  ;;  %v7790_v7 = vpop.permute.xlu2 %2014  ;;  %v7794_v4 = vpop.f32.mrf.mxu0 }
 0x21c   : > { %1728 = vmatpush.bf16.msra.mxu1 %v7476_v18  ;;  %v7796_v54 = vpop.f32.mrf.mxu1  ;;  %v6315_v18 = vld [vmem:[#allocation6 + $0x58] sm:$0xf0] }
 0x21d   : > { %1301 = vmatmul.bf16.gmra.mxu0 %v7470_v0 }
 0x21e   : > { %1772 = vmatpush.bf16.msra.mxu2 %v7113_v3  ;;  %v5672_v3 = vld [vmem:[#allocation6 + $0x50] sm:$0xf] }
 0x21f   : > { %2343 = vmatpush.bf16.msrb.mxu0 %v2068_v58  ;;  %1823 = vmatpush.bf16.msra.mxu3 %v7455_v53  ;;  %v2075_v58 = vsel %vm2060_vm10, %v7718_v50, %v7765_v5  ;;  %v10230_v50 = vld [vmem:[#allocation38_spill] sm:$0xff] }
 0x220   : > { %2392 = vmatpush.bf16.msrb.mxu1 %v2076_v14  ;;  %1257 = vmatmul.bf16.gmra.mxu3 %v7504_v32  ;;  %v7802_v53 = vpop.permute.xlu0 %1982 }
 0x221   : > { %1350 = vmatmul.bf16.gmra.mxu1 %v5661_v35  ;;  %v2065_v0 = vsel %vm2060_vm10, %v1981_v44, %v7802_v53 }
 0x222   : > { %1773 = vmatpush.bf16.msra.mxu2 %v7135_v21  ;;  %v7806_v20 = vpop.permute.xlu1 %2012  ;;  %v5673_v21 = vor.u32 %v6315_v18, %v5672_v3  ;;  %v2074_v18 = vsel %vm2060_vm10, %v7779_v30, %v7785_v46 }
 0x223   : > { %2344 = vmatpush.bf16.msrb.mxu0 %v2067_v16  ;;  %1824 = vmatpush.bf16.msra.mxu3 %v7494_v45  ;;  %v1121_v45 = vpop.f32.mrf.mxu0  ;;  %v2009_v40 = vpop.permute.xlu2 %2008 }
 0x224   : > { %v1170_v38 = vpop.f32.mrf.mxu1  ;;  %2393 = vmatpush.bf16.msrb.mxu1 %v2075_v58  ;;  %v2132_v58 = vsel %vm2060_vm10, %v7728_v15, 0 }
 0x225   : > { %1208 = vmatmul.bf16.gmra.mxu2 %v5673_v21  ;;  %v7813_v32 = vadd.f32 %v1170_v38, %v1121_v45  ;;  %v5708_v45 = vld [vmem:[#allocation6 + $0x98] sm:$0xf]  ;;  %v6324_v38 = vld [vmem:[#allocation6 + $0xa0] sm:$0xf0] }
 0x226   : > { %1774 = vmatpush.bf16.msra.mxu2 %v7151_v26 }
 0x227   : > { %2345 = vmatpush.bf16.msrb.mxu0 %v2066_v33  ;;  %1825 = vmatpush.bf16.msra.mxu3 %v7510_v2 }
 0x228   : > { %v1977_v56 = vpop.permute.xlu0 %1976  ;;  %2394 = vmatpush.bf16.msrb.mxu1 %v2074_v18 }
 0x22a   : > { %1775 = vmatpush.bf16.msra.mxu2 %v7169_v36  ;;  %v7816_v26 = vpop.permute.xlu1 %1978  ;;  %v5684_v36 = vld [vmem:[#allocation6 + $0x68] sm:$0xf] }
 0x22b   : > { %2346 = vmatpush.bf16.msrb.mxu0 %v2065_v0  ;;  %1826 = vmatpush.bf16.msra.mxu3 %v7516_v23  ;;  %v2064_v2 = vsel %vm2060_vm10, %v1977_v56, %v7816_v26  ;;  %v7821_v39 = vpop.f32.mrf.mxu0  ;;  %v10227_v23 = vld [vmem:[#allocation35_spill] sm:$0xff]  ;;  %v5685_v37 = vor.u32 %v6318_v55, %v5684_v36  ;;  %v2073_v0 = vsel %vm2060_vm10, %v7806_v20, %v7790_v7 }
 0x22c   : > { %v7823_v28 = vpop.f32.mrf.mxu1  ;;  %2395 = vmatpush.bf16.msrb.mxu1 %v2073_v0 }
 0x22d   : > { %1306 = vmatmul.bf16.gmra.mxu0 %v7506_v25 }
 0x22e   : > { %1776 = vmatpush.bf16.msra.mxu2 %v7191_v47  ;;  %v7830_v47 = vpop.permute.xlu2 %1974 }
 0x22f   : > { %2347 = vmatpush.bf16.msrb.mxu0 %v2064_v2  ;;  %v5709_v2 = vor.u32 %v6324_v38, %v5708_v45  ;;  %v2129_v45 = vsel %vm2060_vm10, %v7750_v11, 0  ;;  %v5786_v11 = vld [vmem:[#allocation6 + $0xe4] sm:$0xf0] }
 0x230   : > { %1262 = vmatmul.bf16.gmra.mxu3 %v10227_v23  ;;  %v7828_v43 = vpop.permute.xlu0 %2010 }
 0x231   : > { %1355 = vmatmul.bf16.gmra.mxu1 %v5673_v21  ;;  %v2072_v56 = vsel %vm2060_vm10, %v2009_v40, %v7828_v43  ;;  %v5720_v40 = vld [vmem:[#allocation6 + $0xb0] sm:$0xf] }
 0x232   : > { %1777 = vmatpush.bf16.msra.mxu2 %v7214_v1  ;;  %v1973_v24 = vpop.permute.xlu1 %1972  ;;  %2396 = vmatpush.bf16.msrb.mxu1 %v2072_v56  ;;  %v2126_v56 = vsel %vm2060_vm10, %v7743_v6, 0 }
 0x233   : > { %v2063_v48 = vsel %vm2060_vm10, %v1973_v24, %v7830_v47  ;;  %v1126_v59 = vpop.f32.mrf.mxu0 }
 0x234   : > { %2348 = vmatpush.bf16.msrb.mxu0 %v2063_v48  ;;  %v1175_v42 = vpop.f32.mrf.mxu1  ;;  %v10231_v48 = vld [vmem:[#allocation39_spill] sm:$0xff] }
 0x235   : > { %1213 = vmatmul.bf16.gmra.mxu2 %v5685_v37  ;;  %v7834_v1 = vadd.f32 %v1175_v42, %v1126_v59  ;;  %v10232_v59 = vld [vmem:[#allocation40_spill] sm:$0xff] }
 0x236   : > { %v1969_v52 = vpop.permute.xlu2 %1968 }
 0x238   : > { %v2005_v25 = vpop.permute.xlu0 %2004 }
 0x23a   : > { %v7836_v62 = vpop.permute.xlu1 %2006 }
 0x23b   : > { %v7838_v13 = vpop.f32.mrf.mxu0  ;;  %v2071_v36 = vsel %vm2060_vm10, %v2005_v25, %v7836_v62 }
 0x23c   : > { %v7840_v29 = vpop.f32.mrf.mxu1  ;;  %2397 = vmatpush.bf16.msrb.mxu1 %v2071_v36  ;;  %v6330_v36 = vld [vmem:[#allocation6 + $0xd0] sm:$0xf0] }
 0x23d   : > { %1311 = vmatmul.bf16.gmra.mxu0 %v10228_v10 }
 0x23e   : > { %v7865_v30 = vpop.permute.xlu2 %2002 }
 0x240   : > { %1267 = vmatmul.bf16.gmra.mxu3 %v10229_v17  ;;  %v7844_v57 = vpop.permute.xlu0 %1970 }
 0x241   : > { %1360 = vmatmul.bf16.gmra.mxu1 %v5685_v37  ;;  %v2062_v35 = vsel %vm2060_vm10, %v1969_v52, %v7844_v57  ;;  %v6327_v37 = vld [vmem:[#allocation6 + $0xb8] sm:$0xf0]  ;;  %v5774_v52 = vld [vmem:[#allocation6 + $0xcc] sm:$0xf0] }
 0x242   : > { %v2001_v44 = vpop.permute.xlu1 %2000  ;;  %2349 = vmatpush.bf16.msrb.mxu0 %v2062_v35  ;;  %v5721_v42 = vor.u32 %v6327_v37, %v5720_v40  ;;  %v7881_v17 = vor.u32 %v6328_v9, %v5774_v52  ;;  %v10233_v35 = vld [vmem:[#allocation41_spill] sm:$0xff]  ;;  %v6331_v40 = vld [vmem:[#allocation6 + $0xdc] sm:$0xf] }
 0x243   : > { %v1131_v34 = vpop.f32.mrf.mxu0  ;;  %v2070_v20 = vsel %vm2060_vm10, %v2001_v44, %v7865_v30 }
 0x244   : > { %v1180_v14 = vpop.f32.mrf.mxu1  ;;  %2398 = vmatpush.bf16.msrb.mxu1 %v2070_v20 }
 0x245   : > { %1218 = vmatmul.bf16.gmra.mxu2 %v5697_v19  ;;  %v7851_v16 = vadd.f32 %v1180_v14, %v1131_v34  ;;  %v6329_v34 = vld [vmem:[#allocation6 + $0xc8] sm:$0xf0] }
 0x246   : > { %v1997_v55 = vpop.permute.xlu2 %1996 }
 0x248   : > { %v1965_v3 = vpop.permute.xlu0 %1964 }
 0x24a   : > { %v7856_v33 = vpop.permute.xlu1 %1966 }
 0x24b   : > { %v2061_v21 = vsel %vm2060_vm10, %v1965_v3, %v7856_v33 }
 0x24c   : > { %2350 = vmatpush.bf16.msrb.mxu0 %v2061_v21  ;;  %v7889_v21 = vpop.f32.mrf.mxu0 }
 0x24d   : > { %1316 = vmatmul.bf16.gmra.mxu0 %v10230_v50  ;;  %v7891_v50 = vpop.f32.mrf.mxu1 }
 0x24e   : > { %v2059_v25 = vpop.permute.xlu2 %2058 }
 0x250   : > { %1272 = vmatmul.bf16.gmra.mxu3 %v7579_v31  ;;  %v7873_v23 = vpop.permute.xlu0 %1998 }
 0x251   : > { %1365 = vmatmul.bf16.gmra.mxu1 %v5697_v19  ;;  %v2069_v24 = vsel %vm2060_vm10, %v1997_v55, %v7873_v23  ;;  %v5772_v19 = vld [vmem:[#allocation6 + $0xc0] sm:$0xf]  ;;  %v10234_v55 = vld [vmem:[#allocation42_spill] sm:$0xff] }
 0x252   : > { %v2057_v31 = vpop.permute.xlu1 %2056  ;;  %2399 = vmatpush.bf16.msrb.mxu1 %v2069_v24  ;;  %v5773_v0 = vor.u32 %v6329_v34, %v5772_v19  ;;  %v7911_v19 = vor.u32 %v6331_v40, %v5786_v11 }
 0x253   : > { %v2084_v38 = vsel %vm2060_vm10, %v2057_v31, %v2059_v25 }
 0x255   : > { %1223 = vmatmul.bf16.gmra.mxu2 %v5709_v2 }
 0x256   : > { %v2049_v44 = vpop.permute.xlu2 %2048 }
 0x258   : > { %v2053_v10 = vpop.permute.xlu0 %2052 }
 0x25a   : > { %v7879_v8 = vpop.permute.xlu1 %2054 }
 0x25b   : > { %v2083_v31 = vsel %vm2060_vm10, %v2053_v10, %v7879_v8  ;;  %v5784_v10 = vld [vmem:[#allocation6 + $0xd8] sm:$0xf] }
 0x25d   : > { %1321 = vmatmul.bf16.gmra.mxu0 %v10231_v48 }
 0x25e   : > { %v7898_v20 = vpop.permute.xlu2 %2046 }
 0x260   : > { %1277 = vmatmul.bf16.gmra.mxu3 %v10232_v59  ;;  %v7884_v14 = vpop.permute.xlu0 %2050 }
 0x261   : > { %1370 = vmatmul.bf16.gmra.mxu1 %v5709_v2  ;;  %v5780_v2 = vld [vmem:[#allocation6 + $0xc8] sm:$0xf] }
 0x262   : > { %v2045_v3 = vpop.permute.xlu1 %2044  ;;  %v7907_v52 = vor.u32 %v6330_v36, %v5780_v2 }
 0x265   : > { %1228 = vmatmul.bf16.gmra.mxu2 %v5721_v42 }
 0x266   : > { %v2037_v36 = vpop.permute.xlu2 %2036 }
 0x268   : > { %v2041_v37 = vpop.permute.xlu0 %2040 }
 0x26d   : > { %1326 = vmatmul.bf16.gmra.mxu0 %v10233_v35  ;;  %v2123_v35 = vsel %vm2060_vm10, %v7802_v53, 0 }
 0x270   : > { %1631 = vmatmul.bf16.vlgmr.msrb.gmra.mxu3 %v7881_v17 }
 0x271   : > { %1375 = vmatmul.bf16.gmra.mxu1 %v5721_v42  ;;  %2490 = vmatpush.bf16.msrb.mxu3 %v2132_v58  ;;  %v1243_v18 = vpop.f32.mrf.mxu3  ;;  %v7905_v42 = vpop.permute.xlu1 %2042  ;;  %v2082_v58 = vsel %vm2060_vm10, %v2049_v44, %v7884_v14  ;;  %v2081_v44 = vsel %vm2060_vm10, %v2045_v3, %v7898_v20 }
 0x272   : > { %v2080_v3 = vsel %vm2060_vm10, %v2041_v37, %v7905_v42 }
 0x273   : > { %v2039_v40 = vpop.permute.xlu0 %2038 }
 0x274   : > { %v2079_v37 = vsel %vm2060_vm10, %v2037_v36, %v2039_v40 }
 0x275   : > { %2491 = vmatpush.bf16.msrb.mxu3 %v2129_v45  ;;  %1582 = vmatmul.bf16.vlgmr.msrb.gmra.mxu2 %v5773_v0  ;;  %v6332_v45 = vld [vmem:[#allocation6 + $0xe0] sm:$0xf0] }
 0x276   : > { %2441 = vmatpush.bf16.msrb.mxu2 %v2084_v38  ;;  %v2180_v38 = vsel %vm2060_vm10, %v2059_v25, 0  ;;  %v5785_v2 = vor.u32 %v6332_v45, %v5784_v10  ;;  %v2177_v25 = vsel %vm2060_vm10, %v7879_v8, 0  ;;  %v10235_v10 = vld [vmem:[#allocation22_spill] sm:$0xff] }
 0x278   : > { %v1194_v15 = vpop.f32.mrf.mxu2 }
 0x279   : > { %2492 = vmatpush.bf16.msrb.mxu3 %v2126_v56  ;;  %v7901_v24 = vadd.f32 %v1194_v15, %v10234_v55  ;;  %v1245_v48 = vpop.f32.mrf.mxu3  ;;  %v2033_v11 = vpop.permute.xlu1 %2032 }
 0x27a   : > { %v1292_v59 = vpop.f32.mrf.mxu0  ;;  %2442 = vmatpush.bf16.msrb.mxu2 %v2083_v31 }
 0x27b   : > { %v1293_v6 = vadd.f32 %v1292_v59, %v1243_v18  ;;  %v2120_v18 = vsel %vm2060_vm10, %v7816_v26, 0  ;;  %v2117_v26 = vsel %vm2060_vm10, %v7830_v47, 0  ;;  %v2174_v47 = vsel %vm2060_vm10, %v7884_v14, 0  ;;  %v5792_v59 = vld [vmem:[#allocation6 + $0xe0] sm:$0xf]  ;;  %v2029_v36 = vpop.permute.xlu0 %2028 }
 0x27c   : > { %v2171_v14 = vsel %vm2060_vm10, %v7898_v20, 0  ;;  %v2168_v20 = vsel %vm2060_vm10, %v7905_v42, 0  ;;  %v2156_v42 = vsel %vm2060_vm10, %v7693_v49, 0 }
 0x27d   : > { %v1341_v9 = vpop.f32.mrf.mxu1  ;;  %2493 = vmatpush.bf16.msrb.mxu3 %v2123_v35  ;;  %1680 = vmatmul.bf16.vlgmr.msra.gmra.mxu0 %v7907_v52  ;;  %v6334_v35 = vld [vmem:[#allocation6 + $0xf4] sm:$0xf] }
 0x27e   : > { %v7913_v34 = vadd.f32 %v1341_v9, %v1293_v6  ;;  %2443 = vmatpush.bf16.msrb.mxu2 %v2082_v58  ;;  %v6333_v6 = vld [vmem:[#allocation6 + $0xe8] sm:$0xf0]  ;;  %v5798_v58 = vld [vmem:[#allocation6 + $0xfc] sm:$0xf0]  ;;  %2539 = vmatpush.bf16.msra.mxu0 %v2156_v42 }
 0x280   : > { %v7921_v53 = vpop.f32.mrf.mxu2  ;;  %1636 = vmatmul.bf16.gmra.mxu3 %v7911_v19 }
 0x281   : > { %1729 = vmatmul.bf16.vlgmr.msra.gmra.mxu1 %v5773_v0  ;;  %2494 = vmatpush.bf16.msrb.mxu3 %v2120_v18  ;;  %v7942_v18 = vor.u32 %v6333_v6, %v5792_v59  ;;  %v2165_v6 = vsel %vm2060_vm10, %v2039_v40, 0 }
 0x282   : > { %2588 = vmatpush.bf16.msra.mxu1 %v2180_v38  ;;  %v1294_v15 = vpop.f32.mrf.mxu0  ;;  %2444 = vmatpush.bf16.msrb.mxu2 %v2081_v44  ;;  %v7948_v44 = vor.u32 %v6334_v35, %v5798_v58 }
 0x283   : > { %v1248_v56 = vpop.f32.mrf.mxu3  ;;  %v1295_v0 = vadd.f32 %v1294_v15, %v1245_v48  ;;  %v2114_v48 = vsel %vm2060_vm10, %v7844_v57, 0  ;;  %v2111_v57 = vsel %vm2060_vm10, %v7856_v33, 0  ;;  %v2035_v15 = vpop.permute.xlu2 %2034  ;;  %v5796_v33 = vld [vmem:[#allocation6 + $0xf0] sm:$0xf] }
 0x285   : > { %v1343_v55 = vpop.f32.mrf.mxu1  ;;  %2495 = vmatpush.bf16.msrb.mxu3 %v2117_v26  ;;  %1587 = vmatmul.bf16.gmra.mxu2 %v5785_v2  ;;  %v2078_v26 = vsel %vm2060_vm10, %v2033_v11, %v2035_v15 }
 0x286   : > { %2589 = vmatpush.bf16.msra.mxu1 %v2177_v25  ;;  %v7930_v31 = vadd.f32 %v1343_v55, %v1295_v0  ;;  %2445 = vmatpush.bf16.msrb.mxu2 %v2080_v3  ;;  %v2031_v25 = vpop.permute.xlu1 %2030 }
 0x287   : > { %v2077_v11 = vsel %vm2060_vm10, %v2029_v36, %v2031_v25 }
 0x288   : > { %v1199_v8 = vpop.f32.mrf.mxu2 }
 0x289   : > { %2496 = vmatpush.bf16.msrb.mxu3 %v2114_v48  ;;  %v7939_v45 = vadd.f32 %v1199_v8, %v10235_v10  ;;  %v6335_v48 = vld [vmem:[#allocation6 + $0xf8] sm:$0xf0]  ;;  %v2162_v10 = vsel %vm2060_vm10, %v2035_v15, 0 }
 0x28a   : > { %2590 = vmatpush.bf16.msra.mxu1 %v2174_v47  ;;  %2446 = vmatpush.bf16.msrb.mxu2 %v2079_v37  ;;  %v1297_v38 = vpop.f32.mrf.mxu0  ;;  %v5797_v59 = vor.u32 %v6335_v48, %v5796_v33  ;;  %v5804_v37 = vld [vmem:[#allocation6 + $0xf8] sm:$0xf] }
 0x28b   : > { %v1250_v9 = vpop.f32.mrf.mxu3  ;;  %v1298_v0 = vadd.f32 %v1297_v38, %v1248_v56  ;;  %v6337_v38 = vld [vmem:[#allocation6 + $0x10c] sm:$0xf] }
 0x28d   : > { %2497 = vmatpush.bf16.msrb.mxu3 %v2111_v57  ;;  %1685 = vmatmul.bf16.gmra.mxu0 %v7942_v18  ;;  %v6336_v57 = vld [vmem:[#allocation6 + $0x100] sm:$0xf0] }
 0x28e   : > { %2591 = vmatpush.bf16.msra.mxu1 %v2171_v14  ;;  %v1346_v55 = vpop.f32.mrf.mxu1  ;;  %2447 = vmatpush.bf16.msrb.mxu2 %v2078_v26  ;;  %v2159_v26 = vsel %vm2060_vm10, %v2031_v25, 0 }
 0x28f   : > { %v7951_v3 = vadd.f32 %v1346_v55, %v1298_v0  ;;  %v5810_v0 = vld [vmem:[#allocation6 + $0x114] sm:$0xf0]  ;;  %v7969_v55 = vor.u32 %v6336_v57, %v5804_v37  ;;  %v6339_v37 = vld [vmem:[#allocation6 + $0x118] sm:$0xf0] }
 0x290   : > { %1641 = vmatmul.bf16.gmra.mxu3 %v7948_v44  ;;  %v7957_v56 = vpop.f32.mrf.mxu2  ;;  %v7972_v33 = vor.u32 %v6337_v38, %v5810_v0  ;;  %v5822_v38 = vld [vmem:[#allocation6 + $0x12c] sm:$0xf0] }
 0x291   : > { %1734 = vmatmul.bf16.gmra.mxu1 %v5785_v2 }
 0x292   : > { %2592 = vmatpush.bf16.msra.mxu1 %v2168_v20  ;;  %2448 = vmatpush.bf16.msrb.mxu2 %v2077_v11  ;;  %v1299_v8 = vpop.f32.mrf.mxu0  ;;  %v5808_v20 = vld [vmem:[#allocation6 + $0x108] sm:$0xf]  ;;  %v6338_v11 = vld [vmem:[#allocation6 + $0x110] sm:$0xf0] }
 0x293   : > { %v1253_v47 = vpop.f32.mrf.mxu3  ;;  %v1300_v35 = vadd.f32 %v1299_v8, %v1250_v9  ;;  %v5809_v25 = vor.u32 %v6338_v11, %v5808_v20  ;;  %v5820_v11 = vld [vmem:[#allocation6 + $0x120] sm:$0xf] }
 0x295   : > { %1592 = vmatmul.bf16.gmra.mxu2 %v5797_v59 }
 0x296   : > { %2593 = vmatpush.bf16.msra.mxu1 %v2165_v6  ;;  %v1348_v58 = vpop.f32.mrf.mxu1 }
 0x297   : > { %v7961_v2 = vadd.f32 %v1348_v58, %v1300_v35 }
 0x298   : > { %v1204_v14 = vpop.f32.mrf.mxu2 }
 0x299   : > { %10236 = vst [vmem:[#allocation24_spill] sm:$0xff] %v7961_v2  ;;  %v7967_v40 = vadd.f32 %v1204_v14, %v7698_v12  ;;  %v2153_v12 = vsel %vm2060_vm10, %v7765_v5, 0  ;;  %v6340_v14 = vld [vmem:[#allocation6 + $0x124] sm:$0xf] }
 0x29a   : > { %2594 = vmatpush.bf16.msra.mxu1 %v2162_v10  ;;  %v1302_v36 = vpop.f32.mrf.mxu0  ;;  %2540 = vmatpush.bf16.msra.mxu0 %v2153_v12  ;;  %v5816_v10 = vld [vmem:[#allocation6 + $0x110] sm:$0xf]  ;;  %v6341_v12 = vld [vmem:[#allocation6 + $0x128] sm:$0xf0] }
 0x29b   : > { %v1255_v9 = vpop.f32.mrf.mxu3  ;;  %v1303_v49 = vadd.f32 %v1302_v36, %v1253_v47  ;;  %v7987_v0 = vor.u32 %v6339_v37, %v5816_v10  ;;  %v7989_v36 = vor.u32 %v6340_v14, %v5822_v38  ;;  %v6342_v14 = vld [vmem:[#allocation6 + $0x130] sm:$0xf0] }
 0x29d   : > { %1690 = vmatmul.bf16.gmra.mxu0 %v7969_v55 }
 0x29e   : > { %2595 = vmatpush.bf16.msra.mxu1 %v2159_v26  ;;  %v1351_v15 = vpop.f32.mrf.mxu1 }
 0x29f   : > { %v7974_v48 = vadd.f32 %v1351_v15, %v1303_v49  ;;  %v2150_v15 = vsel %vm2060_vm10, %v7785_v46, 0  ;;  %v2147_v46 = vsel %vm2060_vm10, %v7790_v7, 0  ;;  %v5832_v7 = vld [vmem:[#allocation6 + $0x138] sm:$0xf] }
 0x2a0   : > { %1646 = vmatmul.bf16.gmra.mxu3 %v7972_v33  ;;  %v7980_v6 = vpop.f32.mrf.mxu2  ;;  %2541 = vmatpush.bf16.msra.mxu0 %v2150_v15 }
 0x2a1   : > { %10237 = vst [vmem:[#allocation21_spill] sm:$0xff] %v7974_v48  ;;  %1739 = vmatmul.bf16.gmra.mxu1 %v5797_v59 }
 0x2a2   : > { %v1304_v35 = vpop.f32.mrf.mxu0 }
 0x2a3   : > { %v1258_v8 = vpop.f32.mrf.mxu3  ;;  %v1305_v47 = vadd.f32 %v1304_v35, %v1255_v9  ;;  %v5821_v35 = vor.u32 %v6341_v12, %v5820_v11 }
 0x2a4   : > { %2542 = vmatpush.bf16.msra.mxu0 %v2147_v46  ;;  %v2144_v46 = vsel %vm2060_vm10, %v7828_v43, 0 }
 0x2a5   : > { %1597 = vmatmul.bf16.gmra.mxu2 %v5809_v25 }
 0x2a6   : > { %v1353_v58 = vpop.f32.mrf.mxu1 }
 0x2a7   : > { %v7982_v42 = vadd.f32 %v1353_v58, %v1305_v47 }
 0x2a8   : > { %v1209_v57 = vpop.f32.mrf.mxu2  ;;  %2543 = vmatpush.bf16.msra.mxu0 %v2144_v46 }
 0x2a9   : > { %10238 = vst [vmem:[#allocation26_spill] sm:$0xff] %v7982_v42  ;;  %v7985_v5 = vadd.f32 %v1209_v57, %v7737_v51  ;;  %v5828_v57 = vld [vmem:[#allocation6 + $0x128] sm:$0xf] }
 0x2aa   : > { %v1307_v26 = vpop.f32.mrf.mxu0  ;;  %v8006_v15 = vor.u32 %v6342_v14, %v5828_v57 }
 0x2ab   : > { %v1260_v59 = vpop.f32.mrf.mxu3  ;;  %v1308_v49 = vadd.f32 %v1307_v26, %v1258_v8  ;;  %v5834_v26 = vld [vmem:[#allocation6 + $0x144] sm:$0xf0] }
 0x2ad   : > { %1695 = vmatmul.bf16.gmra.mxu0 %v7987_v0 }
 0x2ae   : > { %v1356_v9 = vpop.f32.mrf.mxu1 }
 0x2af   : > { %v7993_v20 = vadd.f32 %v1356_v9, %v1308_v49 }
 0x2b0   : > { %1651 = vmatmul.bf16.gmra.mxu3 %v7989_v36  ;;  %v7997_v51 = vpop.f32.mrf.mxu2 }
 0x2b1   : > { %10239 = vst [vmem:[#allocation25_spill] sm:$0xff] %v7993_v20  ;;  %1744 = vmatmul.bf16.gmra.mxu1 %v5809_v25  ;;  %v6343_v25 = vld [vmem:[#allocation6 + $0x13c] sm:$0xf]  ;;  %v2135_v20 = vsel %vm2060_vm10, %v7873_v23, 0 }
 0x2b2   : > { %v1309_v58 = vpop.f32.mrf.mxu0  ;;  %v8008_v11 = vor.u32 %v6343_v25, %v5834_v26 }
 0x2b3   : > { %v1263_v47 = vpop.f32.mrf.mxu3  ;;  %v1310_v8 = vadd.f32 %v1309_v58, %v1260_v59 }
 0x2b5   : > { %1602 = vmatmul.bf16.gmra.mxu2 %v5821_v35 }
 0x2b6   : > { %v1358_v10 = vpop.f32.mrf.mxu1 }
 0x2b7   : > { %v7999_v37 = vadd.f32 %v1358_v10, %v1310_v8  ;;  %v6344_v10 = vld [vmem:[#allocation6 + $0x140] sm:$0xf0] }
 0x2b8   : > { %v1214_v38 = vpop.f32.mrf.mxu2  ;;  %v5833_v57 = vor.u32 %v6344_v10, %v5832_v7 }
 0x2b9   : > { %10240 = vst [vmem:[#allocation28_spill] sm:$0xff] %v7999_v37  ;;  %v8004_v49 = vadd.f32 %v1214_v38, %v7774_v22 }
 0x2ba   : > { %v1312_v59 = vpop.f32.mrf.mxu0 }
 0x2bb   : > { %v1265_v9 = vpop.f32.mrf.mxu3  ;;  %v1313_v12 = vadd.f32 %v1312_v59, %v1263_v47  ;;  %v5840_v59 = vld [vmem:[#allocation6 + $0x140] sm:$0xf] }
 0x2bd   : > { %1700 = vmatmul.bf16.gmra.mxu0 %v8006_v15 }
 0x2be   : > { %v1361_v58 = vpop.f32.mrf.mxu1 }
 0x2bf   : > { %v8010_v8 = vadd.f32 %v1361_v58, %v1313_v12  ;;  %v6345_v12 = vld [vmem:[#allocation6 + $0x148] sm:$0xf0] }
 0x2c0   : > { %1656 = vmatmul.bf16.gmra.mxu3 %v8008_v11  ;;  %v8016_v22 = vpop.f32.mrf.mxu2  ;;  %v8023_v37 = vor.u32 %v6345_v12, %v5840_v59 }
 0x2c1   : > { %10241 = vst [vmem:[#allocation31_spill] sm:$0xff] %v8010_v8  ;;  %1749 = vmatmul.bf16.gmra.mxu1 %v5821_v35  ;;  %v5846_v8 = vld [vmem:[#allocation6 + $0x15c] sm:$0xf0] }
 0x2c2   : > { %v1314_v38 = vpop.f32.mrf.mxu0  ;;  %v8025_v7 = vor.u32 %v6346_v41, %v5846_v8 }
 0x2c3   : > { %v1268_v14 = vpop.f32.mrf.mxu3  ;;  %v1315_v47 = vadd.f32 %v1314_v38, %v1265_v9  ;;  %v2141_v38 = vsel %vm2060_vm10, %v7836_v62, 0  ;;  %v2138_v62 = vsel %vm2060_vm10, %v7865_v30, 0  ;;  %v5856_v30 = vld [vmem:[#allocation6 + $0x168] sm:$0xf] }
 0x2c4   : > { %2544 = vmatpush.bf16.msra.mxu0 %v2141_v38  ;;  %v5858_v38 = vld [vmem:[#allocation6 + $0x174] sm:$0xf0] }
 0x2c5   : > { %1607 = vmatmul.bf16.gmra.mxu2 %v5833_v57 }
 0x2c6   : > { %v1363_v25 = vpop.f32.mrf.mxu1 }
 0x2c7   : > { %v8018_v26 = vadd.f32 %v1363_v25, %v1315_v47  ;;  %v5844_v25 = vld [vmem:[#allocation6 + $0x150] sm:$0xf] }
 0x2c8   : > { %v1219_v58 = vpop.f32.mrf.mxu2  ;;  %2545 = vmatpush.bf16.msra.mxu0 %v2138_v62  ;;  %v6350_v62 = vld [vmem:[#allocation6 + $0x170] sm:$0xf0] }
 0x2c9   : > { %10242 = vst [vmem:[#allocation27_spill] sm:$0xff] %v8018_v26  ;;  %v8021_v43 = vadd.f32 %v1219_v58, %v7813_v32  ;;  %v6347_v26 = vld [vmem:[#allocation6 + $0x158] sm:$0xf0] }
 0x2ca   : > { %v1317_v46 = vpop.f32.mrf.mxu0  ;;  %v5845_v59 = vor.u32 %v6347_v26, %v5844_v25 }
 0x2cb   : > { %v1270_v35 = vpop.f32.mrf.mxu3  ;;  %v1318_v10 = vadd.f32 %v1317_v46, %v1268_v14  ;;  %v5852_v46 = vld [vmem:[#allocation6 + $0x158] sm:$0xf] }
 0x2cc   : > { %2546 = vmatpush.bf16.msra.mxu0 %v2135_v20 }
 0x2cd   : > { %1705 = vmatmul.bf16.gmra.mxu0 %v8023_v37 }
 0x2ce   : > { %v1366_v9 = vpop.f32.mrf.mxu1 }
 0x2cf   : > { %v8029_v47 = vadd.f32 %v1366_v9, %v1318_v10  ;;  %v6348_v10 = vld [vmem:[#allocation6 + $0x160] sm:$0xf0] }
 0x2d0   : > { %1661 = vmatmul.bf16.gmra.mxu3 %v8025_v7  ;;  %v8033_v32 = vpop.f32.mrf.mxu2  ;;  %v8042_v25 = vor.u32 %v6348_v10, %v5852_v46  ;;  %v5857_v46 = vor.u32 %v6350_v62, %v5856_v30 }
 0x2d1   : > { %10243 = vst [vmem:[#allocation29_spill] sm:$0xff] %v8029_v47  ;;  %1754 = vmatmul.bf16.gmra.mxu1 %v5833_v57  ;;  %v6349_v57 = vld [vmem:[#allocation6 + $0x16c] sm:$0xf] }
 0x2d2   : > { %v1319_v8 = vpop.f32.mrf.mxu0 }
 0x2d3   : > { %v1273_v41 = vpop.f32.mrf.mxu3  ;;  %v1320_v14 = vadd.f32 %v1319_v8, %v1270_v35  ;;  %v8044_v8 = vor.u32 %v6349_v57, %v5858_v38 }
 0x2d5   : > { %1612 = vmatmul.bf16.gmra.mxu2 %v5845_v59 }
 0x2d6   : > { %v1368_v12 = vpop.f32.mrf.mxu1 }
 0x2d7   : > { %v8035_v58 = vadd.f32 %v1368_v12, %v1320_v14 }
 0x2d8   : > { %v1224_v9 = vpop.f32.mrf.mxu2 }
 0x2d9   : > { %10244 = vst [vmem:[#allocation15_spill] sm:$0xff] %v8035_v58  ;;  %v8040_v47 = vadd.f32 %v1224_v9, %v7834_v1 }
 0x2da   : > { %v1322_v35 = vpop.f32.mrf.mxu0 }
 0x2db   : > { %v1275_v26 = vpop.f32.mrf.mxu3  ;;  %v1323_v14 = vadd.f32 %v1322_v35, %v1273_v41  ;;  %v5864_v35 = vld [vmem:[#allocation6 + $0x170] sm:$0xf] }
 0x2dd   : > { %1710 = vmatmul.bf16.gmra.mxu0 %v8042_v25 }
 0x2de   : > { %v1371_v12 = vpop.f32.mrf.mxu1 }
 0x2df   : > { %v8046_v58 = vadd.f32 %v1371_v12, %v1323_v14  ;;  %v6351_v14 = vld [vmem:[#allocation6 + $0x178] sm:$0xf0] }
 0x2e0   : > { %1666 = vmatmul.bf16.gmra.mxu3 %v8044_v8  ;;  %v8052_v1 = vpop.f32.mrf.mxu2 }
 0x2e1   : > { %10245 = vst [vmem:[#allocation32_spill] sm:$0xff] %v8046_v58  ;;  %1759 = vmatmul.bf16.gmra.mxu1 %v5845_v59  ;;  %v8059_v59 = vor.u32 %v6351_v14, %v5864_v35  ;;  %v5868_v35 = vld [vmem:[#allocation6 + $0x180] sm:$0xf]  ;;  %v5870_v14 = vld [vmem:[#allocation6 + $0x18c] sm:$0xf0] }
 0x2e2   : > { %v1324_v9 = vpop.f32.mrf.mxu0 }
 0x2e3   : > { %v1278_v10 = vpop.f32.mrf.mxu3  ;;  %v1325_v41 = vadd.f32 %v1324_v9, %v1275_v26 }
 0x2e5   : > { %1617 = vmatmul.bf16.gmra.mxu2 %v5857_v46 }
 0x2e6   : > { %v1373_v57 = vpop.f32.mrf.mxu1 }
 0x2e7   : > { %v8054_v38 = vadd.f32 %v1373_v57, %v1325_v41 }
 0x2e8   : > { %v1229_v12 = vpop.f32.mrf.mxu2 }
 0x2e9   : > { %10246 = vst [vmem:[#allocation18_spill] sm:$0xff] %v8054_v38  ;;  %v8057_v58 = vadd.f32 %v1229_v12, %v7851_v16 }
 0x2ea   : > { %v1327_v42 = vpop.f32.mrf.mxu0 }
 0x2eb   : > { %v1280_v23 = vpop.f32.mrf.mxu3  ;;  %v1328_v48 = vadd.f32 %v1327_v42, %v1278_v10  ;;  %v6353_v42 = vld [vmem:[#allocation6 + $0x188] sm:$0xf0] }
 0x2ed   : > { %1715 = vmatmul.bf16.gmra.mxu0 %v8059_v59 }
 0x2ee   : > { %v1376_v20 = vpop.f32.mrf.mxu1 }
 0x2ef   : > { %v8061_v30 = vadd.f32 %v1376_v20, %v1328_v48  ;;  %v6352_v48 = vld [vmem:[#allocation6 + $0x184] sm:$0xf] }
 0x2f0   : > { %1827 = vmatmul.bf16.vlgmr.msra.gmra.mxu3 %v7907_v52  ;;  %v8065_v26 = vpop.f32.mrf.mxu2  ;;  %v8072_v38 = vor.u32 %v6352_v48, %v5870_v14 }
 0x2f1   : > { %10247 = vst [vmem:[#allocation30_spill] sm:$0xff] %v8061_v30  ;;  %1764 = vmatmul.bf16.gmra.mxu1 %v5857_v46  ;;  %v8070_v46 = vor.u32 %v6353_v42, %v5868_v35 }
 0x2f2   : > { %v1329_v9 = vpop.f32.mrf.mxu0 }
 0x2f3   : > { %v1632_v62 = vpop.f32.mrf.mxu3  ;;  %v1330_v41 = vadd.f32 %v1329_v9, %v1280_v23  ;;  %v10250_v9 = vld [vmem:[#allocation43_spill] sm:$0xff] }
 0x2f5   : > { %1778 = vmatmul.bf16.vlgmr.msra.gmra.mxu2 %v7881_v17 }
 0x2f6   : > { %v1378_v16 = vpop.f32.mrf.mxu1 }
 0x2f7   : > { %v8068_v57 = vadd.f32 %v1378_v16, %v1330_v41  ;;  %v10251_v41 = vld [vmem:[#allocation44_spill] sm:$0xff] }
 0x2f8   : > { %v1583_v10 = vpop.f32.mrf.mxu2  ;;  %v1148_v16 = vadd.f32 %v10251_v41, %v10250_v9 }
 0x2f9   : > { %10248 = vst [vmem:[#allocation34_spill] sm:$0xff] %v8068_v57  ;;  %v1633_v12 = vadd.f32 %v1632_v62, %v1583_v10  ;;  %v5882_v57 = vld [vmem:[#allocation6 + $0x1a4] sm:$0xf0] }
 0x2fa   : > { %v1681_v52 = vpop.f32.mrf.mxu0  ;;  %v1197_v10 = vadd.f32 %v7921_v53, %v1148_v16 }
 0x2fb   : > { %v1634_v20 = vpop.f32.mrf.mxu3  ;;  %v1682_v30 = vadd.f32 %v1681_v52, %v1633_v12  ;;  %v6356_v12 = vld [vmem:[#allocation6 + $0x1a0] sm:$0xf0] }
 0x2fd   : > { %v8077_v23 = vadd.f32 %v1682_v30, %v7901_v24  ;;  %2351 = vmatmul.bf16.vlgmr.msrb.gmra.mxu0 %v8070_v46  ;;  %v5880_v30 = vld [vmem:[#allocation6 + $0x198] sm:$0xf] }
 0x2fe   : > { %v8074_v2 = vpop.f32.mrf.mxu1 }
 0x2ff   : > { %10249 = vst [vmem:[#allocation33_spill] sm:$0xff] %v8077_v23  ;;  %v8090_v23 = vor.u32 %v6356_v12, %v5880_v30 }
 0x300   : > { %1832 = vmatmul.bf16.gmra.mxu3 %v7942_v18  ;;  %v1585_v17 = vpop.f32.mrf.mxu2  ;;  %v6355_v18 = vld [vmem:[#allocation6 + $0x19c] sm:$0xf] }
 0x301   : > { %2400 = vmatmul.bf16.vlgmr.msrb.gmra.mxu1 %v8072_v38  ;;  %v1635_v62 = vadd.f32 %v1634_v20, %v1585_v17  ;;  %v8092_v41 = vor.u32 %v6355_v18, %v5882_v57 }
 0x302   : > { %v1683_v42 = vpop.f32.mrf.mxu0 }
 0x303   : > { %v1637_v35 = vpop.f32.mrf.mxu3  ;;  %v1684_v48 = vadd.f32 %v1683_v42, %v1635_v62  ;;  %v10254_v42 = vld [vmem:[#allocation16_spill] sm:$0xff] }
 0x305   : > { %1783 = vmatmul.bf16.gmra.mxu2 %v7911_v19  ;;  %v8088_v24 = vadd.f32 %v1684_v48, %v1197_v10  ;;  %v10255_v10 = vld [vmem:[#allocation23_spill] sm:$0xff] }
 0x306   : > { %v8085_v14 = vpop.f32.mrf.mxu1  ;;  %v1153_v48 = vadd.f32 %v10255_v10, %v10254_v42 }
 0x307   : > { %10252 = vst [vmem:[#allocation35_spill] sm:$0xff] %v8088_v24 }
 0x308   : > { %v1588_v52 = vpop.f32.mrf.mxu2  ;;  %v1202_v12 = vadd.f32 %v7957_v56, %v1153_v48 }
 0x309   : > { %v1638_v20 = vadd.f32 %v1637_v35, %v1588_v52 }
 0x30a   : > { %v1686_v9 = vpop.f32.mrf.mxu0 }
 0x30b   : > { %v1639_v17 = vpop.f32.mrf.mxu3  ;;  %v1687_v53 = vadd.f32 %v1686_v9, %v1638_v20  ;;  %v5892_v20 = vld [vmem:[#allocation6 + $0x1b0] sm:$0xf]  ;;  %v6359_v9 = vld [vmem:[#allocation6 + $0x1b8] sm:$0xf0] }
 0x30c   : > { %v8110_v24 = vor.u32 %v6359_v9, %v5892_v20 }
 0x30d   : > { %v8097_v16 = vadd.f32 %v1687_v53, %v7939_v45  ;;  %2356 = vmatmul.bf16.gmra.mxu0 %v8090_v23 }
 0x30e   : > { %v8094_v62 = vpop.f32.mrf.mxu1 }
 0x30f   : > { %10253 = vst [vmem:[#allocation36_spill] sm:$0xff] %v8097_v16  ;;  %v5894_v16 = vld [vmem:[#allocation6 + $0x1bc] sm:$0xf0] }
 0x310   : > { %1837 = vmatmul.bf16.gmra.mxu3 %v7969_v55  ;;  %v1590_v19 = vpop.f32.mrf.mxu2  ;;  %v6358_v55 = vld [vmem:[#allocation6 + $0x1b4] sm:$0xf] }
 0x311   : > { %2405 = vmatmul.bf16.gmra.mxu1 %v8092_v41  ;;  %v1640_v35 = vadd.f32 %v1639_v17, %v1590_v19  ;;  %v8112_v10 = vor.u32 %v6358_v55, %v5894_v16  ;;  %v6362_v55 = vld [vmem:[#allocation6 + $0x1d0] sm:$0xf0] }
 0x312   : > { %v1688_v57 = vpop.f32.mrf.mxu0 }
 0x313   : > { %v1642_v30 = vpop.f32.mrf.mxu3  ;;  %v1689_v52 = vadd.f32 %v1688_v57, %v1640_v35  ;;  %v1158_v57 = vadd.f32 %v7716_v61, %v7714_v60 }
 0x315   : > { %1788 = vmatmul.bf16.gmra.mxu2 %v7948_v44  ;;  %v8108_v45 = vadd.f32 %v1689_v52, %v1202_v12  ;;  %v1207_v52 = vadd.f32 %v7980_v6, %v1158_v57 }
 0x316   : > { %v8105_v18 = vpop.f32.mrf.mxu1 }
 0x318   : > { %v1593_v53 = vpop.f32.mrf.mxu2 }
 0x319   : > { %v1643_v17 = vadd.f32 %v1642_v30, %v1593_v53  ;;  %v5904_v53 = vld [vmem:[#allocation6 + $0x1c8] sm:$0xf] }
 0x31a   : > { %v1691_v42 = vpop.f32.mrf.mxu0 }
 0x31b   : > { %v1644_v19 = vpop.f32.mrf.mxu3  ;;  %v1692_v56 = vadd.f32 %v1691_v42, %v1643_v17  ;;  %v5906_v42 = vld [vmem:[#allocation6 + $0x1d4] sm:$0xf0] }
 0x31d   : > { %v8117_v48 = vadd.f32 %v1692_v56, %v7967_v40  ;;  %2361 = vmatmul.bf16.gmra.mxu0 %v8110_v24 }
 0x31e   : > { %v8114_v35 = vpop.f32.mrf.mxu1 }
 0x320   : > { %1842 = vmatmul.bf16.gmra.mxu3 %v7987_v0  ;;  %v1595_v44 = vpop.f32.mrf.mxu2  ;;  %v6361_v0 = vld [vmem:[#allocation6 + $0x1cc] sm:$0xf] }
 0x321   : > { %2410 = vmatmul.bf16.gmra.mxu1 %v8112_v10  ;;  %v1645_v30 = vadd.f32 %v1644_v19, %v1595_v44  ;;  %v8130_v44 = vor.u32 %v6362_v55, %v5904_v53  ;;  %v8132_v61 = vor.u32 %v6361_v0, %v5906_v42  ;;  %v5916_v0 = vld [vmem:[#allocation6 + $0x1e0] sm:$0xf]  ;;  %v6365_v42 = vld [vmem:[#allocation6 + $0x1e8] sm:$0xf0] }
 0x322   : > { %v1693_v16 = vpop.f32.mrf.mxu0 }
 0x323   : > { %v1647_v12 = vpop.f32.mrf.mxu3  ;;  %v1694_v20 = vadd.f32 %v1693_v16, %v1645_v30  ;;  %v1163_v16 = vadd.f32 %v7758_v63, %v7756_v27 }
 0x325   : > { %1793 = vmatmul.bf16.gmra.mxu2 %v7972_v33  ;;  %v8128_v40 = vadd.f32 %v1694_v20, %v1207_v52  ;;  %v1212_v53 = vadd.f32 %v7997_v51, %v1163_v16 }
 0x326   : > { %v8125_v9 = vpop.f32.mrf.mxu1 }
 0x328   : > { %v1598_v17 = vpop.f32.mrf.mxu2 }
 0x329   : > { %v1648_v19 = vadd.f32 %v1647_v12, %v1598_v17 }
 0x32a   : > { %v1696_v60 = vpop.f32.mrf.mxu0 }
 0x32b   : > { %v1649_v56 = vpop.f32.mrf.mxu3  ;;  %v1697_v6 = vadd.f32 %v1696_v60, %v1648_v19  ;;  %v5918_v60 = vld [vmem:[#allocation6 + $0x1ec] sm:$0xf0] }
 0x32d   : > { %v8137_v57 = vadd.f32 %v1697_v6, %v7985_v5  ;;  %2366 = vmatmul.bf16.gmra.mxu0 %v8130_v44 }
 0x32e   : > { %v8134_v30 = vpop.f32.mrf.mxu1 }
 0x330   : > { %1847 = vmatmul.bf16.gmra.mxu3 %v8006_v15  ;;  %v1600_v33 = vpop.f32.mrf.mxu2  ;;  %v6364_v15 = vld [vmem:[#allocation6 + $0x1e4] sm:$0xf] }
 0x331   : > { %2415 = vmatmul.bf16.gmra.mxu1 %v8132_v61  ;;  %v1650_v12 = vadd.f32 %v1649_v56, %v1600_v33  ;;  %v8150_v33 = vor.u32 %v6365_v42, %v5916_v0  ;;  %v8152_v63 = vor.u32 %v6364_v15, %v5918_v60  ;;  %v5928_v15 = vld [vmem:[#allocation6 + $0x1f8] sm:$0xf]  ;;  %v6368_v60 = vld [vmem:[#allocation6 + $0x200] sm:$0xf0] }
 0x332   : > { %v1698_v20 = vpop.f32.mrf.mxu0 }
 0x333   : > { %v1652_v52 = vpop.f32.mrf.mxu3  ;;  %v1699_v55 = vadd.f32 %v1698_v20, %v1650_v12  ;;  %v1168_v20 = vadd.f32 %v7796_v54, %v7794_v4 }
 0x335   : > { %1798 = vmatmul.bf16.gmra.mxu2 %v7989_v36  ;;  %v8148_v5 = vadd.f32 %v1699_v55, %v1212_v53  ;;  %v1217_v0 = vadd.f32 %v8016_v22, %v1168_v20 }
 0x336   : > { %v8145_v17 = vpop.f32.mrf.mxu1 }
 0x338   : > { %v1603_v19 = vpop.f32.mrf.mxu2 }
 0x339   : > { %v1653_v56 = vadd.f32 %v1652_v52, %v1603_v19 }
 0x33a   : > { %v1701_v27 = vpop.f32.mrf.mxu0 }
 0x33b   : > { %v1654_v6 = vpop.f32.mrf.mxu3  ;;  %v1702_v51 = vadd.f32 %v1701_v27, %v1653_v56  ;;  %v5930_v27 = vld [vmem:[#allocation6 + $0x204] sm:$0xf0] }
 0x33d   : > { %v8157_v16 = vadd.f32 %v1702_v51, %v8004_v49  ;;  %2371 = vmatmul.bf16.gmra.mxu0 %v8150_v33 }
 0x33e   : > { %v8154_v12 = vpop.f32.mrf.mxu1 }
 0x340   : > { %1852 = vmatmul.bf16.gmra.mxu3 %v8023_v37  ;;  %v1605_v36 = vpop.f32.mrf.mxu2  ;;  %v6367_v37 = vld [vmem:[#allocation6 + $0x1fc] sm:$0xf] }
 0x341   : > { %2420 = vmatmul.bf16.gmra.mxu1 %v8152_v63  ;;  %v1655_v52 = vadd.f32 %v1654_v6, %v1605_v36  ;;  %v8170_v36 = vor.u32 %v6368_v60, %v5928_v15  ;;  %v8172_v54 = vor.u32 %v6367_v37, %v5930_v27  ;;  %v5940_v37 = vld [vmem:[#allocation6 + $0x210] sm:$0xf]  ;;  %v6371_v27 = vld [vmem:[#allocation6 + $0x218] sm:$0xf0] }
 0x342   : > { %v1703_v55 = vpop.f32.mrf.mxu0 }
 0x343   : > { %v1657_v53 = vpop.f32.mrf.mxu3  ;;  %v1704_v42 = vadd.f32 %v1703_v55, %v1655_v52  ;;  %v2780_v55 = vld [vmem:[%s10064_s2 + $0x78] sm:$0xff] }
 0x344   : > { %2858 = vperm.xlu0 %6527, %v2780_v55  }
 0x345   : > { %1803 = vmatmul.bf16.gmra.mxu2 %v8008_v11  ;;  %v8168_v49 = vadd.f32 %v1704_v42, %v1217_v0  ;;  %v1173_v0 = vadd.f32 %v7823_v28, %v7821_v39  ;;  %v8193_v39 = vor.u32 %v6371_v27, %v5940_v37 }
 0x346   : > { %v8165_v19 = vpop.f32.mrf.mxu1 }
 0x348   : > { %v1608_v56 = vpop.f32.mrf.mxu2 }
 0x349   : > { %v1658_v6 = vadd.f32 %v1657_v53, %v1608_v56 }
 0x34a   : > { %v1706_v4 = vpop.f32.mrf.mxu0 }
 0x34b   : > { %v1659_v51 = vpop.f32.mrf.mxu3  ;;  %v1707_v22 = vadd.f32 %v1706_v4, %v1658_v6  ;;  %v5942_v4 = vld [vmem:[#allocation6 + $0x21c] sm:$0xf0] }
 0x34d   : > { %v8177_v20 = vadd.f32 %v1707_v22, %v8021_v43  ;;  %2376 = vmatmul.bf16.gmra.mxu0 %v8170_v36  ;;  %v1222_v43 = vadd.f32 %v8033_v32, %v1173_v0  ;;  %v2779_v32 = vld [vmem:[%s10064_s2 + $0x70] sm:$0xff] }
 0x34e   : > { %v8174_v52 = vpop.f32.mrf.mxu1  ;;  %2853 = vperm.xlu2 %6526, %v2779_v32   ;;  %v6373_v32 = vld [vmem:[#allocation6 + $0x22c] sm:$0xf] }
 0x350   : > { %1857 = vmatmul.bf16.gmra.mxu3 %v8042_v25  ;;  %v1610_v11 = vpop.f32.mrf.mxu2 }
 0x351   : > { %2425 = vmatmul.bf16.gmra.mxu1 %v8172_v54  ;;  %v1660_v53 = vadd.f32 %v1659_v51, %v1610_v11  ;;  %v6370_v51 = vld [vmem:[#allocation6 + $0x214] sm:$0xf] }
 0x352   : > { %v1708_v15 = vpop.f32.mrf.mxu0  ;;  %v8195_v55 = vor.u32 %v6370_v51, %v5942_v4  ;;  %v2777_v51 = vld [vmem:[%s10064_s2 + $0x60] sm:$0xff] }
 0x353   : > { %v1662_v42 = vpop.f32.mrf.mxu3  ;;  %v1709_v60 = vadd.f32 %v1708_v15, %v1660_v53  ;;  %2843 = vperm.xlu1 %6528, %v2777_v51   ;;  %v5876_v51 = vld [vmem:[#allocation6 + $0x188] sm:$0xf] }
 0x355   : > { %1808 = vmatmul.bf16.gmra.mxu2 %v8025_v7  ;;  %v8191_v25 = vadd.f32 %v1709_v60, %v1222_v43  ;;  %v2773_v7 = vld [vmem:[%s10064_s2 + $0x40] sm:$0xff]  ;;  %v1178_v60 = vadd.f32 %v7840_v29, %v7838_v13  ;;  %v5952_v29 = vld [vmem:[#allocation6 + $0x228] sm:$0xf] }
 0x356   : > { %v8188_v56 = vpop.f32.mrf.mxu1  ;;  %2823 = vperm.xlu0 %6527, %v2773_v7   ;;  %v5954_v7 = vld [vmem:[#allocation6 + $0x234] sm:$0xf0] }
 0x357   : > { %10256 = vst [vmem:[#allocation37_spill] sm:$0xff] %v8191_v25 }
 0x358   : > { %v1613_v6 = vpop.f32.mrf.mxu2 }
 0x359   : > { %v1663_v22 = vadd.f32 %v1662_v42, %v1613_v6  ;;  %v2778_v6 = vld [vmem:[%s10064_s2 + $0x68] sm:$0xff] }
 0x35a   : > { %v1711_v28 = vpop.f32.mrf.mxu0  ;;  %2848 = vperm.xlu2 %6526, %v2778_v6  }
 0x35b   : > { %v1664_v11 = vpop.f32.mrf.mxu3  ;;  %v1712_v53 = vadd.f32 %v1711_v28, %v1663_v22 }
 0x35d   : > { %v8206_v42 = vadd.f32 %v1712_v53, %v8040_v47  ;;  %2381 = vmatmul.bf16.gmra.mxu0 %v8193_v39  ;;  %v2772_v47 = vld [vmem:[%s10064_s2 + $0x38] sm:$0xff] }
 0x35e   : > { %v8203_v0 = vpop.f32.mrf.mxu1  ;;  %2818 = vperm.xlu0 %6527, %v2772_v47  }
 0x35f   : > { %10257 = vst [vmem:[#allocation38_spill] sm:$0xff] %v8206_v42 }
 0x360   : > { %1862 = vmatmul.bf16.gmra.mxu3 %v8059_v59  ;;  %v1615_v15 = vpop.f32.mrf.mxu2  ;;  %v1227_v59 = vadd.f32 %v8052_v1, %v1178_v60  ;;  %v2776_v60 = vld [vmem:[%s10064_s2 + $0x58] sm:$0xff] }
 0x361   : > { %2430 = vmatmul.bf16.gmra.mxu1 %v8195_v55  ;;  %v1665_v43 = vadd.f32 %v1664_v11, %v1615_v15  ;;  %v6374_v11 = vld [vmem:[#allocation6 + $0x230] sm:$0xf0] }
 0x362   : > { %v1713_v27 = vpop.f32.mrf.mxu0  ;;  %v8228_v42 = vor.u32 %v6374_v11, %v5952_v29  ;;  %2838 = vperm.xlu2 %6526, %v2776_v60  }
 0x363   : > { %v1667_v37 = vpop.f32.mrf.mxu3  ;;  %v1714_v4 = vadd.f32 %v1713_v27, %v1665_v43  ;;  %v8230_v43 = vor.u32 %v6373_v32, %v5954_v7  ;;  %v2775_v27 = vld [vmem:[%s10064_s2 + $0x50] sm:$0xff] }
 0x364   : > { %2833 = vperm.xlu1 %6528, %v2775_v27  }
 0x365   : > { %1813 = vmatmul.bf16.gmra.mxu2 %v8044_v8  ;;  %v8226_v13 = vadd.f32 %v1714_v4, %v1227_v59  ;;  %v2767_v8 = vld [vmem:[%s10064_s2 + $0x10] sm:$0xff] }
 0x366   : > { %v8223_v22 = vpop.f32.mrf.mxu1  ;;  %2793 = vperm.xlu0 %6527, %v2767_v8   ;;  %v6354_v59 = vld [vmem:[#allocation6 + $0x190] sm:$0xf0] }
 0x367   : > { %10258 = vst [vmem:[#allocation39_spill] sm:$0xff] %v8223_v22  ;;  %v5877_v11 = vor.u32 %v6354_v59, %v5876_v51  ;;  %v2770_v59 = vld [vmem:[%s10064_s2 + $0x28] sm:$0xff] }
 0x368   : > { %10259 = vst [vmem:[#allocation40_spill] sm:$0xff] %v8226_v13  ;;  %v1618_v28 = vpop.f32.mrf.mxu2 }
 0x369   : > { %v1668_v53 = vadd.f32 %v1667_v37, %v1618_v28  ;;  %v1183_v28 = vadd.f32 %v7891_v50, %v7889_v21 }
 0x36a   : > { %v1716_v1 = vpop.f32.mrf.mxu0 }
 0x36b   : > { %v1669_v15 = vpop.f32.mrf.mxu3  ;;  %v1717_v6 = vadd.f32 %v1716_v1, %v1668_v53  ;;  %v2766_v53 = vld [vmem:[%s10064_s2 + $0x8] sm:$0xff] }
 0x36d   : > { %v8244_v47 = vadd.f32 %v1717_v6, %v8057_v58  ;;  %2386 = vmatmul.bf16.gmra.mxu0 %v8228_v42  ;;  %v2771_v58 = vld [vmem:[%s10064_s2 + $0x30] sm:$0xff] }
 0x36e   : > { %v8241_v37 = vpop.f32.mrf.mxu1  ;;  %2813 = vperm.xlu2 %6526, %v2771_v58   ;;  %2788 = vperm.xlu0 %6527, %v2766_v53  }
 0x36f   : > { %10260 = vst [vmem:[#allocation41_spill] sm:$0xff] %v8244_v47 }
 0x370   : > { %2498 = vmatmul.bf16.vlgmr.msrb.gmra.mxu3 %v8070_v46  ;;  %v1620_v4 = vpop.f32.mrf.mxu2  ;;  %v2774_v46 = vld [vmem:[%s10064_s2 + $0x48] sm:$0xff] }
 0x371   : > { %2435 = vmatmul.bf16.gmra.mxu1 %v8230_v43  ;;  %v1670_v29 = vadd.f32 %v1669_v15, %v1620_v4  ;;  %v1232_v15 = vadd.f32 %v8065_v26, %v1183_v28  ;;  %2828 = vperm.xlu1 %6528, %v2774_v46   ;;  %v2769_v26 = vld [vmem:[%s10064_s2 + $0x20] sm:$0xff] }
 0x372   : > { %v1718_v7 = vpop.f32.mrf.mxu0 }
 0x373   : > { %v1828_v32 = vpop.f32.mrf.mxu3  ;;  %v1719_v1 = vadd.f32 %v1718_v7, %v1670_v29 }
 0x375   : > { %2449 = vmatmul.bf16.vlgmr.msrb.gmra.mxu2 %v5877_v11  ;;  %v8263_v21 = vadd.f32 %v1719_v1, %v1232_v15 }
 0x376   : > { %v8261_v60 = vpop.f32.mrf.mxu1  ;;  %2808 = vperm.xlu2 %6526, %v2770_v59  }
 0x377   : > { %10261 = vst [vmem:[#allocation42_spill] sm:$0xff] %v8261_v60 }
 0x378   : > { %10262 = vst [vmem:[#allocation22_spill] sm:$0xff] %v8263_v21  ;;  %v1779_v50 = vpop.f32.mrf.mxu2  ;;  %v6375_v21 = vld [vmem:[#allocation6 + $0x238] sm:$0xf0] }
 0x379   : > { %v1780_v8 = vadd.f32 %v1779_v50, %v8074_v2  ;;  %2803 = vperm.xlu1 %6528, %v2769_v26   ;;  %v5888_v2 = vld [vmem:[#allocation6 + $0x1a0] sm:$0xf] }
 0x37a   : > { %v2352_v51 = vpop.f32.mrf.mxu0  ;;  %v2765_v50 = vld [vmem:[%s10064_s2] sm:$0xff] }
 0x37b   : > { %v1830_v27 = vpop.f32.mrf.mxu3  ;;  %v1829_v6 = vadd.f32 %v1828_v32, %v1780_v8  ;;  %v6357_v32 = vld [vmem:[#allocation6 + $0x1a8] sm:$0xf0] }
 0x37c   : > { %v5889_v53 = vor.u32 %v6357_v32, %v5888_v2  ;;  %v5900_v2 = vld [vmem:[#allocation6 + $0x1b8] sm:$0xf]  ;;  %v6360_v32 = vld [vmem:[#allocation6 + $0x1c0] sm:$0xf0] }
 0x37d   : > { %v8275_v28 = vadd.f32 %v1829_v6, %v7913_v34  ;;  %2547 = vmatmul.bf16.vlgmr.msra.gmra.mxu0 %v8072_v38  ;;  %v2768_v34 = vld [vmem:[%s10064_s2 + $0x18] sm:$0xff] }
 0x37e   : > { %v2401_v4 = vpop.f32.mrf.mxu1  ;;  %2783 = vperm.xlu2 %6526, %v2765_v50  }
 0x37f   : > { %v8272_v29 = vadd.f32 %v2401_v4, %v2352_v51 }
 0x380   : > { %2503 = vmatmul.bf16.gmra.mxu3 %v8090_v23  ;;  %v1781_v7 = vpop.f32.mrf.mxu2 }
 0x381   : > { %2596 = vmatmul.bf16.vlgmr.msra.gmra.mxu1 %v5877_v11  ;;  %v1782_v58 = vadd.f32 %v1781_v7, %v8085_v14  ;;  %2798 = vperm.xlu1 %6528, %v2768_v34  }
 0x382   : > { %v2354_v1 = vpop.f32.mrf.mxu0 }
 0x383   : > { %v1833_v46 = vpop.f32.mrf.mxu3  ;;  %v1831_v15 = vadd.f32 %v1830_v27, %v1782_v58 }
 0x385   : > { %2454 = vmatmul.bf16.gmra.mxu2 %v5889_v53  ;;  %v8289_v23 = vadd.f32 %v1831_v15, %v7930_v31 }
 0x386   : > { %v2403_v38 = vpop.f32.mrf.mxu1 }
 0x387   : > { %v8286_v11 = vadd.f32 %v2403_v38, %v2354_v1 }
 0x388   : > { %v1784_v14 = vpop.f32.mrf.mxu2 }
 0x389   : > { %v1785_v8 = vadd.f32 %v1784_v14, %v8094_v62  ;;  %v5901_v62 = vor.u32 %v6360_v32, %v5900_v2 }
 0x38a   : > { %v2357_v51 = vpop.f32.mrf.mxu0 }
 0x38b   : > { %v1835_v27 = vpop.f32.mrf.mxu3  ;;  %v1834_v6 = vadd.f32 %v1833_v46, %v1785_v8 }
 0x38d   : > { %v8295_v4 = vadd.f32 %v1834_v6, %v7951_v3  ;;  %2552 = vmatmul.bf16.gmra.mxu0 %v8092_v41  ;;  %v10263_v3 = vld [vmem:[#allocation24_spill] sm:$0xff] }
 0x38e   : > { %v2406_v59 = vpop.f32.mrf.mxu1 }
 0x38f   : > { %v8292_v26 = vadd.f32 %v2406_v59, %v2357_v51  ;;  %v6363_v59 = vld [vmem:[#allocation6 + $0x1d8] sm:$0xf0] }
 0x390   : > { %2508 = vmatmul.bf16.gmra.mxu3 %v8110_v24  ;;  %v1786_v31 = vpop.f32.mrf.mxu2 }
 0x391   : > { %2601 = vmatmul.bf16.gmra.mxu1 %v5889_v53  ;;  %v1787_v7 = vadd.f32 %v1786_v31, %v8105_v18  ;;  %v10264_v18 = vld [vmem:[#allocation21_spill] sm:$0xff] }
 0x392   : > { %v2359_v15 = vpop.f32.mrf.mxu0 }
 0x393   : > { %v1838_v58 = vpop.f32.mrf.mxu3  ;;  %v1836_v46 = vadd.f32 %v1835_v27, %v1787_v7  ;;  %v5912_v27 = vld [vmem:[#allocation6 + $0x1d0] sm:$0xf] }
 0x395   : > { %2459 = vmatmul.bf16.gmra.mxu2 %v5901_v62  ;;  %v8303_v34 = vadd.f32 %v1836_v46, %v10263_v3 }
 0x396   : > { %v2408_v1 = vpop.f32.mrf.mxu1 }
 0x397   : > { %v8300_v50 = vadd.f32 %v2408_v1, %v2359_v15  ;;  %v10265_v1 = vld [vmem:[#allocation26_spill] sm:$0xff] }
 0x398   : > { %v1789_v41 = vpop.f32.mrf.mxu2 }
 0x399   : > { %v1790_v38 = vadd.f32 %v1789_v41, %v8114_v35  ;;  %v5913_v35 = vor.u32 %v6363_v59, %v5912_v27 }
 0x39a   : > { %v2362_v24 = vpop.f32.mrf.mxu0 }
 0x39b   : > { %v1840_v53 = vpop.f32.mrf.mxu3  ;;  %v1839_v14 = vadd.f32 %v1838_v58, %v1790_v38 }
 0x39d   : > { %v8309_v51 = vadd.f32 %v1839_v14, %v10264_v18  ;;  %2557 = vmatmul.bf16.gmra.mxu0 %v8112_v10  ;;  %v6366_v18 = vld [vmem:[#allocation6 + $0x1f0] sm:$0xf0] }
 0x39e   : > { %v2411_v8 = vpop.f32.mrf.mxu1 }
 0x39f   : > { %v8306_v6 = vadd.f32 %v2411_v8, %v2362_v24 }
 0x3a0   : > { %2513 = vmatmul.bf16.gmra.mxu3 %v8130_v44  ;;  %v1791_v2 = vpop.f32.mrf.mxu2 }
 0x3a1   : > { %2606 = vmatmul.bf16.gmra.mxu1 %v5901_v62  ;;  %v1792_v32 = vadd.f32 %v1791_v2, %v8125_v9  ;;  %v10266_v9 = vld [vmem:[#allocation25_spill] sm:$0xff] }
 0x3a2   : > { %v2364_v58 = vpop.f32.mrf.mxu0 }
 0x3a3   : > { %v1843_v31 = vpop.f32.mrf.mxu3  ;;  %v1841_v7 = vadd.f32 %v1840_v53, %v1792_v32  ;;  %v5924_v53 = vld [vmem:[#allocation6 + $0x1e8] sm:$0xf] }
 0x3a5   : > { %2464 = vmatmul.bf16.gmra.mxu2 %v5913_v35  ;;  %v8317_v3 = vadd.f32 %v1841_v7, %v10265_v1 }
 0x3a6   : > { %v2413_v46 = vpop.f32.mrf.mxu1 }
 0x3a7   : > { %v8314_v15 = vadd.f32 %v2413_v46, %v2364_v58  ;;  %v10267_v46 = vld [vmem:[#allocation28_spill] sm:$0xff] }
 0x3a8   : > { %v1794_v10 = vpop.f32.mrf.mxu2 }
 0x3a9   : > { %v1795_v41 = vadd.f32 %v1794_v10, %v8134_v30  ;;  %v5925_v30 = vor.u32 %v6366_v18, %v5924_v53 }
 0x3aa   : > { %v2367_v44 = vpop.f32.mrf.mxu0 }
 0x3ab   : > { %v1845_v62 = vpop.f32.mrf.mxu3  ;;  %v1844_v38 = vadd.f32 %v1843_v31, %v1795_v41 }
 0x3ad   : > { %v8323_v8 = vadd.f32 %v1844_v38, %v10266_v9  ;;  %2562 = vmatmul.bf16.gmra.mxu0 %v8132_v61  ;;  %v6369_v9 = vld [vmem:[#allocation6 + $0x208] sm:$0xf0] }
 0x3ae   : > { %v2416_v14 = vpop.f32.mrf.mxu1 }
 0x3af   : > { %v8320_v24 = vadd.f32 %v2416_v14, %v2367_v44  ;;  %v10268_v44 = vld [vmem:[#allocation31_spill] sm:$0xff]  ;;  %v5936_v14 = vld [vmem:[#allocation6 + $0x200] sm:$0xf] }
 0x3b0   : > { %2518 = vmatmul.bf16.gmra.mxu3 %v8150_v33  ;;  %v1796_v27 = vpop.f32.mrf.mxu2 }
 0x3b1   : > { %2611 = vmatmul.bf16.gmra.mxu1 %v5913_v35  ;;  %v1797_v59 = vadd.f32 %v1796_v27, %v8145_v17 }
 0x3b2   : > { %v2369_v31 = vpop.f32.mrf.mxu0 }
 0x3b3   : > { %v1848_v2 = vpop.f32.mrf.mxu3  ;;  %v1846_v32 = vadd.f32 %v1845_v62, %v1797_v59 }
 0x3b5   : > { %2469 = vmatmul.bf16.gmra.mxu2 %v5925_v30  ;;  %v8331_v1 = vadd.f32 %v1846_v32, %v10267_v46  ;;  %v8352_v46 = vpop.permute.xlu2 %2853 }
 0x3b6   : > { %v2418_v7 = vpop.f32.mrf.mxu1  ;;  %10270 = vst [vmem:[#allocation44_spill] sm:$0xff] %v8352_v46 }
 0x3b7   : > { %v8328_v58 = vadd.f32 %v2418_v7, %v2369_v31 }
 0x3b8   : > { %v1799_v61 = vpop.f32.mrf.mxu2 }
 0x3b9   : > { %v1800_v10 = vadd.f32 %v1799_v61, %v8154_v12  ;;  %v5937_v12 = vor.u32 %v6369_v9, %v5936_v14  ;;  %v10271_v61 = vld [vmem:[#allocation29_spill] sm:$0xff] }
 0x3ba   : > { %v2372_v41 = vpop.f32.mrf.mxu0 }
 0x3bb   : > { %v8334_v35 = vpop.f32.mrf.mxu3  ;;  %v1849_v33 = vadd.f32 %v1848_v2, %v1800_v10 }
 0x3bd   : > { %v8339_v62 = vadd.f32 %v1849_v33, %v10268_v44  ;;  %2567 = vmatmul.bf16.gmra.mxu0 %v8152_v63  ;;  %v5948_v33 = vld [vmem:[#allocation6 + $0x218] sm:$0xf] }
 0x3be   : > { %v2421_v38 = vpop.f32.mrf.mxu1 }
 0x3bf   : > { %v8336_v17 = vadd.f32 %v2421_v38, %v2372_v41  ;;  %v6372_v41 = vld [vmem:[#allocation6 + $0x220] sm:$0xf0] }
 0x3c0   : > { %2523 = vmatmul.bf16.gmra.mxu3 %v8170_v36  ;;  %v8343_v53 = vpop.f32.mrf.mxu2  ;;  %v5949_v38 = vor.u32 %v6372_v41, %v5948_v33  ;;  %v5960_v41 = vld [vmem:[#allocation6 + $0x230] sm:$0xf] }
 0x3c1   : > { %2616 = vmatmul.bf16.gmra.mxu1 %v5925_v30 }
 0x3c2   : > { %v8345_v27 = vpop.f32.mrf.mxu0 }
 0x3c3   : > { %v1853_v18 = vpop.f32.mrf.mxu3 }
 0x3c5   : > { %2474 = vmatmul.bf16.gmra.mxu2 %v5937_v12 }
 0x3c6   : > { %v8347_v59 = vpop.f32.mrf.mxu1 }
 0x3c8   : > { %v1804_v2 = vpop.f32.mrf.mxu2 }
 0x3c9   : > { %v1805_v32 = vadd.f32 %v1804_v2, %v8174_v52 }
 0x3ca   : > { %v2377_v7 = vpop.f32.mrf.mxu0 }
 0x3cb   : > { %v8350_v31 = vpop.f32.mrf.mxu3  ;;  %v1854_v63 = vadd.f32 %v1853_v18, %v1805_v32  ;;  %v8367_v18 = vpop.permute.xlu2 %2848 }
 0x3cc   : > { %10269 = vst [vmem:[#allocation43_spill] sm:$0xff] %v8350_v31 }
 0x3cd   : > { %v8357_v10 = vadd.f32 %v1854_v63, %v10271_v61  ;;  %2572 = vmatmul.bf16.gmra.mxu0 %v8172_v54  ;;  %10273 = vst [vmem:[#allocation23_spill] sm:$0xff] %v8367_v18  ;;  %v10277_v61 = vld [vmem:[#allocation32_spill] sm:$0xff] }
 0x3ce   : > { %v2426_v30 = vpop.f32.mrf.mxu1 }
 0x3cf   : > { %v8354_v36 = vadd.f32 %v2426_v30, %v2377_v7  ;;  %10272 = vst [vmem:[#allocation16_spill] sm:$0xff] %v8357_v10  ;;  %v8374_v30 = vpop.permute.xlu0 %2858 }
 0x3d0   : > { %2528 = vmatmul.bf16.gmra.mxu3 %v8193_v39  ;;  %v8361_v52 = vpop.f32.mrf.mxu2  ;;  %10276 = vst [vmem:[#allocation26_spill] sm:$0xff] %v8374_v30 }
 0x3d1   : > { %2621 = vmatmul.bf16.gmra.mxu1 %v5937_v12 }
 0x3d2   : > { %v8363_v14 = vpop.f32.mrf.mxu0 }
 0x3d3   : > { %v1858_v44 = vpop.f32.mrf.mxu3 }
 0x3d5   : > { %2479 = vmatmul.bf16.gmra.mxu2 %v5949_v38 }
 0x3d6   : > { %v8365_v9 = vpop.f32.mrf.mxu1 }
 0x3d8   : > { %v1809_v2 = vpop.f32.mrf.mxu2 }
 0x3d9   : > { %v1810_v32 = vadd.f32 %v1809_v2, %v8203_v0  ;;  %v8381_v0 = vpop.permute.xlu2 %2838 }
 0x3da   : > { %v2382_v12 = vpop.f32.mrf.mxu0  ;;  %10279 = vst [vmem:[#allocation28_spill] sm:$0xff] %v8381_v0 }
 0x3db   : > { %v8370_v54 = vpop.f32.mrf.mxu3  ;;  %v1859_v63 = vadd.f32 %v1858_v44, %v1810_v32  ;;  %v5961_v44 = vor.u32 %v6375_v21, %v5960_v41  ;;  %v8398_v21 = vpop.permute.xlu1 %2843  ;;  %v10286_v41 = vld [vmem:[#allocation30_spill] sm:$0xff] }
 0x3dc   : > { %10274 = vst [vmem:[#allocation24_spill] sm:$0xff] %v8370_v54 }
 0x3dd   : > { %v8377_v33 = vadd.f32 %v1859_v63, %v10277_v61  ;;  %2577 = vmatmul.bf16.gmra.mxu0 %v8195_v55  ;;  %v8389_v63 = vpop.permute.xlu0 %2823  ;;  %10285 = vst [vmem:[#allocation47_spill] sm:$0xff] %v8398_v21 }
 0x3de   : > { %v2431_v7 = vpop.f32.mrf.mxu1 }
 0x3df   : > { %v8372_v39 = vadd.f32 %v2431_v7, %v2382_v12  ;;  %10278 = vst [vmem:[#allocation25_spill] sm:$0xff] %v8377_v33 }
 0x3e0   : > { %2533 = vmatmul.bf16.gmra.mxu3 %v8228_v42  ;;  %v8383_v2 = vpop.f32.mrf.mxu2 }
 0x3e1   : > { %10275 = vst [vmem:[#allocation21_spill] sm:$0xff] %v8372_v39  ;;  %2626 = vmatmul.bf16.gmra.mxu1 %v5949_v38  ;;  %v8392_v30 = vpop.permute.xlu2 %2813 }
 0x3e2   : > { %10280 = vst [vmem:[#allocation31_spill] sm:$0xff] %v8383_v2  ;;  %v8385_v12 = vpop.f32.mrf.mxu0 }
 0x3e3   : > { %v1863_v32 = vpop.f32.mrf.mxu3  ;;  %10281 = vst [vmem:[#allocation29_spill] sm:$0xff] %v8385_v12 }
 0x3e5   : > { %2484 = vmatmul.bf16.gmra.mxu2 %v5961_v44 }
 0x3e6   : > { %v8387_v7 = vpop.f32.mrf.mxu1 }
 0x3e7   : > { %10282 = vst [vmem:[#allocation32_spill] sm:$0xff] %v8387_v7 }
 0x3e8   : > { %v1814_v61 = vpop.f32.mrf.mxu2 }
 0x3e9   : > { %v1815_v55 = vadd.f32 %v1814_v61, %v8241_v37  ;;  %v8406_v37 = vpop.permute.xlu0 %2818 }
 0x3ea   : > { %v2387_v46 = vpop.f32.mrf.mxu0 }
 0x3eb   : > { %v8394_v38 = vpop.f32.mrf.mxu3  ;;  %v1864_v42 = vadd.f32 %v1863_v32, %v1815_v55  ;;  %v8410_v32 = vpop.permute.xlu2 %2808 }
 0x3ec   : > { %10283 = vst [vmem:[#allocation45_spill] sm:$0xff] %v8394_v38  ;;  %v10292_v38 = vld [vmem:[#allocation33_spill] sm:$0xff] }
 0x3ed   : > { %v8401_v18 = vadd.f32 %v1864_v42, %v10286_v41  ;;  %2582 = vmatmul.bf16.gmra.mxu0 %v8230_v43 }
 0x3ee   : > { %v2436_v60 = vpop.f32.mrf.mxu1 }
 0x3ef   : > { %v8396_v47 = vadd.f32 %v2436_v60, %v2387_v46  ;;  %10287 = vst [vmem:[#allocation30_spill] sm:$0xff] %v8401_v18  ;;  %v8414_v60 = vpop.permute.xlu1 %2833 }
 0x3f0   : > { %v8404_v13 = vpop.f32.mrf.mxu2  ;;  %10291 = vst [vmem:[#allocation51_spill] sm:$0xff] %v8414_v60 }
 0x3f1   : > { %10284 = vst [vmem:[#allocation46_spill] sm:$0xff] %v8396_v47  ;;  %2631 = vmatmul.bf16.gmra.mxu1 %v5961_v44  ;;  %v2794_v18 = vpop.permute.xlu0 %2793 }
 0x3f2   : > { %10288 = vst [vmem:[#allocation48_spill] sm:$0xff] %v8404_v13  ;;  %v8408_v54 = vpop.f32.mrf.mxu0 }
 0x3f3   : > { %v2499_v61 = vpop.f32.mrf.mxu3  ;;  %10289 = vst [vmem:[#allocation49_spill] sm:$0xff] %v8408_v54  ;;  %v2784_v33 = vpop.permute.xlu2 %2783 }
 0x3f6   : > { %v8412_v55 = vpop.f32.mrf.mxu1 }
 0x3f7   : > { %10290 = vst [vmem:[#allocation50_spill] sm:$0xff] %v8412_v55  ;;  %v8420_v2 = vpop.permute.xlu1 %2828 }
 0x3f8   : > { %v2450_v46 = vpop.f32.mrf.mxu2 }
 0x3f9   : > { %v2451_v42 = vadd.f32 %v2450_v46, %v8272_v29  ;;  %v10293_v46 = vld [vmem:[#allocation35_spill] sm:$0xff] }
 0x3fa   : > { %v2548_v44 = vpop.f32.mrf.mxu0 }
 0x3fb   : > { %v2501_v41 = vpop.f32.mrf.mxu3  ;;  %v2669_v43 = vadd.f32 %v2451_v42, %v10292_v38  ;;  %v2549_v13 = vadd.f32 %v2548_v44, %v2499_v61  ;;  %v2789_v44 = vpop.permute.xlu0 %2788 }
 0x3fd   : > { %v2861_v7 = vadd.f32 %v2784_v33, %v2669_v43 }
 0x3fe   : > { %v2597_v47 = vpop.f32.mrf.mxu1 }
 0x3ff   : > { %v2598_v21 = vadd.f32 %v2597_v47, %v2549_v13  ;;  %v2893_v38 = vmax.f32 %v2861_v7, 0.0  ;;  %v2804_v60 = vpop.permute.xlu1 %2803 }
 0x400   : > { %v2452_v12 = vpop.f32.mrf.mxu2 }
 0x401   : > { %v2670_v54 = vadd.f32 %v2598_v21, %v8275_v28  ;;  %v2453_v55 = vadd.f32 %v2452_v12, %v8286_v11 }
 0x402   : > { %v2550_v29 = vpop.f32.mrf.mxu0 }
 0x403   : > { %v2862_v22 = vadd.f32 %v2784_v33, %v2670_v54  ;;  %v2504_v39 = vpop.f32.mrf.mxu3  ;;  %v2671_v0 = vadd.f32 %v2453_v55, %v10293_v46  ;;  %v2551_v25 = vadd.f32 %v2550_v29, %v2501_v41  ;;  %v10294_v54 = vld [vmem:[#allocation36_spill] sm:$0xff] }
 0x405   : > { %v2894_v42 = vmax.f32 %v2862_v22, 0.0  ;;  %v2863_v28 = vadd.f32 %v2789_v44, %v2671_v0 }
 0x406   : > { %v2599_v61 = vpop.f32.mrf.mxu1 }
 0x407   : > { %v2925_v31 = vpack.c.bf16 %v2894_v42, %v2893_v38  ;;  %v2600_v13 = vadd.f32 %v2599_v61, %v2551_v25  ;;  %v2895_v55 = vmax.f32 %v2863_v28, 0.0 }
 0x408   : > { %v2455_v21 = vpop.f32.mrf.mxu2 }
 0x409   : > { %v2672_v47 = vadd.f32 %v2600_v13, %v8289_v23  ;;  %v2456_v11 = vadd.f32 %v2455_v21, %v8292_v26  ;;  %v2957_v38 = vunpack.c.l.b16 %v2925_v31  ;;  %v2958_v25 = vunpack.c.h.b16 %v2925_v31 }
 0x40a   : > { %v2553_v10 = vpop.f32.mrf.mxu0 }
 0x40b   : > { %v2864_v12 = vadd.f32 %v2789_v44, %v2672_v47  ;;  %v2506_v43 = vpop.f32.mrf.mxu3  ;;  %v2673_v33 = vadd.f32 %v2456_v11, %v10294_v54  ;;  %v2554_v22 = vadd.f32 %v2553_v10, %v2504_v39 }
 0x40d   : > { %v2896_v7 = vmax.f32 %v2864_v12, 0.0  ;;  %v2865_v0 = vadd.f32 %v2794_v18, %v2673_v33 }
 0x40e   : > { %v2602_v41 = vpop.f32.mrf.mxu1 }
 0x40f   : > { %v2926_v29 = vpack.c.bf16 %v2896_v7, %v2895_v55  ;;  %v2603_v46 = vadd.f32 %v2602_v41, %v2554_v22  ;;  %v2897_v11 = vmax.f32 %v2865_v0, 0.0  ;;  %v2799_v55 = vpop.permute.xlu1 %2798 }
 0x410   : > { %v2457_v26 = vpop.f32.mrf.mxu2 }
 0x411   : > { %v2959_v42 = vunpack.c.l.b16 %v2926_v29  ;;  %v2960_v23 = vunpack.c.h.b16 %v2926_v29  ;;  %v2674_v61 = vadd.f32 %v2603_v46, %v8295_v4  ;;  %v2458_v44 = vadd.f32 %v2457_v26, %v8300_v50 }
 0x412   : > { %v2555_v10 = vpop.f32.mrf.mxu0 }
 0x413   : > { %v8428_v13 = vpack.c.b16 %v2959_v42, %v2957_v38  ;;  %v8430_v47 = vpack.c.b16 %v2960_v23, %v2958_v25  ;;  %v2866_v28 = vadd.f32 %v2794_v18, %v2674_v61  ;;  %v2509_v21 = vpop.f32.mrf.mxu3  ;;  %v2675_v39 = vadd.f32 %v2458_v44, %v8108_v45 }
 0x414   : > { %v2556_v31 = vadd.f32 %v2555_v10, %v2506_v43 }
 0x415   : > { %10295 = vst [vmem:[#allocation33_spill] sm:$0xff] %v8428_v13  ;;  %v2898_v12 = vmax.f32 %v2866_v28, 0.0  ;;  %v2867_v22 = vadd.f32 %v2799_v55, %v2675_v39 }
 0x416   : > { %10296 = vst [vmem:[#allocation35_spill] sm:$0xff] %v8430_v47  ;;  %v2604_v54 = vpop.f32.mrf.mxu1 }
 0x417   : > { %v2927_v33 = vpack.c.bf16 %v2898_v12, %v2897_v11  ;;  %v2605_v7 = vadd.f32 %v2604_v54, %v2556_v31  ;;  %v2899_v25 = vmax.f32 %v2867_v22, 0.0 }
 0x418   : > { %v2460_v50 = vpop.f32.mrf.mxu2 }
 0x419   : > { %v2676_v4 = vadd.f32 %v2605_v7, %v8303_v34  ;;  %v2461_v41 = vadd.f32 %v2460_v50, %v8306_v6  ;;  %v2961_v61 = vunpack.c.l.b16 %v2927_v33  ;;  %v2962_v26 = vunpack.c.h.b16 %v2927_v33 }
 0x41a   : > { %v2558_v38 = vpop.f32.mrf.mxu0 }
 0x41b   : > { %v2868_v29 = vadd.f32 %v2799_v55, %v2676_v4  ;;  %v2511_v46 = vpop.f32.mrf.mxu3  ;;  %v2677_v18 = vadd.f32 %v2461_v41, %v8117_v48  ;;  %v2559_v42 = vadd.f32 %v2558_v38, %v2509_v21 }
 0x41d   : > { %v2900_v45 = vmax.f32 %v2868_v29, 0.0  ;;  %v2869_v34 = vadd.f32 %v2804_v60, %v2677_v18 }
 0x41e   : > { %v2607_v23 = vpop.f32.mrf.mxu1 }
 0x41f   : > { %v2928_v43 = vpack.c.bf16 %v2900_v45, %v2899_v25  ;;  %v2608_v0 = vadd.f32 %v2607_v23, %v2559_v42  ;;  %v2901_v55 = vmax.f32 %v2869_v34, 0.0 }
 0x420   : > { %v2462_v39 = vpop.f32.mrf.mxu2 }
 0x421   : > { %v2963_v44 = vunpack.c.l.b16 %v2928_v43  ;;  %v2964_v28 = vunpack.c.h.b16 %v2928_v43  ;;  %v2678_v10 = vadd.f32 %v2608_v0, %v8309_v51  ;;  %v2463_v6 = vadd.f32 %v2462_v39, %v8314_v15 }
 0x422   : > { %v2560_v54 = vpop.f32.mrf.mxu0 }
 0x423   : > { %v8438_v11 = vpack.c.b16 %v2963_v44, %v2961_v61  ;;  %v8440_v48 = vpack.c.b16 %v2964_v28, %v2962_v26  ;;  %v2870_v12 = vadd.f32 %v2804_v60, %v2678_v10  ;;  %v2514_v31 = vpop.f32.mrf.mxu3  ;;  %v2679_v21 = vadd.f32 %v2463_v6, %v8128_v40 }
 0x424   : > { %v2561_v33 = vadd.f32 %v2560_v54, %v2511_v46 }
 0x425   : > { %10297 = vst [vmem:[#allocation36_spill] sm:$0xff] %v8438_v11  ;;  %v2902_v7 = vmax.f32 %v2870_v12, 0.0  ;;  %v2871_v51 = vadd.f32 %v8410_v32, %v2679_v21 }
 0x426   : > { %10298 = vst [vmem:[#allocation52_spill] sm:$0xff] %v8440_v48  ;;  %v2609_v4 = vpop.f32.mrf.mxu1 }
 0x427   : > { %v2929_v22 = vpack.c.bf16 %v2902_v7, %v2901_v55  ;;  %v2610_v50 = vadd.f32 %v2609_v4, %v2561_v33  ;;  %v2903_v25 = vmax.f32 %v2871_v51, 0.0 }
 0x428   : > { %v2465_v15 = vpop.f32.mrf.mxu2 }
 0x429   : > { %v2680_v41 = vadd.f32 %v2610_v50, %v8317_v3  ;;  %v2466_v29 = vadd.f32 %v2465_v15, %v8320_v24  ;;  %v2965_v0 = vunpack.c.l.b16 %v2929_v22  ;;  %v2966_v61 = vunpack.c.h.b16 %v2929_v22 }
 0x42a   : > { %v2563_v40 = vpop.f32.mrf.mxu0 }
 0x42b   : > { %v2872_v18 = vadd.f32 %v8410_v32, %v2680_v41  ;;  %v2516_v60 = vpop.f32.mrf.mxu3  ;;  %v2681_v38 = vadd.f32 %v2466_v29, %v8137_v57  ;;  %v2564_v42 = vadd.f32 %v2563_v40, %v2514_v31 }
 0x42d   : > { %v2904_v45 = vmax.f32 %v2872_v18, 0.0  ;;  %v2873_v3 = vadd.f32 %v8392_v30, %v2681_v38 }
 0x42e   : > { %v2612_v46 = vpop.f32.mrf.mxu1 }
 0x42f   : > { %v2930_v23 = vpack.c.bf16 %v2904_v45, %v2903_v25  ;;  %v2613_v43 = vadd.f32 %v2612_v46, %v2564_v42  ;;  %v2905_v31 = vmax.f32 %v2873_v3, 0.0 }
 0x430   : > { %v2467_v28 = vpop.f32.mrf.mxu2 }
 0x431   : > { %v2967_v26 = vunpack.c.l.b16 %v2930_v23  ;;  %v2968_v44 = vunpack.c.h.b16 %v2930_v23  ;;  %v2682_v24 = vadd.f32 %v2613_v43, %v8323_v8  ;;  %v2468_v32 = vadd.f32 %v2467_v28, %v8328_v58  ;;  %v10300_v28 = vld [vmem:[#allocation27_spill] sm:$0xff] }
 0x432   : > { %v2565_v12 = vpop.f32.mrf.mxu0 }
 0x433   : > { %v2874_v57 = vadd.f32 %v8392_v30, %v2682_v24  ;;  %v2519_v34 = vpop.f32.mrf.mxu3  ;;  %v8452_v10 = vpack.c.b16 %v2967_v26, %v2965_v0  ;;  %v8454_v39 = vpack.c.b16 %v2968_v44, %v2966_v61  ;;  %v2683_v6 = vadd.f32 %v2468_v32, %v8148_v5 }
 0x434   : > { %v2566_v54 = vadd.f32 %v2565_v12, %v2516_v60  ;;  %v1802_v60 = vadd.f32 %v8343_v53, %v8165_v19 }
 0x435   : > { %v2906_v21 = vmax.f32 %v2874_v57, 0.0  ;;  %3013 = vrot.lane.b32.xlu0 %v8452_v10, %s6729_s24  ;;  %v2875_v58 = vadd.f32 %v8406_v37, %v2683_v6 }
 0x436   : > { %v2614_v55 = vpop.f32.mrf.mxu1  ;;  %v1851_v43 = vadd.f32 %v8334_v35, %v1802_v60 }
 0x437   : > { %v2931_v8 = vpack.c.bf16 %v2906_v21, %v2905_v31  ;;  %v2615_v7 = vadd.f32 %v2614_v55, %v2566_v54  ;;  %v2907_v41 = vmax.f32 %v2875_v58, 0.0  ;;  %v1807_v58 = vadd.f32 %v8361_v52, %v8188_v56 }
 0x438   : > { %v2470_v33 = vpop.f32.mrf.mxu2  ;;  %v1919_v35 = vadd.f32 %v1851_v43, %v10300_v28  ;;  %v10307_v43 = vld [vmem:[#allocation28_spill] sm:$0xff] }
 0x439   : > { %v2684_v30 = vadd.f32 %v2615_v7, %v8331_v1  ;;  %v2471_v4 = vadd.f32 %v2470_v33, %v8336_v17  ;;  %v2424_v1 = vadd.f32 %v8347_v59, %v8345_v27  ;;  %v2969_v25 = vunpack.c.l.b16 %v2931_v8 }
 0x43a   : > { %v2568_v51 = vpop.f32.mrf.mxu0  ;;  %v2970_v17 = vunpack.c.h.b16 %v2931_v8 }
 0x43b   : > { %v2876_v22 = vadd.f32 %v8406_v37, %v2684_v30  ;;  %v2521_v5 = vpop.f32.mrf.mxu3  ;;  %v2685_v50 = vadd.f32 %v2471_v4, %v8157_v16  ;;  %v2569_v29 = vadd.f32 %v2568_v51, %v2519_v34  ;;  %v2429_v4 = vadd.f32 %v8365_v9, %v8363_v14  ;;  %v10302_v51 = vld [vmem:[#allocation16_spill] sm:$0xff] }
 0x43d   : > { %v2908_v15 = vmax.f32 %v2876_v22, 0.0  ;;  %v2877_v42 = vadd.f32 %v8389_v63, %v2685_v50  ;;  %v10301_v50 = vld [vmem:[#allocation51_spill] sm:$0xff] }
 0x43e   : > { %v2617_v18 = vpop.f32.mrf.mxu1 }
 0x43f   : > { %v2932_v38 = vpack.c.bf16 %v2908_v15, %v2907_v41  ;;  %v2618_v40 = vadd.f32 %v2617_v18, %v2569_v29  ;;  %v2909_v59 = vmax.f32 %v2877_v42, 0.0  ;;  %v10303_v18 = vld [vmem:[#allocation43_spill] sm:$0xff] }
 0x440   : > { %v2472_v46 = vpop.f32.mrf.mxu2  ;;  %v1856_v60 = vadd.f32 %v10303_v18, %v1807_v58 }
 0x441   : > { %v2971_v45 = vunpack.c.l.b16 %v2932_v38  ;;  %v2972_v37 = vunpack.c.h.b16 %v2932_v38  ;;  %v2686_v16 = vadd.f32 %v2618_v40, %v8339_v62  ;;  %v2473_v23 = vadd.f32 %v2472_v46, %v2424_v1  ;;  %v10305_v1 = vld [vmem:[#allocation37_spill] sm:$0xff] }
 0x442   : > { %v2570_v27 = vpop.f32.mrf.mxu0 }
 0x443   : > { %v2878_v0 = vadd.f32 %v8389_v63, %v2686_v16  ;;  %v2524_v19 = vpop.f32.mrf.mxu3  ;;  %v8472_v53 = vpack.c.b16 %v2971_v45, %v2969_v25  ;;  %v8474_v61 = vpack.c.b16 %v2972_v37, %v2970_v17  ;;  %v2687_v44 = vadd.f32 %v2473_v23, %v8168_v49  ;;  %v10306_v16 = vld [vmem:[#allocation15_spill] sm:$0xff] }
 0x444   : > { %v2571_v3 = vadd.f32 %v2570_v27, %v2521_v5  ;;  %v1923_v46 = vadd.f32 %v1856_v60, %v10306_v16 }
 0x445   : > { %10299 = vst [vmem:[#allocation53_spill] sm:$0xff] %v8474_v61  ;;  %v2910_v26 = vmax.f32 %v2878_v0, 0.0  ;;  %3017 = vrot.lane.b32.xlu2 %v8472_v53, %s6729_s24  ;;  %v2879_v63 = vadd.f32 %v8420_v2, %v2687_v44 }
 0x446   : > { %v2619_v24 = vpop.f32.mrf.mxu1 }
 0x447   : > { %v2933_v62 = vpack.c.bf16 %v2910_v26, %v2909_v59  ;;  %v2620_v32 = vadd.f32 %v2619_v24, %v2571_v3  ;;  %v2911_v54 = vmax.f32 %v2879_v63, 0.0  ;;  %v10308_v59 = vld [vmem:[#allocation21_spill] sm:$0xff]  ;;  %v10309_v3 = vld [vmem:[#allocation38_spill] sm:$0xff] }
 0x448   : > { %v2475_v34 = vpop.f32.mrf.mxu2 }
 0x449   : > { %v2688_v57 = vadd.f32 %v2620_v32, %v1919_v35  ;;  %v2476_v6 = vadd.f32 %v2475_v34, %v8354_v36  ;;  %v2973_v22 = vunpack.c.l.b16 %v2933_v62  ;;  %v2974_v36 = vunpack.c.h.b16 %v2933_v62  ;;  %v10311_v34 = vld [vmem:[#allocation31_spill] sm:$0xff] }
 0x44a   : > { %v2573_v21 = vpop.f32.mrf.mxu0 }
 0x44b   : > { %v2880_v12 = vadd.f32 %v8420_v2, %v2688_v57  ;;  %v2689_v31 = vadd.f32 %v2476_v6, %v8177_v20  ;;  %v2526_v49 = vpop.f32.mrf.mxu3  ;;  %v2574_v8 = vadd.f32 %v2573_v21, %v2524_v19  ;;  %v10310_v57 = vld [vmem:[#allocation39_spill] sm:$0xff]  ;;  %v10313_v21 = vld [vmem:[#allocation32_spill] sm:$0xff] }
 0x44c   : > { %v1812_v6 = vadd.f32 %v10311_v34, %v10310_v57  ;;  %v10325_v34 = vld [vmem:[#allocation49_spill] sm:$0xff] }
 0x44d   : > { %v2912_v55 = vmax.f32 %v2880_v12, 0.0  ;;  %v2881_v20 = vadd.f32 %v10301_v50, %v2689_v31 }
 0x44e   : > { %v2622_v7 = vpop.f32.mrf.mxu1 }
 0x44f   : > { %v2934_v30 = vpack.c.bf16 %v2912_v55, %v2911_v54  ;;  %v2623_v33 = vadd.f32 %v2622_v7, %v2574_v8  ;;  %v2913_v14 = vmax.f32 %v2881_v20, 0.0 }
 0x450   : > { %v2477_v15 = vpop.f32.mrf.mxu2 }
 0x451   : > { %v2975_v5 = vunpack.c.l.b16 %v2934_v30  ;;  %v2976_v2 = vunpack.c.h.b16 %v2934_v30  ;;  %v2690_v41 = vadd.f32 %v2623_v33, %v10302_v51  ;;  %v2478_v29 = vadd.f32 %v2477_v15, %v2429_v4  ;;  %v10314_v33 = vld [vmem:[#allocation47_spill] sm:$0xff] }
 0x452   : > { %v2575_v40 = vpop.f32.mrf.mxu0 }
 0x453   : > { %v2882_v38 = vadd.f32 %v10301_v50, %v2690_v41  ;;  %v8492_v56 = vpack.c.b16 %v2975_v5, %v2973_v22  ;;  %v8494_v52 = vpack.c.b16 %v2976_v2, %v2974_v36  ;;  %v2691_v25 = vadd.f32 %v2478_v29, %v10305_v1  ;;  %v2529_v37 = vpop.f32.mrf.mxu3  ;;  %v10315_v22 = vld [vmem:[#allocation25_spill] sm:$0xff]  ;;  %v10316_v50 = vld [vmem:[#allocation24_spill] sm:$0xff] }
 0x454   : > { %v2576_v17 = vadd.f32 %v2575_v40, %v2526_v49  ;;  %v10312_v49 = vld [vmem:[#allocation29_spill] sm:$0xff]  ;;  %v1861_v20 = vadd.f32 %v10316_v50, %v1812_v6  ;;  %v10326_v6 = vld [vmem:[#allocation50_spill] sm:$0xff] }
 0x455   : > { %10304 = vst [vmem:[#allocation27_spill] sm:$0xff] %v8494_v52  ;;  %v2914_v9 = vmax.f32 %v2882_v38, 0.0  ;;  %3021 = vrot.lane.b32.xlu1 %v8492_v56, %s6729_s24  ;;  %v2883_v0 = vadd.f32 %v10307_v43, %v2691_v25  ;;  %v2434_v54 = vadd.f32 %v10313_v21, %v10312_v49  ;;  %v10318_v38 = vld [vmem:[#allocation40_spill] sm:$0xff]  ;;  %v10319_v25 = vld [vmem:[#allocation18_spill] sm:$0xff] }
 0x456   : > { %v2624_v45 = vpop.f32.mrf.mxu1 }
 0x457   : > { %v2935_v42 = vpack.c.bf16 %v2914_v9, %v2913_v14  ;;  %v2625_v23 = vadd.f32 %v2624_v45, %v2576_v17  ;;  %v2915_v28 = vmax.f32 %v2883_v0, 0.0  ;;  %v1927_v17 = vadd.f32 %v1861_v20, %v10319_v25 }
 0x458   : > { %v2480_v27 = vpop.f32.mrf.mxu2 }
 0x459   : > { %v2692_v19 = vadd.f32 %v2625_v23, %v1923_v46  ;;  %v2481_v26 = vadd.f32 %v2480_v27, %v10308_v59  ;;  %v2977_v55 = vunpack.c.l.b16 %v2935_v42  ;;  %v2978_v8 = vunpack.c.h.b16 %v2935_v42  ;;  %v10322_v27 = vld [vmem:[#allocation41_spill] sm:$0xff] }
 0x45a   : > { %v2578_v62 = vpop.f32.mrf.mxu0 }
 0x45b   : > { %v2884_v44 = vadd.f32 %v10307_v43, %v2692_v19  ;;  %v2693_v24 = vadd.f32 %v2481_v26, %v10309_v3  ;;  %v2579_v32 = vadd.f32 %v2578_v62, %v2529_v37  ;;  %v2531_v7 = vpop.f32.mrf.mxu3  ;;  %v10320_v37 = vld [vmem:[#allocation23_spill] sm:$0xff]  ;;  %v10321_v43 = vld [vmem:[#allocation46_spill] sm:$0xff] }
 0x45d   : > { %v2916_v35 = vmax.f32 %v2884_v44, 0.0  ;;  %v2885_v4 = vadd.f32 %v10314_v33, %v2693_v24 }
 0x45e   : > { %v2627_v63 = vpop.f32.mrf.mxu1 }
 0x45f   : > { %v2936_v12 = vpack.c.bf16 %v2916_v35, %v2915_v28  ;;  %v2628_v31 = vadd.f32 %v2627_v63, %v2579_v32  ;;  %v2917_v18 = vmax.f32 %v2885_v4, 0.0  ;;  %v10323_v28 = vld [vmem:[#allocation42_spill] sm:$0xff]  ;;  %v10324_v35 = vld [vmem:[#allocation48_spill] sm:$0xff]  ;;  %v10329_v4 = vld [vmem:[#allocation45_spill] sm:$0xff] }
 0x460   : > { %v2482_v5 = vpop.f32.mrf.mxu2  ;;  %v1817_v32 = vadd.f32 %v10324_v35, %v10323_v28 }
 0x461   : > { %v2979_v58 = vunpack.c.l.b16 %v2936_v12  ;;  %v2980_v30 = vunpack.c.h.b16 %v2936_v12  ;;  %v2694_v36 = vadd.f32 %v2628_v31, %v10315_v22  ;;  %v2483_v2 = vadd.f32 %v2482_v5, %v2434_v54 }
 0x462   : > { %v2580_v29 = vpop.f32.mrf.mxu0  ;;  %v2439_v12 = vadd.f32 %v10326_v6, %v10325_v34  ;;  %v1866_v22 = vadd.f32 %v10329_v4, %v1817_v32 }
 0x463   : > { %v2886_v51 = vadd.f32 %v10314_v33, %v2694_v36  ;;  %v8512_v41 = vpack.c.b16 %v2979_v58, %v2977_v55  ;;  %v8514_v15 = vpack.c.b16 %v2980_v30, %v2978_v8  ;;  %v2695_v40 = vadd.f32 %v2483_v2, %v10318_v38  ;;  %v2534_v23 = vpop.f32.mrf.mxu3  ;;  %v10327_v55 = vld [vmem:[#allocation44_spill] sm:$0xff] }
 0x464   : > { %v2581_v14 = vadd.f32 %v2580_v29, %v2531_v7  ;;  %v10328_v7 = vld [vmem:[#allocation30_spill] sm:$0xff] }
 0x465   : > { %10317 = vst [vmem:[#allocation51_spill] sm:$0xff] %v8514_v15  ;;  %v2918_v60 = vmax.f32 %v2886_v51, 0.0  ;;  %3025 = vrot.lane.b32.xlu0 %v8512_v41, %s6729_s24  ;;  %v2887_v42 = vadd.f32 %v10320_v37, %v2695_v40 }
 0x466   : > { %v2629_v9 = vpop.f32.mrf.mxu1 }
 0x467   : > { %v2937_v1 = vpack.c.bf16 %v2918_v60, %v2917_v18  ;;  %v2630_v45 = vadd.f32 %v2629_v9, %v2581_v14  ;;  %v2919_v44 = vmax.f32 %v2887_v42, 0.0  ;;  %v10331_v18 = vld [vmem:[#allocation22_spill] sm:$0xff] }
 0x468   : > { %v2485_v46 = vpop.f32.mrf.mxu2  ;;  %v10332_v9 = vld [vmem:[#allocation34_spill] sm:$0xff] }
 0x469   : > { %v2696_v16 = vadd.f32 %v2630_v45, %v1927_v17  ;;  %v2486_v0 = vadd.f32 %v2485_v46, %v10321_v43  ;;  %v2981_v31 = vunpack.c.l.b16 %v2937_v1  ;;  %v2982_v49 = vunpack.c.h.b16 %v2937_v1  ;;  %v10333_v17 = vld [vmem:[#allocation26_spill] sm:$0xff] }
 0x46a   : > { %v2583_v26 = vpop.f32.mrf.mxu0  ;;  %v1931_v1 = vadd.f32 %v1866_v22, %v10332_v9 }
 0x46b   : > { %v2888_v19 = vadd.f32 %v10320_v37, %v2696_v16  ;;  %v2697_v59 = vadd.f32 %v2486_v0, %v10322_v27  ;;  %v2584_v24 = vadd.f32 %v2583_v26, %v2534_v23  ;;  %v2536_v50 = vpop.f32.mrf.mxu3 }
 0x46d   : > { %v2920_v3 = vmax.f32 %v2888_v19, 0.0  ;;  %v2889_v8 = vadd.f32 %v10327_v55, %v2697_v59 }
 0x46e   : > { %v2632_v62 = vpop.f32.mrf.mxu1 }
 0x46f   : > { %v2938_v63 = vpack.c.bf16 %v2920_v3, %v2919_v44  ;;  %v2633_v57 = vadd.f32 %v2632_v62, %v2584_v24  ;;  %v2921_v51 = vmax.f32 %v2889_v8, 0.0 }
 0x470   : > { %v2487_v30 = vpop.f32.mrf.mxu2 }
 0x471   : > { %v2983_v21 = vunpack.c.l.b16 %v2938_v63  ;;  %v2984_v54 = vunpack.c.h.b16 %v2938_v63  ;;  %v2698_v58 = vadd.f32 %v2633_v57, %v10328_v7  ;;  %v2488_v33 = vadd.f32 %v2487_v30, %v2439_v12 }
 0x472   : > { %v2585_v20 = vpop.f32.mrf.mxu0 }
 0x473   : > { %v2890_v36 = vadd.f32 %v10327_v55, %v2698_v58  ;;  %v8532_v5 = vpack.c.b16 %v2983_v21, %v2981_v31  ;;  %v8534_v2 = vpack.c.b16 %v2984_v54, %v2982_v49  ;;  %v2699_v60 = vadd.f32 %v2488_v33, %v10331_v18 }
 0x474   : > { %v2586_v38 = vadd.f32 %v2585_v20, %v2536_v50 }
 0x475   : > { %10330 = vst [vmem:[#allocation16_spill] sm:$0xff] %v8534_v2  ;;  %v2922_v29 = vmax.f32 %v2890_v36, 0.0  ;;  %3029 = vrot.lane.b32.xlu2 %v8532_v5, %s6729_s24  ;;  %3285 = vrot.lane.b32.xlu0 %v8532_v5, %s6730_s29  ;;  %v2891_v45 = vadd.f32 %v10333_v17, %v2699_v60 }
 0x476   : > { %v2634_v40 = vpop.f32.mrf.mxu1 }
 0x477   : > { %v2939_v14 = vpack.c.bf16 %v2922_v29, %v2921_v51  ;;  %v2635_v25 = vadd.f32 %v2634_v40, %v2586_v38  ;;  %v2923_v16 = vmax.f32 %v2891_v45, 0.0 }
 0x479   : > { %v2700_v37 = vadd.f32 %v2635_v25, %v1931_v1  ;;  %v2985_v43 = vunpack.c.l.b16 %v2939_v14  ;;  %v2986_v0 = vunpack.c.h.b16 %v2939_v14 }
 0x47b   : > { %v2892_v42 = vadd.f32 %v10333_v17, %v2700_v37  ;;  %v6385_v37 = vld [vmem:[#allocation8 + $0x4c] sm:$0xf] }
 0x47d   : > { %v2924_v46 = vmax.f32 %v2892_v42, 0.0  ;;  %3005 = vrot.lane.b32.xlu2 %v8428_v13, %s6729_s24  ;;  %3273 = vrot.lane.b32.xlu0 %v8472_v53, %s6730_s29 }
 0x47f   : > { %v2940_v23 = vpack.c.bf16 %v2924_v46, %v2923_v16 }
 0x481   : > { %v2987_v19 = vunpack.c.l.b16 %v2940_v23  ;;  %v2988_v27 = vunpack.c.h.b16 %v2940_v23 }
 0x483   : > { %v8548_v59 = vpack.c.b16 %v2987_v19, %v2985_v43  ;;  %v8550_v26 = vpack.c.b16 %v2988_v27, %v2986_v0 }
 0x485   : > { %10334 = vst [vmem:[#allocation43_spill] sm:$0xff] %v8550_v26  ;;  %3281 = vrot.lane.b32.xlu2 %v8512_v41, %s6730_s29  ;;  %3033 = vrot.lane.b32.xlu1 %v8548_v59, %s6729_s24 }
 0x48d   : > { %3269 = vrot.lane.b32.xlu2 %v8452_v10, %s6730_s29  ;;  %3009 = vrot.lane.b32.xlu1 %v8438_v11, %s6729_s24 }
 0x495   : > { %3277 = vrot.lane.b32.xlu1 %v8492_v56, %s6730_s29 }
 0x49d   : > { %3289 = vrot.lane.b32.xlu1 %v8548_v59, %s6730_s29 }
 0x49f   : > { %v8564_v44 = vpop.permute.xlu2 %3017 }
 0x4a0   : > { %v3063_v3 = vsel %vm452_vm5, 0, %v8564_v44 }
 0x4a1   : > { %v8570_v62 = vsel %vm7039_vm6, %v3063_v3, 0 }
 0x4a2   : > { %3241 = vrot.lane.b32.xlu2 %v8570_v62, %s6730_s29 }
 0x4a7   : > { %v8574_v28 = vpop.permute.xlu0 %3013 }
 0x4a8   : > { %v3060_v35 = vsel %vm452_vm5, 0, %v8574_v28 }
 0x4a9   : > { %v8580_v32 = vsel %vm7039_vm6, %v3060_v35, 0 }
 0x4aa   : > { %3237 = vrot.lane.b32.xlu1 %v8580_v32, %s6730_s29 }
 0x4c7   : > { %v8584_v63 = vpop.permute.xlu1 %3021 }
 0x4c8   : > { %v3066_v57 = vsel %vm452_vm5, 0, %v8584_v63 }
 0x4c9   : > { %v8590_v34 = vsel %vm7039_vm6, %v3066_v57, 0 }
 0x4ca   : > { %3245 = vrot.lane.b32.xlu0 %v8590_v34, %s6730_s29 }
 0x4cf   : > { %v8594_v6 = vpop.permute.xlu2 %3029 }
 0x4d0   : > { %v3072_v12 = vsel %vm452_vm5, 0, %v8594_v6 }
 0x4d1   : > { %v8600_v31 = vsel %vm7039_vm6, %v3072_v12, 0 }
 0x4d2   : > { %3253 = vrot.lane.b32.xlu2 %v8600_v31, %s6730_s29 }
 0x4d7   : > { %v8604_v49 = vpop.permute.xlu2 %3005  ;;  %v8606_v21 = vpop.permute.xlu0 %3025 }
 0x4d8   : > { %v3054_v54 = vsel %vm452_vm5, 0, %v8604_v49  ;;  %v3069_v55 = vsel %vm452_vm5, 0, %v8606_v21 }
 0x4d9   : > { %v8614_v8 = vsel %vm7039_vm6, %v3054_v54, 0  ;;  %v8618_v7 = vsel %vm7039_vm6, %v3069_v55, 0 }
 0x4da   : > { %3229 = vrot.lane.b32.xlu2 %v8614_v8, %s6730_s29  ;;  %3249 = vrot.lane.b32.xlu1 %v8618_v7, %s6730_s29 }
 0x4df   : > { %v8677_v29 = vpop.permute.xlu2 %3281 }
 0x4e2   : > { %3123 = vrot.lane.b32.xlu2 %v8550_v26, %s6731_s9  ;;  %3265 = vrot.lane.b32.xlu1 %v8438_v11, %s6730_s29 }
 0x4e7   : > { %v8683_v18 = vpop.permute.xlu0 %3285  ;;  %v8699_v60 = vpop.permute.xlu2 %3269 }
 0x4ea   : > { %3119 = vrot.lane.b32.xlu2 %v8534_v2, %s6731_s9  ;;  %3121 = vrot.lane.b32.xlu1 %v8548_v59, %s6731_s9 }
 0x4ef   : > { %v8704_v38 = vpop.permute.xlu0 %3273 }
 0x4f2   : > { %3115 = vrot.lane.b32.xlu2 %v8514_v15, %s6731_s9  ;;  %3117 = vrot.lane.b32.xlu1 %v8532_v5, %s6731_s9 }
 0x4f7   : > { %v8636_v58 = vpop.permute.xlu1 %3033 }
 0x4f8   : > { %v3075_v30 = vsel %vm452_vm5, 0, %v8636_v58 }
 0x4f9   : > { %v8642_v33 = vsel %vm7039_vm6, %v3075_v30, 0 }
 0x4fa   : > { %3111 = vrot.lane.b32.xlu2 %v8494_v52, %s6731_s9  ;;  %3113 = vrot.lane.b32.xlu1 %v8512_v41, %s6731_s9 }
 0x4fb   : > { %3257 = vrot.lane.b32.xlu0 %v8642_v33, %s6730_s29 }
 0x4fc   : > { %v8715_v40 = vpop.permute.xlu2 %3241 }
 0x4fd   : > { %10338 = vst [vmem:[#allocation15_spill] sm:$0xff] %v8715_v40 }
 0x4ff   : > { %v8650_v4 = vpop.permute.xlu1 %3009 }
 0x500   : > { %v3057_v22 = vsel %vm452_vm5, 0, %v8650_v4 }
 0x501   : > { %v8656_v36 = vsel %vm7039_vm6, %v3057_v22, 0 }
 0x502   : > { %10336 = vst [vmem:[#allocation37_spill] sm:$0xff] %v8656_v36  ;;  %3107 = vrot.lane.b32.xlu2 %v8474_v61, %s6731_s9  ;;  %3109 = vrot.lane.b32.xlu1 %v8492_v56, %s6731_s9 }
 0x503   : > { %3233 = vrot.lane.b32.xlu0 %v8656_v36, %s6730_s29 }
 0x507   : > { %v8664_v50 = vpop.permute.xlu1 %3277 }
 0x50a   : > { %3103 = vrot.lane.b32.xlu2 %v8454_v39, %s6731_s9  ;;  %3105 = vrot.lane.b32.xlu1 %v8472_v53, %s6731_s9 }
 0x50b   : > { %3261 = vrot.lane.b32.xlu0 %v8428_v13, %s6730_s29 }
 0x50f   : > { %v8672_v20 = vpop.permute.xlu1 %3289 }
 0x510   : > { %6075 = vmatpush.bf16.msk.msra.mxu3 %vm7162_vm8, %v8672_v20 }
 0x512   : > { %3099 = vrot.lane.b32.xlu2 %v8440_v48, %s6731_s9  ;;  %3101 = vrot.lane.b32.xlu1 %v8452_v10, %s6731_s9 }
 0x513   : > { %3035 = vrot.lane.b32.xlu0 %v8550_v26, %s6729_s24 }
 0x514   : > { %6077 = vmatpush.bf16.msk.msra.mxu3 %vm7162_vm8, %v8683_v18 }
 0x518   : > { %6079 = vmatpush.bf16.msk.msra.mxu3 %vm7162_vm8, %v8677_v29 }
 0x51a   : > { %3095 = vrot.lane.b32.xlu2 %v8430_v47, %s6731_s9  ;;  %3097 = vrot.lane.b32.xlu1 %v8438_v11, %s6731_s9 }
 0x51b   : > { %3031 = vrot.lane.b32.xlu0 %v8534_v2, %s6729_s24 }
 0x51c   : > { %6081 = vmatpush.bf16.msk.msra.mxu3 %vm7162_vm8, %v8664_v50  ;;  %v8738_v25 = vpop.permute.xlu1 %3237 }
 0x51d   : > { %10340 = vst [vmem:[#allocation21_spill] sm:$0xff] %v8738_v25 }
 0x520   : > { %6083 = vmatpush.bf16.msk.msra.mxu3 %vm7162_vm8, %v8704_v38 }
 0x522   : > { %3283 = vrot.lane.b32.xlu2 %v8514_v15, %s6730_s29  ;;  %3093 = vrot.lane.b32.xlu1 %v8428_v13, %s6731_s9  ;;  %v5966_v13 = vld [vmem:[#allocation8 + $0xc] sm:$0xf0]  ;;  %s5520_s9 = sshll.u32 %s5517_s30, 4  ;;  %s5521_s9 = int_to_ptr.hbm [resolvable:$true] %s5520_s9 }
 0x523   : > { %3027 = vrot.lane.b32.xlu0 %v8514_v15, %s6729_s24  ;;  %s6665_s6 = sshra.s32 %s5521_s9, 4  ;;  %s6666_s6 = int_to_ptr.hbm [resolvable:$true] %s6665_s6 }
 0x524   : > { %6085 = vmatpush.bf16.msk.msra.mxu3 %vm7162_vm8, %v8699_v60  ;;  %s6667_s26 = scalar_lea.hbm %s6666_s6, 256  ;;  %p6672_p11 = scmp.lt.s32.totalorder %s6666_s6, %s10067_s5 }
 0x525   : > { %p6668_p1 = scmp.ne.s32.totalorder %s6666_s6, %s6667_s26 }
 0x527   : > { %p6669_p4 = pnand %p6668_p1, %p6831_p3 }
 0x529   : > { %p6670_p8 = pneg %p6669_p4 }
 0x52a   : > { %3291 = vrot.lane.b32.xlu1 %v8550_v26, %s6730_s29 }
 0x52b   : > { %3023 = vrot.lane.b32.xlu0 %v8494_v52, %s6729_s24 }
 0x52c   : > { %v8724_v14 = vpop.permute.xlu2 %3253 }
 0x532   : > { %3287 = vrot.lane.b32.xlu1 %v8534_v2, %s6730_s29 }
 0x533   : > { %3019 = vrot.lane.b32.xlu0 %v8474_v61, %s6729_s24 }
 0x534   : > { %v8730_v9 = vpop.permute.xlu2 %3229 }
 0x535   : > { %10339 = vst [vmem:[#allocation28_spill] sm:$0xff] %v8730_v9 }
 0x53b   : > { %3015 = vrot.lane.b32.xlu0 %v8454_v39, %s6729_s24 }
 0x53c   : > { %v8734_v1 = vpop.permute.xlu2 %3123  ;;  %v8767_v24 = vpop.permute.xlu0 %3245 }
 0x53d   : > { %10346 = vst [vmem:[#allocation32_spill] sm:$0xff] %v8767_v24 }
 0x543   : > { %3011 = vrot.lane.b32.xlu0 %v8440_v48, %s6729_s24 }
 0x544   : > { %v3120_v17 = vpop.permute.xlu2 %3119 }
 0x545   : > { %v3160_v45 = vsel %vm573_vm3, %v3120_v17, 0 }
 0x546   : > { %v8743_v42 = vsel %vm7271_vm4, %v3160_v45, 0 }
 0x547   : > { %10342 = vst [vmem:[#allocation38_spill] sm:$0xff] %v8743_v42  ;;  %3319 = vrot.lane.b32.xlu1 %v8743_v42, %s6730_s29 }
 0x54b   : > { %3007 = vrot.lane.b32.xlu0 %v8430_v47, %s6729_s24  ;;  %s5518_s24 = sshll.u32 %s9918_s12, 4  ;;  %s5519_s24 = int_to_ptr.vmem [resolvable:$true] %s5518_s24 }
 0x54c   : > { %v3116_v16 = vpop.permute.xlu2 %3115  ;;  %v8749_v46 = vpop.permute.xlu1 %3249 }
 0x54d   : > { %10343 = vst [vmem:[#allocation39_spill] sm:$0xff] %v8749_v46  ;;  %v3157_v23 = vsel %vm573_vm3, %v3116_v16, 0 }
 0x54e   : > { %v8754_v43 = vsel %vm7271_vm4, %v3157_v23, 0 }
 0x54f   : > { %10344 = vst [vmem:[#allocation31_spill] sm:$0xff] %v8754_v43  ;;  %3315 = vrot.lane.b32.xlu2 %v8754_v43, %s6730_s29 }
 0x554   : > { %v8758_v0 = vpop.permute.xlu1 %3265 }
 0x555   : > { %10345 = vst [vmem:[#allocation29_spill] sm:$0xff] %v8758_v0  ;;  %6087 = vmatpush.bf16.msk.msra.mxu3 %vm7162_vm8, %v8758_v0 }
 0x55c   : > { %v3122_v19 = vpop.permute.xlu1 %3121 }
 0x55d   : > { %v8765_v27 = vsel %vm573_vm3, %v3122_v19, %v8734_v1 }
 0x564   : > { %v3118_v3 = vpop.permute.xlu1 %3117 }
 0x565   : > { %v3131_v35 = vsel %vm573_vm3, %v3118_v3, %v3120_v17  ;;  %v3112_v17 = vpop.permute.xlu2 %3111 }
 0x566   : > { %v8772_v12 = vsel %vm7275_vm9, %v3131_v35, 0  ;;  %v3154_v11 = vsel %vm573_vm3, %v3112_v17, 0 }
 0x567   : > { %10348 = vst [vmem:[#allocation47_spill] sm:$0xff] %v8772_v12  ;;  %3317 = vrot.lane.b32.xlu0 %v8772_v12, %s6730_s29 }
 0x56c   : > { %v3114_v54 = vpop.permute.xlu1 %3113 }
 0x56d   : > { %v8776_v55 = vpop.permute.xlu0 %3257  ;;  %v3130_v30 = vsel %vm573_vm3, %v3114_v54, %v3116_v16  ;;  %v3108_v54 = vpop.permute.xlu2 %3107 }
 0x56e   : > { %v8781_v22 = vsel %vm7275_vm9, %v3130_v30, 0  ;;  %6059 = vmatpush.bf16.msk.msra.mxu2 %vm7162_vm8, %v8776_v55 }
 0x56f   : > { %10349 = vst [vmem:[#allocation25_spill] sm:$0xff] %v8781_v22  ;;  %3313 = vrot.lane.b32.xlu1 %v8781_v22, %s6730_s29 }
 0x572   : > { %6061 = vmatpush.bf16.msk.msra.mxu2 %vm7162_vm8, %v8724_v14 }
 0x574   : > { %v3110_v45 = vpop.permute.xlu1 %3109 }
 0x575   : > { %v8791_v23 = vpop.permute.xlu0 %3233  ;;  %v3129_v16 = vsel %vm573_vm3, %v3110_v45, %v3112_v17  ;;  %v8866_v17 = vsel %vm7271_vm4, %v3154_v11, 0 }
 0x576   : > { %10350 = vst [vmem:[#allocation24_spill] sm:$0xff] %v8791_v23  ;;  %v8796_v19 = vsel %vm7275_vm9, %v3129_v16, 0  ;;  %6063 = vmatpush.bf16.msk.msra.mxu2 %vm7162_vm8, %v8749_v46  ;;  %v8822_v16 = vpop.permute.xlu2 %3103 }
 0x577   : > { %10351 = vst [vmem:[#allocation40_spill] sm:$0xff] %v8796_v19  ;;  %3309 = vrot.lane.b32.xlu2 %v8796_v19, %s6730_s29 }
 0x57a   : > { %6065 = vmatpush.bf16.msk.msra.mxu2 %vm7162_vm8, %v8767_v24 }
 0x57c   : > { %v3106_v3 = vpop.permute.xlu1 %3105 }
 0x57d   : > { %v8806_v35 = vpop.permute.xlu0 %3261 }
 0x57e   : > { %10352 = vst [vmem:[#allocation18_spill] sm:$0xff] %v8806_v35  ;;  %6067 = vmatpush.bf16.msk.msra.mxu2 %vm7162_vm8, %v8715_v40  ;;  %6089 = vmatpush.bf16.msk.msra.mxu3 %vm7162_vm8, %v8806_v35  ;;  %v8837_v0 = vpop.permute.xlu2 %3099  ;;  %v6376_v40 = vld [vmem:[#allocation8 + $0x4] sm:$0xf]  ;;  %v6024_v35 = vld [vmem:[#allocation8 + $0x78] sm:$0xf] }
 0x582   : > { %6069 = vmatpush.bf16.msk.msra.mxu2 %vm7162_vm8, %v8738_v25 }
 0x584   : > { %v3102_v30 = vpop.permute.xlu1 %3101 }
 0x585   : > { %v8817_v45 = vpop.permute.xlu0 %3035 }
 0x586   : > { %6071 = vmatpush.bf16.msk.msra.mxu2 %vm7162_vm8, %v8791_v23  ;;  %v8854_v24 = vpop.permute.xlu2 %3095 }
 0x58a   : > { %6073 = vmatpush.bf16.msk.msra.mxu2 %vm7162_vm8, %v8730_v9 }
 0x58c   : > { %v8827_v22 = vpop.permute.xlu1 %3097 }
 0x58d   : > { %v3032_v12 = vpop.permute.xlu0 %3031 }
 0x58e   : > { %v3043_v43 = vsel %vm452_vm5, %v8594_v6, %v3032_v12  ;;  %v5964_v6 = vld [vmem:[#allocation8] sm:$0xf] }
 0x58f   : > { %v8833_v19 = vsel %vm7232_vm11, %v3043_v43, 0  ;;  %v6377_v43 = vld [vmem:[#allocation8 + $0x8] sm:$0xf0] }
 0x590   : > { %3255 = vrot.lane.b32.xlu0 %v8833_v19, %s6730_s29  ;;  %v8851_v12 = vor.u32 %v6377_v43, %v5964_v6 }
 0x592   : > { %3613 = vmatmul.bf16.vlgmr.msra.gmra.mxu2 %v8851_v12 }
 0x594   : > { %v8839_v23 = vpop.permute.xlu1 %3093 }
 0x595   : > { %v3028_v42 = vpop.permute.xlu0 %3027 }
 0x596   : > { %v3042_v9 = vsel %vm452_vm5, %v8606_v21, %v3028_v42 }
 0x597   : > { %v8845_v25 = vsel %vm7232_vm11, %v3042_v9, 0  ;;  %v8857_v9 = vor.u32 %v6376_v40, %v5966_v13  ;;  %v3151_v13 = vsel %vm573_vm3, %v3108_v54, 0  ;;  %v3284_v40 = vpop.permute.xlu2 %3283 }
 0x598   : > { %3279 = vrot.lane.b32.xlu0 %v8494_v52, %s6730_s29  ;;  %3251 = vrot.lane.b32.xlu1 %v8845_v25, %s6730_s29 }
 0x599   : > { %3662 = vmatmul.bf16.vlgmr.msra.gmra.mxu3 %v8857_v9 }
 0x59c   : > { %v3292_v21 = vpop.permute.xlu1 %3291 }
 0x59d   : > { %v3024_v42 = vpop.permute.xlu0 %3023  ;;  %v3340_v46 = vsel %vm805_vm7, %v8672_v20, %v3292_v21 }
 0x59e   : > { %v3041_v36 = vsel %vm452_vm5, %v8584_v63, %v3024_v42  ;;  %3801 = vmatpush.bf16.msrb.mxu2 %v3340_v46  ;;  %v3128_v63 = vsel %vm573_vm3, %v3106_v3, %v3108_v54  ;;  %v5976_v3 = vld [vmem:[#allocation8 + $0x18] sm:$0xf]  ;;  %v6380_v54 = vld [vmem:[#allocation8 + $0x20] sm:$0xf0]  ;;  %v6379_v42 = vld [vmem:[#allocation8 + $0x1c] sm:$0xf] }
 0x59f   : > { %v8870_v6 = vsel %vm7232_vm11, %v3041_v36, 0  ;;  %v8884_v36 = vsel %vm7271_vm4, %v3151_v13, 0  ;;  %v8888_v46 = vsel %vm7275_vm9, %v3128_v63, 0  ;;  %v8898_v21 = vor.u32 %v6380_v54, %v5976_v3  ;;  %v5978_v13 = vld [vmem:[#allocation8 + $0x24] sm:$0xf0] }
 0x5a0   : > { %3311 = vrot.lane.b32.xlu0 %v8866_v17, %s6730_s29  ;;  %3275 = vrot.lane.b32.xlu1 %v8474_v61, %s6730_s29  ;;  %v3163_v63 = vsel %vm573_vm3, %v8734_v1, 0  ;;  %v8919_v1 = vsel %vm7275_vm9, %v8765_v27, 0  ;;  %v3044_v27 = vsel %vm452_vm5, %v8636_v58, %v8817_v45  ;;  %v6382_v45 = vld [vmem:[#allocation8 + $0x34] sm:$0xf] }
 0x5a1   : > { %3247 = vrot.lane.b32.xlu2 %v8870_v6, %s6730_s29 }
 0x5a2   : > { %3618 = vmatmul.bf16.gmra.mxu2 %v8898_v21 }
 0x5a4   : > { %v3288_v20 = vpop.permute.xlu1 %3287 }
 0x5a5   : > { %v3339_v11 = vsel %vm805_vm7, %v8683_v18, %v3288_v20  ;;  %v3020_v43 = vpop.permute.xlu0 %3019  ;;  %v3338_v18 = vsel %vm805_vm7, %v8677_v29, %v3284_v40  ;;  %v3127_v20 = vsel %vm573_vm3, %v3102_v30, %v8822_v16  ;;  %v8910_v29 = vsel %vm7271_vm4, %v3163_v63, 0 }
 0x5a6   : > { %3802 = vmatpush.bf16.msrb.mxu2 %v3339_v11  ;;  %v8905_v11 = vor.u32 %v6379_v42, %v5978_v13  ;;  %v8914_v40 = vsel %vm7275_vm9, %v3127_v20, 0  ;;  %v8944_v13 = vsel %vm7232_vm11, %v3044_v27, 0  ;;  %v3148_v20 = vsel %vm573_vm3, %v8822_v16, 0 }
 0x5a7   : > { %v3142_v16 = vsel %vm573_vm3, %v8854_v24, 0 }
 0x5a8   : > { %3307 = vrot.lane.b32.xlu1 %v8884_v36, %s6730_s29  ;;  %3305 = vrot.lane.b32.xlu0 %v8888_v46, %s6730_s29 }
 0x5a9   : > { %3271 = vrot.lane.b32.xlu2 %v8454_v39, %s6730_s29  ;;  %3667 = vmatmul.bf16.gmra.mxu3 %v8905_v11 }
 0x5aa   : > { %3803 = vmatpush.bf16.msrb.mxu2 %v3338_v18  ;;  %v3040_v18 = vsel %vm452_vm5, %v8564_v44, %v3020_v43  ;;  %v5988_v44 = vld [vmem:[#allocation8 + $0x30] sm:$0xf]  ;;  %v5990_v43 = vld [vmem:[#allocation8 + $0x3c] sm:$0xf0] }
 0x5ab   : > { %v8936_v54 = vsel %vm7232_vm11, %v3040_v18, 0  ;;  %v8955_v63 = vor.u32 %v6382_v45, %v5990_v43  ;;  %v3145_v18 = vsel %vm573_vm3, %v8837_v0, 0 }
 0x5ac   : > { %v8979_v27 = vsel %vm7271_vm4, %v3145_v18, 0  ;;  %v3125_v18 = vsel %vm573_vm3, %v8839_v23, %v8854_v24  ;;  %v6012_v23 = vld [vmem:[#allocation8 + $0x60] sm:$0xf] }
 0x5ad   : > { %v3016_v30 = vpop.permute.xlu0 %3015  ;;  %10354 = vst [vmem:[#allocation23_spill] sm:$0xff] %v8955_v63 }
 0x5ae   : > { %v3039_v3 = vsel %vm452_vm5, %v8574_v28, %v3016_v30  ;;  %v6383_v28 = vld [vmem:[#allocation8 + $0x38] sm:$0xf0]  ;;  %v8962_v30 = vsel %vm7271_vm4, %v3148_v20, 0  ;;  %v6002_v20 = vld [vmem:[#allocation8 + $0x54] sm:$0xf0] }
 0x5af   : > { %v8940_v42 = vsel %vm7232_vm11, %v3039_v3, 0  ;;  %v8952_v58 = vor.u32 %v6383_v28, %v5988_v44  ;;  %v3126_v3 = vsel %vm573_vm3, %v8827_v22, %v8837_v0  ;;  %v8983_v44 = vsel %vm7271_vm4, %v3142_v16, 0  ;;  %v6000_v0 = vld [vmem:[#allocation8 + $0x48] sm:$0xf]  ;;  %v6386_v22 = vld [vmem:[#allocation8 + $0x50] sm:$0xf0] }
 0x5b0   : > { %3323 = vrot.lane.b32.xlu0 %v8910_v29, %s6730_s29  ;;  %3301 = vrot.lane.b32.xlu1 %v8914_v40, %s6730_s29  ;;  %v8987_v28 = vsel %vm7275_vm9, %v3126_v3, 0  ;;  %v8995_v43 = vor.u32 %v6386_v22, %v6000_v0  ;;  %v9001_v16 = vor.u32 %v6385_v37, %v6002_v20  ;;  %v6388_v37 = vld [vmem:[#allocation8 + $0x64] sm:$0xf]  ;;  %v6014_v20 = vld [vmem:[#allocation8 + $0x6c] sm:$0xf0] }
 0x5b1   : > { %3321 = vrot.lane.b32.xlu2 %v8919_v1, %s6730_s29 }
 0x5b2   : > { %3623 = vmatmul.bf16.gmra.mxu2 %v8952_v58  ;;  %10355 = vst [vmem:[#allocation46_spill] sm:$0xff] %v8995_v43 }
 0x5b3   : > { %10356 = vst [vmem:[#allocation41_spill] sm:$0xff] %v9001_v16 }
 0x5b5   : > { %v3012_v45 = vpop.permute.xlu0 %3011 }
 0x5b6   : > { %v3038_v3 = vsel %vm452_vm5, %v8650_v4, %v3012_v45  ;;  %v6389_v45 = vld [vmem:[#allocation8 + $0x68] sm:$0xf0] }
 0x5b7   : > { %v9012_v0 = vsel %vm7232_vm11, %v3038_v3, 0  ;;  %v9032_v22 = vor.u32 %v6389_v45, %v6012_v23  ;;  %v6026_v23 = vld [vmem:[#allocation8 + $0x84] sm:$0xf0] }
 0x5b8   : > { %3243 = vrot.lane.b32.xlu0 %v8936_v54, %s6730_s29  ;;  %3239 = vrot.lane.b32.xlu1 %v8940_v42, %s6730_s29 }
 0x5b9   : > { %3259 = vrot.lane.b32.xlu2 %v8944_v13, %s6730_s29  ;;  %3672 = vmatmul.bf16.gmra.mxu3 %v8955_v63  ;;  %v9008_v63 = vsel %vm7275_vm9, %v3125_v18, 0  ;;  %10357 = vst [vmem:[#allocation42_spill] sm:$0xff] %v9032_v22  ;;  %v6392_v18 = vld [vmem:[#allocation8 + $0x80] sm:$0xf0] }
 0x5ba   : > { %v9050_v3 = vor.u32 %v6392_v18, %v6024_v35  ;;  %v6036_v18 = vld [vmem:[#allocation8 + $0x90] sm:$0xf] }
 0x5bc   : > { %10359 = vst [vmem:[#allocation49_spill] sm:$0xff] %v9050_v3 }
 0x5bd   : > { %v3008_v4 = vpop.permute.xlu0 %3007 }
 0x5be   : > { %v3037_v24 = vsel %vm452_vm5, %v8604_v49, %v3008_v4  ;;  %v9035_v49 = vor.u32 %v6388_v37, %v6014_v20  ;;  %v9052_v4 = vpop.permute.xlu2 %3315  ;;  %v9072_v20 = vpop.permute.xlu1 %3319 }
 0x5bf   : > { %v9024_v57 = vsel %vm7232_vm11, %v3037_v24, 0  ;;  %v6391_v24 = vld [vmem:[#allocation8 + $0x7c] sm:$0xf] }
 0x5c0   : > { %3267 = vrot.lane.b32.xlu0 %v8440_v48, %s6730_s29  ;;  %3263 = vrot.lane.b32.xlu1 %v8430_v47, %s6730_s29  ;;  %10358 = vst [vmem:[#allocation48_spill] sm:$0xff] %v9035_v49  ;;  %v9055_v45 = vor.u32 %v6391_v24, %v6026_v23  ;;  %v6395_v24 = vld [vmem:[#allocation8 + $0x98] sm:$0xf0] }
 0x5c1   : > { %3303 = vrot.lane.b32.xlu2 %v8962_v30, %s6730_s29 }
 0x5c2   : > { %3628 = vmatmul.bf16.gmra.mxu2 %v8995_v43  ;;  %10360 = vst [vmem:[#allocation50_spill] sm:$0xff] %v9055_v45 }
 0x5c8   : > { %3299 = vrot.lane.b32.xlu0 %v8979_v27, %s6730_s29  ;;  %3295 = vrot.lane.b32.xlu1 %v8983_v44, %s6730_s29 }
 0x5c9   : > { %3297 = vrot.lane.b32.xlu2 %v8987_v28, %s6730_s29  ;;  %3677 = vmatmul.bf16.gmra.mxu3 %v9001_v16 }
 0x5d0   : > { %4506 = vrot.lane.b32.xlu1 %v8600_v31, %s6733_s10  ;;  %3293 = vrot.lane.b32.xlu0 %v9008_v63, %s6730_s29 }
 0x5d1   : > { %3235 = vrot.lane.b32.xlu2 %v9012_v0, %s6730_s29  ;;  %v9064_v37 = vpop.permute.xlu2 %3309 }
 0x5d2   : > { %3633 = vmatmul.bf16.gmra.mxu2 %v9032_v22  ;;  %v6038_v22 = vld [vmem:[#allocation8 + $0x9c] sm:$0xf0] }
 0x5d8   : > { %4540 = vrot.lane.b32.xlu1 %v8534_v2, %s6733_s10  ;;  %4544 = vrot.lane.b32.xlu0 %v8550_v26, %s6733_s10  ;;  %v6050_v2 = vld [vmem:[#allocation8 + $0xb4] sm:$0xf0] }
 0x5d9   : > { %3231 = vrot.lane.b32.xlu2 %v9024_v57, %s6730_s29  ;;  %3682 = vmatmul.bf16.gmra.mxu3 %v9035_v49  ;;  %v9074_v35 = vpop.permute.xlu0 %3317 }
 0x5e0   : > { %4534 = vrot.lane.b32.xlu1 %v8512_v41, %s6733_s10  ;;  %4538 = vrot.lane.b32.xlu0 %v8532_v5, %s6733_s10 }
 0x5e1   : > { %4542 = vrot.lane.b32.xlu2 %v8548_v59, %s6733_s10 }
 0x5e2   : > { %3638 = vmatmul.bf16.gmra.mxu2 %v9050_v3  ;;  %v9076_v3 = vor.u32 %v6395_v24, %v6036_v18 }
 0x5e4   : > { %10361 = vst [vmem:[#allocation44_spill] sm:$0xff] %v9076_v3 }
 0x5e8   : > { %4500 = vrot.lane.b32.xlu1 %v8870_v6, %s6733_s10  ;;  %4504 = vrot.lane.b32.xlu0 %v8845_v25, %s6733_s10 }
 0x5e9   : > { %4508 = vrot.lane.b32.xlu2 %v8833_v19, %s6733_s10  ;;  %3687 = vmatmul.bf16.gmra.mxu3 %v9055_v45  ;;  %v6394_v45 = vld [vmem:[#allocation8 + $0x94] sm:$0xf] }
 0x5ea   : > { %v9079_v49 = vor.u32 %v6394_v45, %v6038_v22 }
 0x5ec   : > { %10362 = vst [vmem:[#allocation30_spill] sm:$0xff] %v9079_v49 }
 0x5f0   : > { %4494 = vrot.lane.b32.xlu1 %v8570_v62, %s6733_s10  ;;  %4498 = vrot.lane.b32.xlu0 %v8590_v34, %s6733_s10 }
 0x5f1   : > { %4502 = vrot.lane.b32.xlu2 %v8618_v7, %s6733_s10 }
 0x5f2   : > { %3643 = vmatmul.bf16.gmra.mxu2 %v9076_v3  ;;  %v6048_v3 = vld [vmem:[#allocation8 + $0xa8] sm:$0xf] }
 0x5f8   : > { %4528 = vrot.lane.b32.xlu1 %v8474_v61, %s6733_s10  ;;  %4532 = vrot.lane.b32.xlu0 %v8494_v52, %s6733_s10  ;;  %v9088_v61 = vpop.permute.xlu1 %3313 }
 0x5f9   : > { %4536 = vrot.lane.b32.xlu2 %v8514_v15, %s6733_s10  ;;  %3692 = vmatmul.bf16.gmra.mxu3 %v9079_v49  ;;  %v6398_v49 = vld [vmem:[#allocation8 + $0xb0] sm:$0xf0]  ;;  %v6397_v15 = vld [vmem:[#allocation8 + $0xac] sm:$0xf] }
 0x5fa   : > { %v9098_v16 = vor.u32 %v6398_v49, %v6048_v3  ;;  %v9103_v26 = vor.u32 %v6397_v15, %v6050_v2 }
 0x5fb   : > { %v3248_v23 = vpop.permute.xlu2 %3247 }
 0x5fc   : > { %10363 = vst [vmem:[#allocation45_spill] sm:$0xff] %v9098_v16 }
 0x5fd   : > { %10364 = vst [vmem:[#allocation22_spill] sm:$0xff] %v9103_v26 }
 0x600   : > { %4512 = vrot.lane.b32.xlu1 %v8944_v13, %s6733_s10  ;;  %4526 = vrot.lane.b32.xlu0 %v8472_v53, %s6733_s10 }
 0x601   : > { %4530 = vrot.lane.b32.xlu2 %v8492_v56, %s6733_s10 }
 0x602   : > { %v3256_v18 = vpop.permute.xlu0 %3255  ;;  %3648 = vmatmul.bf16.gmra.mxu2 %v9098_v16 }
 0x603   : > { %v3272_v24 = vpop.permute.xlu2 %3271  ;;  %v3331_v3 = vsel %vm805_vm7, %v8724_v14, %v3256_v18  ;;  %v10366_v14 = vld [vmem:[#allocation39_spill] sm:$0xff] }
 0x608   : > { %4522 = vrot.lane.b32.xlu1 %v8452_v10, %s6733_s10  ;;  %4510 = vrot.lane.b32.xlu0 %v8642_v33, %s6733_s10 }
 0x609   : > { %4496 = vrot.lane.b32.xlu2 %v8936_v54, %s6733_s10  ;;  %3697 = vmatmul.bf16.gmra.mxu3 %v9103_v26 }
 0x60a   : > { %v3280_v22 = vpop.permute.xlu0 %3279  ;;  %v3252_v45 = vpop.permute.xlu1 %3251 }
 0x60b   : > { %v3322_v52 = vpop.permute.xlu2 %3321  ;;  %v3337_v43 = vsel %vm805_vm7, %v8664_v50, %v3280_v22  ;;  %v3330_v18 = vsel %vm805_vm7, %v10366_v14, %v3252_v45 }
 0x60c   : > { %6091 = vmatpush.bf16.msk.msrb.mxu0 %vm7162_vm8, %v3322_v52  ;;  %3804 = vmatpush.bf16.msrb.mxu2 %v3337_v43 }
 0x610   : > { %6093 = vmatpush.bf16.msk.msrb.mxu0 %vm7162_vm8, %v9074_v35  ;;  %4488 = vrot.lane.b32.xlu1 %v9012_v0, %s6733_s10 }
 0x611   : > { %4490 = vrot.lane.b32.xlu2 %v8580_v32, %s6733_s10  ;;  %4492 = vrot.lane.b32.xlu0 %v8940_v42, %s6733_s10 }
 0x612   : > { %v3312_v50 = vpop.permute.xlu0 %3311  ;;  %v3276_v43 = vpop.permute.xlu1 %3275 }
 0x613   : > { %v3260_v49 = vpop.permute.xlu2 %3259  ;;  %v3336_v15 = vsel %vm805_vm7, %v8704_v38, %v3276_v43  ;;  %v3335_v38 = vsel %vm805_vm7, %v8699_v60, %v3272_v24  ;;  %v10368_v24 = vld [vmem:[#allocation36_spill] sm:$0xff] }
 0x614   : > { %v3332_v2 = vsel %vm805_vm7, %v8776_v55, %v3260_v49  ;;  %6095 = vmatpush.bf16.msk.msrb.mxu0 %vm7162_vm8, %v9088_v61  ;;  %3805 = vmatpush.bf16.msrb.mxu2 %v3336_v15  ;;  %v10365_v55 = vld [vmem:[#allocation37_spill] sm:$0xff]  ;;  %v10367_v15 = vld [vmem:[#allocation32_spill] sm:$0xff] }
 0x615   : > { %3752 = vmatpush.bf16.msrb.mxu1 %v3332_v2  ;;  %v3329_v60 = vsel %vm805_vm7, %v10367_v15, %v3248_v23  ;;  %v3614_v45 = vpop.f32.mrf.mxu2  ;;  %v3347_v23 = vsel %vm805_vm7, %v9074_v35, %v9072_v20  ;;  %v3346_v20 = vsel %vm805_vm7, %v9088_v61, %v9052_v4  ;;  %v10374_v61 = vld [vmem:[#allocation38_spill] sm:$0xff] }
 0x618   : > { %6097 = vmatpush.bf16.msk.msrb.mxu0 %vm7162_vm8, %v9064_v37  ;;  %4482 = vrot.lane.b32.xlu1 %v8614_v8, %s6733_s10 }
 0x619   : > { %3753 = vmatpush.bf16.msrb.mxu1 %v3331_v3  ;;  %4524 = vrot.lane.b32.xlu2 %v8454_v39, %s6733_s10 }
 0x61a   : > { %4486 = vrot.lane.b32.xlu0 %v10365_v55, %s6733_s10  ;;  %3806 = vmatpush.bf16.msrb.mxu2 %v3335_v38  ;;  %v3306_v22 = vpop.permute.xlu0 %3305  ;;  %v3308_v43 = vpop.permute.xlu1 %3307 }
 0x61b   : > { %v3304_v49 = vpop.permute.xlu2 %3303 }
 0x61c   : > { %6099 = vmatpush.bf16.msk.msrb.mxu0 %vm7162_vm8, %v3306_v22  ;;  %v3663_v14 = vpop.f32.mrf.mxu3 }
 0x61d   : > { %3754 = vmatpush.bf16.msrb.mxu1 %v3330_v18  ;;  %v9166_v35 = vpop.f32.mrf.mxu2 }
 0x61e   : > { %10371 = vst [vmem:[#allocation34_spill] sm:$0xff] %v9166_v35  ;;  %v10379_v35 = vld [vmem:[#allocation18_spill] sm:$0xff] }
 0x620   : > { %4516 = vrot.lane.b32.xlu1 %v8430_v47, %s6733_s10  ;;  %v10373_v47 = vld [vmem:[#allocation21_spill] sm:$0xff] }
 0x621   : > { %4518 = vrot.lane.b32.xlu2 %v10368_v24, %s6733_s10  ;;  %3755 = vmatpush.bf16.msrb.mxu1 %v3329_v60 }
 0x622   : > { %4520 = vrot.lane.b32.xlu0 %v8440_v48, %s6733_s10  ;;  %v3324_v2 = vpop.permute.xlu0 %3323  ;;  %v3302_v3 = vpop.permute.xlu1 %3301 }
 0x623   : > { %v3348_v38 = vsel %vm805_vm7, %v3322_v52, %v3324_v2  ;;  %v3298_v16 = vpop.permute.xlu2 %3297  ;;  %6101 = vmatpush.bf16.msk.msrb.mxu0 %vm7162_vm8, %v3302_v3  ;;  %v10369_v52 = vld [vmem:[#allocation33_spill] sm:$0xff]  ;;  %v10370_v2 = vld [vmem:[#allocation15_spill] sm:$0xff] }
 0x624   : > { %3850 = vmatpush.bf16.msrb.mxu3 %v3348_v38  ;;  %v9170_v26 = vpop.f32.mrf.mxu3 }
 0x625   : > { %10372 = vst [vmem:[#allocation26_spill] sm:$0xff] %v9170_v26  ;;  %v10378_v26 = vld [vmem:[#allocation40_spill] sm:$0xff] }
 0x627   : > { %6103 = vmatpush.bf16.msk.msrb.mxu0 %vm7162_vm8, %v3298_v16 }
 0x628   : > { %4564 = vrot.lane.b32.xlu1 %v8866_v17, %s6733_s10  ;;  %3851 = vmatpush.bf16.msrb.mxu3 %v3347_v23  ;;  %v9168_v23 = vadd.f32 %v3663_v14, %v3614_v45 }
 0x629   : > { %4484 = vrot.lane.b32.xlu2 %v9024_v57, %s6733_s10 }
 0x62a   : > { %4514 = vrot.lane.b32.xlu0 %v10369_v52, %s6733_s10  ;;  %v3244_v18 = vpop.permute.xlu0 %3243  ;;  %v3240_v15 = vpop.permute.xlu1 %3239 }
 0x62b   : > { %v3236_v60 = vpop.permute.xlu2 %3235  ;;  %v3328_v38 = vsel %vm805_vm7, %v10370_v2, %v3244_v18  ;;  %v3327_v48 = vsel %vm805_vm7, %v10373_v47, %v3240_v15  ;;  %v3345_v18 = vsel %vm805_vm7, %v9064_v37, %v3312_v50  ;;  %v10375_v2 = vld [vmem:[#allocation24_spill] sm:$0xff]  ;;  %v10376_v15 = vld [vmem:[#allocation29_spill] sm:$0xff]  ;;  %v3344_v37 = vsel %vm805_vm7, %v3306_v22, %v3308_v43  ;;  %v10381_v22 = vld [vmem:[#allocation47_spill] sm:$0xff] }
 0x62c   : > { %3756 = vmatpush.bf16.msrb.mxu1 %v3328_v38  ;;  %3852 = vmatpush.bf16.msrb.mxu3 %v3346_v20  ;;  %v3326_v47 = vsel %vm805_vm7, %v10375_v2, %v3236_v60  ;;  %v3668_v50 = vpop.f32.mrf.mxu3  ;;  %v10377_v20 = vld [vmem:[#allocation28_spill] sm:$0xff]  ;;  %v10380_v2 = vld [vmem:[#allocation31_spill] sm:$0xff] }
 0x630   : > { %4574 = vrot.lane.b32.xlu1 %v8919_v1, %s6733_s10  ;;  %3757 = vmatpush.bf16.msrb.mxu1 %v3327_v48  ;;  %v3619_v48 = vpop.f32.mrf.mxu2 }
 0x631   : > { %4576 = vrot.lane.b32.xlu2 %v8910_v29, %s6733_s10  ;;  %3853 = vmatpush.bf16.msrb.mxu3 %v3345_v18 }
 0x632   : > { %4572 = vrot.lane.b32.xlu0 %v10374_v61, %s6733_s10  ;;  %v3268_v4 = vpop.permute.xlu0 %3267  ;;  %v3264_v45 = vpop.permute.xlu1 %3263 }
 0x633   : > { %v3232_v14 = vpop.permute.xlu2 %3231  ;;  %v3334_v38 = vsel %vm805_vm7, %v10376_v15, %v3268_v4  ;;  %v3333_v60 = vsel %vm805_vm7, %v10379_v35, %v3264_v45  ;;  %v3343_v4 = vsel %vm805_vm7, %v3302_v3, %v3304_v49  ;;  %v9207_v49 = vadd.f32 %v3668_v50, %v3619_v48  ;;  %v6384_v50 = vld [vmem:[#allocation8 + $0x40] sm:$0xf0] }
 0x634   : > { %3758 = vmatpush.bf16.msrb.mxu1 %v3326_v47  ;;  %3807 = vmatpush.bf16.msrb.mxu2 %v3334_v38  ;;  %v3325_v18 = vsel %vm805_vm7, %v10377_v20, %v3232_v14  ;;  %v9209_v3 = vpop.f32.mrf.mxu3  ;;  %v10384_v20 = vld [vmem:[#allocation43_spill] sm:$0xff] }
 0x635   : > { %3854 = vmatpush.bf16.msrb.mxu3 %v3344_v37 }
 0x638   : > { %4562 = vrot.lane.b32.xlu1 %v10378_v26, %s6733_s10  ;;  %3759 = vmatpush.bf16.msrb.mxu1 %v3325_v18  ;;  %v9203_v45 = vpop.f32.mrf.mxu2 }
 0x639   : > { %4568 = vrot.lane.b32.xlu2 %v10380_v2, %s6733_s10  ;;  %3808 = vmatpush.bf16.msrb.mxu2 %v3333_v60 }
 0x63a   : > { %4570 = vrot.lane.b32.xlu0 %v10381_v22, %s6733_s10  ;;  %3855 = vmatpush.bf16.msrb.mxu3 %v3343_v4  ;;  %v3300_v43 = vpop.permute.xlu0 %3299  ;;  %v3296_v47 = vpop.permute.xlu1 %3295 }
 0x63b   : > { %v9200_v14 = vpop.permute.xlu2 %4542  ;;  %v3342_v35 = vsel %vm805_vm7, %v3298_v16, %v3300_v43  ;;  %3760 = vmatmul.bf16.vlgmr.msrb.gmra.mxu1 %v8851_v12  ;;  %v6378_v16 = vld [vmem:[#allocation8 + $0x10] sm:$0xf0] }
 0x63c   : > { %4141 = vmatpush.bf16.msra.mxu1 %v8548_v59  ;;  %3809 = vmatmul.bf16.vlgmr.msrb.gmra.mxu2 %v8857_v9  ;;  %v10382_v59 = vld [vmem:[#allocation25_spill] sm:$0xff]  ;;  %v3673_v37 = vpop.f32.mrf.mxu3 }
 0x63d   : > { %4190 = vmatpush.bf16.msra.mxu2 %v8919_v1  ;;  %v5972_v1 = vld [vmem:[#allocation8 + $0x8] sm:$0xf] }
 0x63e   : > { %3856 = vmatpush.bf16.msrb.mxu3 %v3342_v35  ;;  %v5973_v48 = vor.u32 %v6378_v16, %v5972_v1 }
 0x640   : > { %4142 = vmatpush.bf16.msra.mxu1 %v8532_v5  ;;  %4552 = vrot.lane.b32.xlu1 %v8979_v27, %s6733_s10  ;;  %v3624_v38 = vpop.f32.mrf.mxu2 }
 0x641   : > { %4191 = vmatpush.bf16.msra.mxu2 %v10381_v22  ;;  %4566 = vrot.lane.b32.xlu2 %v10382_v59, %s6733_s10  ;;  %v10385_v22 = vld [vmem:[#allocation16_spill] sm:$0xff] }
 0x642   : > { %4560 = vrot.lane.b32.xlu0 %v8884_v36, %s6733_s10  ;;  %v3294_v12 = vpop.permute.xlu0 %3293  ;;  %v9219_v9 = vpop.permute.xlu1 %4506 }
 0x643   : > { %v9223_v5 = vpop.permute.xlu2 %4508  ;;  %v3341_v15 = vsel %vm805_vm7, %v3294_v12, %v3296_v47  ;;  %6105 = vmatpush.bf16.msk.msrb.mxu0 %vm7162_vm8, %v3294_v12  ;;  %v10387_v12 = vld [vmem:[#allocation41_spill] sm:$0xff] }
 0x644   : > { %4143 = vmatpush.bf16.msra.mxu1 %v8512_v41  ;;  %3857 = vmatpush.bf16.msrb.mxu3 %v3341_v15  ;;  %v10388_v15 = vld [vmem:[#allocation46_spill] sm:$0xff] }
 0x645   : > { %4192 = vmatpush.bf16.msra.mxu2 %v10382_v59  ;;  %v10386_v59 = vld [vmem:[#allocation51_spill] sm:$0xff] }
 0x646   : > { %3711 = vmatmul.bf16.vlgmr.msrb.gmra.mxu0 %v5973_v48 }
 0x647   : > { %4092 = vmatpush.bf16.msra.mxu0 %v8642_v33  ;;  %3858 = vmatmul.bf16.vlgmr.msrb.gmra.mxu3 %v5973_v48  ;;  %v5294_v48 = vld [vmem:[%s10066_s4 + $0x68] sm:$0xff] }
 0x648   : > { %4239 = vmatpush.bf16.msra.mxu3 %v8944_v13  ;;  %4144 = vmatpush.bf16.msra.mxu1 %v8492_v56  ;;  %v9251_v51 = vpop.f32.mrf.mxu2  ;;  %v9253_v13 = vpop.f32.mrf.mxu3 }
 0x649   : > { %4193 = vmatpush.bf16.msra.mxu2 %v10378_v26  ;;  %4550 = vrot.lane.b32.xlu1 %v8987_v28, %s6733_s10  ;;  %v9249_v26 = vadd.f32 %v3673_v37, %v3624_v38  ;;  %v10389_v37 = vld [vmem:[#allocation27_spill] sm:$0xff] }
 0x64a   : > { %4556 = vrot.lane.b32.xlu2 %v8962_v30, %s6733_s10  ;;  %4558 = vrot.lane.b32.xlu0 %v8888_v46, %s6733_s10  ;;  %v9239_v41 = vpop.permute.xlu0 %4544  ;;  %v9241_v33 = vpop.permute.xlu1 %4540 }
 0x64b   : > { %4093 = vmatpush.bf16.msra.mxu0 %v8600_v31  ;;  %v9245_v56 = vpop.permute.xlu2 %4502  ;;  %3765 = vmatmul.bf16.gmra.mxu1 %v8898_v21  ;;  %v5984_v31 = vld [vmem:[#allocation8 + $0x20] sm:$0xf] }
 0x64c   : > { %4145 = vmatpush.bf16.msra.mxu1 %v8472_v53  ;;  %4240 = vmatpush.bf16.msra.mxu3 %v8833_v19  ;;  %v5282_v53 = vld [vmem:[%s10066_s4 + $0x8] sm:$0xff] }
 0x64d   : > { %4194 = vmatpush.bf16.msra.mxu2 %v8888_v46  ;;  %v6381_v19 = vld [vmem:[#allocation8 + $0x28] sm:$0xf0] }
 0x64e   : > { %3814 = vmatmul.bf16.gmra.mxu2 %v8905_v11 }
 0x64f   : > { %4094 = vmatpush.bf16.msra.mxu0 %v8618_v7 }
 0x650   : > { %4146 = vmatpush.bf16.msra.mxu1 %v8452_v10  ;;  %4241 = vmatpush.bf16.msra.mxu3 %v8845_v25  ;;  %v5985_v25 = vor.u32 %v6381_v19, %v5984_v31  ;;  %v3629_v21 = vpop.f32.mrf.mxu2  ;;  %v3678_v11 = vpop.f32.mrf.mxu3  ;;  %v5290_v31 = vld [vmem:[%s10066_s4 + $0x48] sm:$0xff] }
 0x651   : > { %4195 = vmatpush.bf16.msra.mxu2 %v8914_v40  ;;  %5304 = vperm.xlu1 %6528, %v5282_v53  }
 0x652   : > { %4554 = vrot.lane.b32.xlu2 %v8914_v40, %s6733_s10  ;;  %4548 = vrot.lane.b32.xlu0 %v8983_v44, %s6733_s10  ;;  %v4539_v7 = vpop.permute.xlu0 %4538  ;;  %v9268_v46 = vpop.permute.xlu1 %4534 }
 0x653   : > { %4095 = vmatpush.bf16.msra.mxu0 %v8590_v34  ;;  %v9272_v10 = vpop.permute.xlu2 %4536  ;;  %v5285_v34 = vld [vmem:[%s10066_s4 + $0x20] sm:$0xff]  ;;  %v4592_v43 = vsel %vm2060_vm10, %v4539_v7, %v9241_v33 }
 0x654   : > { %4147 = vmatpush.bf16.msra.mxu1 %v10368_v24  ;;  %4242 = vmatpush.bf16.msra.mxu3 %v8870_v6  ;;  %v5281_v6 = vld [vmem:[%s10066_s4] sm:$0xff]  ;;  %v4591_v16 = vsel %vm2060_vm10, %v9268_v46, %v9272_v10  ;;  %v6008_v46 = vld [vmem:[#allocation8 + $0x50] sm:$0xf] }
 0x655   : > { %4196 = vmatpush.bf16.msra.mxu2 %v8987_v28  ;;  %v9295_v28 = vadd.f32 %v3678_v11, %v3629_v21 }
 0x656   : > { %3716 = vmatmul.bf16.gmra.mxu0 %v5985_v25 }
 0x657   : > { %4096 = vmatpush.bf16.msra.mxu0 %v8570_v62  ;;  %3863 = vmatmul.bf16.gmra.mxu3 %v5985_v25  ;;  %v6387_v25 = vld [vmem:[#allocation8 + $0x58] sm:$0xf0] }
 0x658   : > { %4148 = vmatpush.bf16.msra.mxu1 %v10369_v52  ;;  %4243 = vmatpush.bf16.msra.mxu3 %v8936_v54  ;;  %v9299_v24 = vpop.f32.mrf.mxu3 }
 0x659   : > { %4197 = vmatpush.bf16.msra.mxu2 %v9008_v63  ;;  %5319 = vperm.xlu1 %6528, %v5285_v34  }
 0x65a   : > { %4546 = vrot.lane.b32.xlu2 %v9008_v63, %s6733_s10  ;;  %v9288_v62 = vpop.permute.xlu0 %4504  ;;  %v9290_v40 = vpop.permute.xlu1 %4500  ;;  %5299 = vperm.xlu0 %6527, %v5281_v6   ;;  %v10383_v63 = vld [vmem:[#allocation23_spill] sm:$0xff]  ;;  %v6009_v6 = vor.u32 %v6387_v25, %v6008_v46  ;;  %v10396_v46 = vld [vmem:[#allocation49_spill] sm:$0xff]  ;;  %s6671_s10 = scalar_lea.hbm %s10067_s5, 512 }
 0x65b   : > { %4097 = vmatpush.bf16.msra.mxu0 %v8580_v32  ;;  %v4531_v54 = vpop.permute.xlu2 %4530  ;;  %3770 = vmatmul.bf16.gmra.mxu1 %v8952_v58  ;;  %v5288_v32 = vld [vmem:[%s10066_s4 + $0x38] sm:$0xff]  ;;  %p6673_p2 = scmp.lt.s32.totalorder %s6671_s10, %s6667_s26 }
 0x65c   : > { %4337 = vmatpush.bf16.msrb.mxu1 %v8910_v29  ;;  %4244 = vmatpush.bf16.msra.mxu3 %v8940_v42  ;;  %v9297_v29 = vpop.f32.mrf.mxu2  ;;  %v5283_v42 = vld [vmem:[%s10066_s4 + $0x10] sm:$0xff]  ;;  %v5284_v58 = vld [vmem:[%s10066_s4 + $0x18] sm:$0xff] }
 0x65d   : > { %p6674_p9 = por %p6673_p2, %p6672_p11 }
 0x65e   : > { %3819 = vmatmul.bf16.gmra.mxu2 %v10383_v63 }
 0x65f   : > { %4098 = vmatpush.bf16.msra.mxu0 %v10365_v55  ;;  %p6675_p10 = pnand %p6674_p9, %p6670_p8 }
 0x660   : > { %4338 = vmatpush.bf16.msrb.mxu1 %v10374_v61  ;;  %4245 = vmatpush.bf16.msra.mxu3 %v9012_v0  ;;  %v5996_v61 = vld [vmem:[#allocation8 + $0x38] sm:$0xf]  ;;  %v4593_v0 = vsel %vm2060_vm10, %v9200_v14, %v9239_v41  ;;  %v3683_v60 = vpop.f32.mrf.mxu3 }
 0x661   : > { %5334 = vperm.xlu1 %6528, %v5288_v32   ;;  %v5997_v4 = vor.u32 %v6384_v50, %v5996_v61  ;;  %v5293_v32 = vld [vmem:[%s10066_s4 + $0x60] sm:$0xff]  ;;  %v10391_v50 = vld [vmem:[#allocation52_spill] sm:$0xff] }
 0x662   : > { %5309 = vperm.xlu2 %6526, %v5283_v42   ;;  %v9315_v52 = vpop.permute.xlu0 %4498  ;;  %v9317_v55 = vpop.permute.xlu1 %4494  ;;  %5314 = vperm.xlu0 %6527, %v5284_v58  }
 0x663   : > { %4099 = vmatpush.bf16.msra.mxu0 %v8614_v8  ;;  %v5291_v8 = vld [vmem:[%s10066_s4 + $0x50] sm:$0xff] }
 0x664   : > { %4339 = vmatpush.bf16.msrb.mxu1 %v10380_v2  ;;  %4246 = vmatpush.bf16.msra.mxu3 %v9024_v57  ;;  %v3634_v18 = vpop.f32.mrf.mxu2  ;;  %v9325_v2 = vpop.permute.xlu2 %4496  ;;  %v5286_v57 = vld [vmem:[%s10066_s4 + $0x28] sm:$0xff] }
 0x665   : > { %v9345_v35 = vadd.f32 %v3683_v60, %v3634_v18  ;;  %v10392_v18 = vld [vmem:[#allocation48_spill] sm:$0xff]  ;;  %v10393_v60 = vld [vmem:[#allocation42_spill] sm:$0xff] }
 0x666   : > { %3721 = vmatmul.bf16.gmra.mxu0 %v5997_v4 }
 0x667   : > { %4288 = vmatpush.bf16.msrb.mxu0 %v10384_v20  ;;  %3868 = vmatmul.bf16.gmra.mxu3 %v5997_v4  ;;  %v10394_v4 = vld [vmem:[#allocation35_spill] sm:$0xff] }
 0x668   : > { %4340 = vmatpush.bf16.msrb.mxu1 %v8866_v17  ;;  %4908 = vmatpush.bf16.msrb.mxu3 %v4593_v0  ;;  %v5287_v17 = vld [vmem:[%s10066_s4 + $0x30] sm:$0xff]  ;;  %v9350_v1 = vpop.f32.mrf.mxu3 }
 0x669   : > { %5349 = vperm.xlu1 %6528, %v5291_v8   ;;  %v5295_v8 = vld [vmem:[%s10066_s4 + $0x70] sm:$0xff] }
 0x66a   : > { %v9341_v47 = vpop.permute.xlu0 %4532  ;;  %v9343_v14 = vpop.permute.xlu1 %4528  ;;  %5324 = vperm.xlu2 %6526, %v5286_v57   ;;  %5329 = vperm.xlu0 %6527, %v5287_v17   ;;  %v4584_v57 = vsel %vm2060_vm10, %v9219_v9, %v9223_v5  ;;  %v6390_v17 = vld [vmem:[#allocation8 + $0x70] sm:$0xf0]  ;;  %v4582_v9 = vsel %vm2060_vm10, %v9315_v52, %v9290_v40 }
 0x66b   : > { %4289 = vmatpush.bf16.msrb.mxu0 %v10385_v22  ;;  %3775 = vmatmul.bf16.gmra.mxu1 %v10388_v15  ;;  %v4590_v53 = vsel %vm2060_vm10, %v4531_v54, %v9341_v47  ;;  %v5292_v54 = vld [vmem:[%s10066_s4 + $0x58] sm:$0xff] }
 0x66c   : > { %4341 = vmatpush.bf16.msrb.mxu1 %v8884_v36  ;;  %4909 = vmatpush.bf16.msrb.mxu3 %v4592_v43  ;;  %v9348_v36 = vpop.f32.mrf.mxu2  ;;  %v9358_v38 = vpop.permute.xlu2 %4490  ;;  %v5296_v22 = vld [vmem:[%s10066_s4 + $0x78] sm:$0xff]  ;;  %v6020_v43 = vld [vmem:[#allocation8 + $0x68] sm:$0xf] }
 0x66e   : > { %3824 = vmatmul.bf16.gmra.mxu2 %v10387_v12  ;;  %v6021_v12 = vor.u32 %v6390_v17, %v6020_v43  ;;  %v10399_v17 = vld [vmem:[#allocation22_spill] sm:$0xff] }
 0x66f   : > { %4290 = vmatpush.bf16.msrb.mxu0 %v10386_v59 }
 0x670   : > { %4342 = vmatpush.bf16.msrb.mxu1 %v8962_v30  ;;  %4910 = vmatpush.bf16.msrb.mxu3 %v4591_v16  ;;  %v5289_v30 = vld [vmem:[%s10066_s4 + $0x40] sm:$0xff]  ;;  %v3688_v34 = vpop.f32.mrf.mxu3  ;;  %v4583_v16 = vsel %vm2060_vm10, %v9245_v56, %v9288_v62  ;;  %v4581_v56 = vsel %vm2060_vm10, %v9317_v55, %v9325_v2 }
 0x671   : > { %5364 = vperm.xlu1 %6528, %v5294_v48  }
 0x672   : > { %v4527_v19 = vpop.permute.xlu0 %4526  ;;  %v9373_v7 = vpop.permute.xlu1 %4512  ;;  %5339 = vperm.xlu2 %6526, %v5289_v30   ;;  %5344 = vperm.xlu0 %6527, %v5290_v31   ;;  %v10395_v31 = vld [vmem:[#allocation50_spill] sm:$0xff] }
 0x673   : > { %4291 = vmatpush.bf16.msrb.mxu0 %v10389_v37  ;;  %v4589_v21 = vsel %vm2060_vm10, %v4527_v19, %v9343_v14 }
 0x674   : > { %4343 = vmatpush.bf16.msrb.mxu1 %v8979_v27  ;;  %4911 = vmatpush.bf16.msrb.mxu3 %v4590_v53  ;;  %v10390_v27 = vld [vmem:[#allocation53_spill] sm:$0xff]  ;;  %v3639_v11 = vpop.f32.mrf.mxu2  ;;  %v9383_v63 = vpop.permute.xlu2 %4524 }
 0x675   : > { %v9392_v61 = vadd.f32 %v3688_v34, %v3639_v11  ;;  %v6032_v11 = vld [vmem:[#allocation8 + $0x80] sm:$0xf]  ;;  %v6393_v34 = vld [vmem:[#allocation8 + $0x88] sm:$0xf0] }
 0x676   : > { %3726 = vmatmul.bf16.gmra.mxu0 %v6009_v6 }
 0x677   : > { %4292 = vmatpush.bf16.msrb.mxu0 %v10390_v27  ;;  %3873 = vmatmul.bf16.gmra.mxu3 %v6009_v6 }
 0x678   : > { %4344 = vmatpush.bf16.msrb.mxu1 %v8983_v44  ;;  %4912 = vmatpush.bf16.msrb.mxu3 %v4589_v21  ;;  %v9397_v20 = vpop.f32.mrf.mxu3 }
 0x67a   : > { %v4511_v42 = vpop.permute.xlu0 %4510  ;;  %v4523_v58 = vpop.permute.xlu1 %4522  ;;  %5354 = vperm.xlu2 %6526, %v5292_v54   ;;  %5359 = vperm.xlu0 %6527, %v5293_v32   ;;  %v6033_v32 = vor.u32 %v6393_v34, %v6032_v11 }
 0x67b   : > { %4293 = vmatpush.bf16.msrb.mxu0 %v8454_v39  ;;  %v4585_v44 = vsel %vm2060_vm10, %v4511_v42, %v9373_v7  ;;  %v4588_v39 = vsel %vm2060_vm10, %v4523_v58, %v9383_v63  ;;  %3780 = vmatmul.bf16.gmra.mxu1 %v10393_v60  ;;  %v10397_v60 = vld [vmem:[#allocation30_spill] sm:$0xff] }
 0x67c   : > { %v9395_v0 = vpop.f32.mrf.mxu2  ;;  %4913 = vmatpush.bf16.msrb.mxu3 %v4588_v39  ;;  %4859 = vmatpush.bf16.msrb.mxu2 %v4585_v44  ;;  %v4519_v19 = vpop.permute.xlu2 %4518 }
 0x67e   : > { %3829 = vmatmul.bf16.gmra.mxu2 %v10392_v18 }
 0x67f   : > { %4294 = vmatpush.bf16.msrb.mxu0 %v10391_v50 }
 0x680   : > { %4860 = vmatpush.bf16.msrb.mxu2 %v4584_v57  ;;  %v3693_v48 = vpop.f32.mrf.mxu3  ;;  %v6396_v57 = vld [vmem:[#allocation8 + $0xa0] sm:$0xf0] }
 0x682   : > { %5369 = vperm.xlu2 %6526, %v5295_v8   ;;  %5374 = vperm.xlu0 %6527, %v5296_v22   ;;  %v9416_v37 = vpop.permute.xlu1 %4488  ;;  %v10398_v8 = vld [vmem:[#allocation44_spill] sm:$0xff] }
 0x683   : > { %4295 = vmatpush.bf16.msrb.mxu0 %v10394_v4  ;;  %v9411_v59 = vpop.permute.xlu0 %4492  ;;  %v6044_v22 = vld [vmem:[#allocation8 + $0x98] sm:$0xf] }
 0x684   : > { %4861 = vmatpush.bf16.msrb.mxu2 %v4583_v16  ;;  %v3644_v15 = vpop.f32.mrf.mxu2  ;;  %v4580_v52 = vsel %vm2060_vm10, %v9358_v38, %v9411_v59  ;;  %v9441_v42 = vpop.permute.xlu2 %4484  ;;  %v6045_v43 = vor.u32 %v6396_v57, %v6044_v22  ;;  %v10400_v16 = vld [vmem:[#allocation45_spill] sm:$0xff]  ;;  %v6401_v57 = vld [vmem:[#allocation8 + $0xc8] sm:$0xf0] }
 0x685   : > { %v9421_v30 = vadd.f32 %v3693_v48, %v3644_v15  ;;  %v6056_v15 = vld [vmem:[#allocation8 + $0xb0] sm:$0xf]  ;;  %v6399_v48 = vld [vmem:[#allocation8 + $0xb8] sm:$0xf0]  ;;  %v6108_v22 = vld [vmem:[#allocation8 + $0xc0] sm:$0xf] }
 0x686   : > { %3731 = vmatmul.bf16.gmra.mxu0 %v6021_v12 }
 0x687   : > { %3878 = vmatmul.bf16.gmra.mxu3 %v6021_v12 }
 0x688   : > { %4862 = vmatpush.bf16.msrb.mxu2 %v4582_v9  ;;  %v9430_v21 = vpop.f32.mrf.mxu3  ;;  %v6057_v9 = vor.u32 %v6399_v48, %v6056_v15 }
 0x68a   : > { %v4483_v27 = vpop.permute.xlu1 %4482 }
 0x68b   : > { %3785 = vmatmul.bf16.gmra.mxu1 %v10396_v46  ;;  %v4578_v38 = vsel %vm2060_vm10, %v4483_v27, %v9441_v42  ;;  %v6400_v46 = vld [vmem:[#allocation8 + $0xc4] sm:$0xf] }
 0x68c   : > { %v4487_v53 = vpop.permute.xlu0 %4486  ;;  %4863 = vmatpush.bf16.msrb.mxu2 %v4581_v56  ;;  %v9428_v25 = vpop.f32.mrf.mxu2  ;;  %v6116_v56 = vld [vmem:[#allocation8 + $0xc8] sm:$0xf] }
 0x68d   : > { %v4579_v55 = vsel %vm2060_vm10, %v4487_v53, %v9416_v37  ;;  %v4577_v12 = vpop.permute.xlu2 %4576 }
 0x68e   : > { %3834 = vmatmul.bf16.gmra.mxu2 %v10395_v31 }
 0x690   : > { %4864 = vmatpush.bf16.msrb.mxu2 %v4580_v52  ;;  %v3698_v44 = vpop.f32.mrf.mxu3  ;;  %v6110_v52 = vld [vmem:[#allocation8 + $0xcc] sm:$0xf0] }
 0x692   : > { %v9447_v50 = vpop.permute.xlu1 %4516 }
 0x694   : > { %v9435_v6 = vpop.permute.xlu0 %4520  ;;  %4865 = vmatpush.bf16.msrb.mxu2 %v4579_v55  ;;  %v3649_v58 = vpop.f32.mrf.mxu2  ;;  %v9463_v55 = vor.u32 %v6400_v46, %v6110_v52 }
 0x695   : > { %v4587_v54 = vsel %vm2060_vm10, %v4519_v19, %v9435_v6  ;;  %v9445_v39 = vadd.f32 %v3698_v44, %v3649_v58  ;;  %v6402_v19 = vld [vmem:[#allocation8 + $0xd0] sm:$0xf0] }
 0x696   : > { %4914 = vmatpush.bf16.msrb.mxu3 %v4587_v54  ;;  %3736 = vmatmul.bf16.gmra.mxu0 %v6033_v32  ;;  %v9461_v11 = vor.u32 %v6402_v19, %v6116_v56  ;;  %v9465_v54 = vpop.permute.xlu2 %4568 }
 0x697   : > { %3883 = vmatmul.bf16.gmra.mxu3 %v6033_v32  ;;  %v4672_v32 = vsel %vm2060_vm10, %v9239_v41, 0  ;;  %v4645_v41 = vsel %vm2060_vm10, %v9223_v5, 0  ;;  %v6128_v5 = vld [vmem:[#allocation8 + $0xe0] sm:$0xf] }
 0x698   : > { %4866 = vmatpush.bf16.msrb.mxu2 %v4578_v38  ;;  %v4648_v38 = vsel %vm2060_vm10, %v9373_v7, 0  ;;  %v9477_v7 = vpop.f32.mrf.mxu3 }
 0x69a   : > { %v9457_v31 = vpop.permute.xlu1 %4564 }
 0x69b   : > { %3790 = vmatmul.bf16.gmra.mxu1 %v10398_v8 }
 0x69c   : > { %v4515_v18 = vpop.permute.xlu0 %4514  ;;  %v9455_v53 = vpop.f32.mrf.mxu2 }
 0x69d   : > { %v4586_v4 = vsel %vm2060_vm10, %v4515_v18, %v9447_v50 }
 0x69e   : > { %3839 = vmatmul.bf16.gmra.mxu2 %v10397_v60  ;;  %4915 = vmatpush.bf16.msrb.mxu3 %v4586_v4  ;;  %v4669_v60 = vsel %vm2060_vm10, %v9241_v33, 0  ;;  %v4567_v15 = vpop.permute.xlu2 %4566  ;;  %v4642_v33 = vsel %vm2060_vm10, %v9288_v62, 0  ;;  %v4639_v62 = vsel %vm2060_vm10, %v9290_v40, 0 }
 0x6a2   : > { %v4575_v44 = vpop.permute.xlu1 %4574 }
 0x6a3   : > { %v4601_v46 = vsel %vm2060_vm10, %v4575_v44, %v4577_v12 }
 0x6a4   : > { %v9459_v27 = vpop.permute.xlu0 %4572 }
 0x6a6   : > { %3741 = vmatmul.bf16.gmra.mxu0 %v6045_v43 }
 0x6a7   : > { %3888 = vmatmul.bf16.gmra.mxu3 %v6045_v43 }
 0x6ab   : > { %3795 = vmatmul.bf16.gmra.mxu1 %v10400_v16  ;;  %v6109_v16 = vor.u32 %v6401_v57, %v6108_v22  ;;  %v4660_v22 = vsel %vm2060_vm10, %v9343_v14, 0  ;;  %v4557_v57 = vpop.permute.xlu2 %4556  ;;  %v4599_v14 = vsel %vm2060_vm10, %v4567_v15, %v9465_v54 }
 0x6ac   : > { %v4571_v8 = vpop.permute.xlu0 %4570 }
 0x6ae   : > { %3844 = vmatmul.bf16.gmra.mxu2 %v10399_v17  ;;  %v4666_v17 = vsel %vm2060_vm10, %v9272_v10, 0  ;;  %v4663_v10 = vsel %vm2060_vm10, %v9341_v47, 0 }
 0x6b6   : > { %3746 = vmatmul.bf16.gmra.mxu0 %v6057_v9 }
 0x6b7   : > { %3893 = vmatmul.bf16.gmra.mxu3 %v6057_v9  ;;  %v6405_v9 = vld [vmem:[#allocation8 + $0xe8] sm:$0xf0] }
 0x6b8   : > { %v3761_v34 = vpop.f32.mrf.mxu1  ;;  %v9489_v52 = vor.u32 %v6405_v9, %v6128_v5  ;;  %v4690_v5 = vsel %vm2060_vm10, %v9465_v54, 0  ;;  %v6140_v54 = vld [vmem:[#allocation8 + $0xf8] sm:$0xf] }
 0x6bb   : > { %4149 = vmatmul.bf16.vlgmr.msra.gmra.mxu1 %v9463_v55 }
 0x6bc   : > { %5006 = vmatpush.bf16.msra.mxu1 %v4648_v38  ;;  %v4563_v38 = vpop.permute.xlu1 %4562 }
 0x6be   : > { %4198 = vmatmul.bf16.vlgmr.msra.gmra.mxu2 %v9461_v11 }
 0x6bf   : > { %5055 = vmatpush.bf16.msra.mxu2 %v4672_v32  ;;  %v3810_v58 = vpop.f32.mrf.mxu2  ;;  %v6122_v32 = vld [vmem:[#allocation8 + $0xe4] sm:$0xf0] }
 0x6c0   : > { %v3811_v18 = vadd.f32 %v3810_v58, %v3761_v34  ;;  %v3763_v4 = vpop.f32.mrf.mxu1  ;;  %5007 = vmatpush.bf16.msra.mxu1 %v4645_v41  ;;  %v4696_v58 = vsel %vm2060_vm10, %v4577_v12, 0  ;;  %v4600_v41 = vsel %vm2060_vm10, %v4571_v8, %v9459_v27  ;;  %v4636_v12 = vsel %vm2060_vm10, %v9325_v2, 0 }
 0x6c1   : > { %v4657_v8 = vsel %vm2060_vm10, %v9383_v63, 0  ;;  %v4633_v2 = vsel %vm2060_vm10, %v9411_v59, 0  ;;  %v4598_v63 = vsel %vm2060_vm10, %v4563_v38, %v9457_v31 }
 0x6c3   : > { %5056 = vmatpush.bf16.msra.mxu2 %v4669_v60  ;;  %v3712_v43 = vpop.f32.mrf.mxu0  ;;  %v4561_v60 = vpop.permute.xlu0 %4560 }
 0x6c4   : > { %v9482_v48 = vadd.f32 %v3712_v43, %v9168_v23  ;;  %5008 = vmatpush.bf16.msra.mxu1 %v4642_v33  ;;  %v6403_v23 = vld [vmem:[#allocation8 + $0xdc] sm:$0xf]  ;;  %v6120_v33 = vld [vmem:[#allocation8 + $0xd8] sm:$0xf] }
 0x6c5   : > { %v9496_v47 = vor.u32 %v6403_v23, %v6122_v32  ;;  %v4630_v23 = vsel %vm2060_vm10, %v9416_v37, 0  ;;  %v6408_v32 = vld [vmem:[#allocation8 + $0x100] sm:$0xf0] }
 0x6c6   : > { %4100 = vmatmul.bf16.vlgmr.msra.gmra.mxu0 %v6109_v16  ;;  %v9534_v37 = vor.u32 %v6408_v32, %v6140_v54  ;;  %v6152_v32 = vld [vmem:[#allocation8 + $0x110] sm:$0xf] }
 0x6c7   : > { %5057 = vmatpush.bf16.msra.mxu2 %v4666_v17  ;;  %v3812_v56 = vpop.f32.mrf.mxu2  ;;  %4957 = vmatpush.bf16.msra.mxu0 %v4601_v46  ;;  %v4654_v46 = vsel %vm2060_vm10, %v9435_v6, 0 }
 0x6c8   : > { %v3813_v19 = vadd.f32 %v3812_v56, %v3763_v4  ;;  %v3766_v34 = vpop.f32.mrf.mxu1  ;;  %4247 = vmatmul.bf16.vlgmr.msra.gmra.mxu3 %v6109_v16  ;;  %5009 = vmatpush.bf16.msra.mxu1 %v4639_v62  ;;  %v4553_v56 = vpop.permute.xlu1 %4552 }
 0x6c9   : > { %5104 = vmatpush.bf16.msra.mxu3 %v4696_v58  ;;  %v4651_v58 = vsel %vm2060_vm10, %v9447_v50, 0 }
 0x6ca   : > { %v3859_v44 = vpop.f32.mrf.mxu3 }
 0x6cb   : > { %5058 = vmatpush.bf16.msra.mxu2 %v4663_v10  ;;  %v9494_v4 = vadd.f32 %v3859_v44, %v3811_v18  ;;  %4958 = vmatpush.bf16.msra.mxu0 %v4600_v41  ;;  %v9503_v40 = vpop.f32.mrf.mxu0  ;;  %v4693_v18 = vsel %vm2060_vm10, %v9459_v27, 0  ;;  %v6404_v27 = vld [vmem:[#allocation8 + $0xe0] sm:$0xf0]  ;;  %v4559_v59 = vpop.permute.xlu0 %4558 }
 0x6cc   : > { %5010 = vmatpush.bf16.msra.mxu1 %v4636_v12  ;;  %v6121_v10 = vor.u32 %v6404_v27, %v6120_v33  ;;  %v4597_v6 = vsel %vm2060_vm10, %v4559_v59, %v4561_v60  ;;  %v6134_v12 = vld [vmem:[#allocation8 + $0xfc] sm:$0xf0] }
 0x6cd   : > { %10401 = vst [vmem:[#allocation13_spill] sm:$0xff] %v9494_v4  ;;  %5105 = vmatpush.bf16.msra.mxu3 %v4693_v18  ;;  %4154 = vmatmul.bf16.gmra.mxu1 %v9496_v47  ;;  %v4627_v18 = vsel %vm2060_vm10, %v9441_v42, 0  ;;  %v4681_v42 = vsel %vm2060_vm10, %v4557_v57, 0 }
 0x6ce   : > { %4203 = vmatmul.bf16.gmra.mxu2 %v9489_v52 }
 0x6cf   : > { %5059 = vmatpush.bf16.msra.mxu2 %v4660_v22  ;;  %4959 = vmatpush.bf16.msra.mxu0 %v4599_v14  ;;  %v6406_v22 = vld [vmem:[#allocation8 + $0xf4] sm:$0xf] }
 0x6d0   : > { %v3768_v16 = vpop.f32.mrf.mxu1  ;;  %5011 = vmatpush.bf16.msra.mxu1 %v4633_v2  ;;  %v9539_v14 = vor.u32 %v6406_v22, %v6134_v12  ;;  %v6146_v22 = vld [vmem:[#allocation8 + $0x114] sm:$0xf0] }
 0x6d1   : > { %v3815_v43 = vpop.f32.mrf.mxu2  ;;  %5106 = vmatpush.bf16.msra.mxu3 %v4690_v5 }
 0x6d2   : > { %v3816_v17 = vadd.f32 %v3815_v43, %v3766_v34  ;;  %v3861_v9 = vpop.f32.mrf.mxu3 }
 0x6d3   : > { %5060 = vmatpush.bf16.msra.mxu2 %v4657_v8  ;;  %v9518_v15 = vadd.f32 %v3861_v9, %v3813_v19  ;;  %4960 = vmatpush.bf16.msra.mxu0 %v4598_v63  ;;  %v3717_v34 = vpop.f32.mrf.mxu0  ;;  %v4687_v19 = vsel %vm2060_vm10, %v9457_v31, 0  ;;  %v4684_v31 = vsel %vm2060_vm10, %v4561_v60, 0  ;;  %v6132_v9 = vld [vmem:[#allocation8 + $0xf0] sm:$0xf]  ;;  %v6407_v63 = vld [vmem:[#allocation8 + $0xf8] sm:$0xf0] }
 0x6d4   : > { %v9527_v62 = vadd.f32 %v3717_v34, %v9207_v49  ;;  %5012 = vmatpush.bf16.msra.mxu1 %v4630_v23  ;;  %v4555_v49 = vpop.permute.xlu2 %4554  ;;  %v6133_v23 = vor.u32 %v6407_v63, %v6132_v9  ;;  %v6414_v9 = vld [vmem:[#allocation8 + $0x130] sm:$0xf0] }
 0x6d5   : > { %10402 = vst [vmem:[#allocation14_spill] sm:$0xff] %v9518_v15  ;;  %5107 = vmatpush.bf16.msra.mxu3 %v4687_v19  ;;  %v4596_v8 = vsel %vm2060_vm10, %v4555_v49, %v4557_v57  ;;  %v6411_v19 = vld [vmem:[#allocation8 + $0x118] sm:$0xf0]  ;;  %v6216_v15 = vld [vmem:[#allocation8 + $0x198] sm:$0xf] }
 0x6d6   : > { %4105 = vmatmul.bf16.gmra.mxu0 %v6121_v10 }
 0x6d7   : > { %5061 = vmatpush.bf16.msra.mxu2 %v4654_v46  ;;  %4961 = vmatpush.bf16.msra.mxu0 %v4597_v6  ;;  %v4678_v46 = vsel %vm2060_vm10, %v4553_v56, 0 }
 0x6d8   : > { %v3771_v41 = vpop.f32.mrf.mxu1  ;;  %4252 = vmatmul.bf16.gmra.mxu3 %v6121_v10  ;;  %5013 = vmatpush.bf16.msra.mxu1 %v4627_v18 }
 0x6d9   : > { %v3817_v38 = vpop.f32.mrf.mxu2  ;;  %5108 = vmatpush.bf16.msra.mxu3 %v4684_v31 }
 0x6da   : > { %v3818_v44 = vadd.f32 %v3817_v38, %v3768_v16  ;;  %v3864_v43 = vpop.f32.mrf.mxu3  ;;  %v4551_v16 = vpop.permute.xlu1 %4550 }
 0x6db   : > { %5062 = vmatpush.bf16.msra.mxu2 %v4651_v58  ;;  %v9541_v50 = vadd.f32 %v3864_v43, %v3816_v17  ;;  %4962 = vmatpush.bf16.msra.mxu0 %v4596_v8  ;;  %v9545_v2 = vpop.f32.mrf.mxu0  ;;  %v4595_v60 = vsel %vm2060_vm10, %v4551_v16, %v4553_v56  ;;  %v4549_v17 = vpop.permute.xlu0 %4548  ;;  %v6144_v16 = vld [vmem:[#allocation8 + $0x108] sm:$0xf] }
 0x6dc   : > { %v4547_v10 = vpop.permute.xlu2 %4546  ;;  %v4675_v6 = vsel %vm2060_vm10, %v4549_v17, 0 }
 0x6dd   : > { %10403 = vst [vmem:[#allocation19_spill] sm:$0xff] %v9541_v50  ;;  %5109 = vmatpush.bf16.msra.mxu3 %v4681_v42  ;;  %4159 = vmatmul.bf16.gmra.mxu1 %v9539_v14  ;;  %v4594_v57 = vsel %vm2060_vm10, %v4547_v10, %v4549_v17  ;;  %v6410_v42 = vld [vmem:[#allocation8 + $0x110] sm:$0xf0]  ;;  %v6164_v17 = vld [vmem:[#allocation8 + $0x128] sm:$0xf] }
 0x6de   : > { %4208 = vmatmul.bf16.gmra.mxu2 %v9534_v37 }
 0x6df   : > { %4963 = vmatpush.bf16.msra.mxu0 %v4595_v60  ;;  %v6145_v60 = vor.u32 %v6410_v42, %v6144_v16  ;;  %v6176_v42 = vld [vmem:[#allocation8 + $0x140] sm:$0xf] }
 0x6e0   : > { %v3773_v5 = vpop.f32.mrf.mxu1 }
 0x6e1   : > { %v3820_v33 = vpop.f32.mrf.mxu2  ;;  %5110 = vmatpush.bf16.msra.mxu3 %v4678_v46 }
 0x6e2   : > { %v3821_v27 = vadd.f32 %v3820_v33, %v3771_v41  ;;  %v3866_v59 = vpop.f32.mrf.mxu3  ;;  %v9558_v41 = vor.u32 %v6411_v19, %v6152_v32 }
 0x6e3   : > { %v9551_v34 = vadd.f32 %v3866_v59, %v3818_v44  ;;  %4964 = vmatpush.bf16.msra.mxu0 %v4594_v57  ;;  %v3722_v54 = vpop.f32.mrf.mxu0  ;;  %v6409_v44 = vld [vmem:[#allocation8 + $0x10c] sm:$0xf]  ;;  %v9573_v57 = vor.u32 %v6414_v9, %v6164_v17 }
 0x6e4   : > { %v9555_v38 = vadd.f32 %v3722_v54, %v9249_v26  ;;  %v9560_v49 = vor.u32 %v6409_v44, %v6146_v22  ;;  %v6158_v54 = vld [vmem:[#allocation8 + $0x12c] sm:$0xf0]  ;;  %v6156_v22 = vld [vmem:[#allocation8 + $0x120] sm:$0xf] }
 0x6e5   : > { %10404 = vst [vmem:[#allocation20_spill] sm:$0xff] %v9551_v34  ;;  %5111 = vmatpush.bf16.msra.mxu3 %v4675_v6 }
 0x6e6   : > { %4110 = vmatmul.bf16.gmra.mxu0 %v6133_v23 }
 0x6e8   : > { %4257 = vmatmul.bf16.gmra.mxu3 %v6133_v23  ;;  %v3776_v12 = vpop.f32.mrf.mxu1  ;;  %v6412_v23 = vld [vmem:[#allocation8 + $0x124] sm:$0xf] }
 0x6e9   : > { %v3822_v58 = vpop.f32.mrf.mxu2  ;;  %v9575_v19 = vor.u32 %v6412_v23, %v6158_v54  ;;  %v6170_v23 = vld [vmem:[#allocation8 + $0x144] sm:$0xf0] }
 0x6ea   : > { %v3823_v56 = vadd.f32 %v3822_v58, %v3773_v5  ;;  %v3869_v18 = vpop.f32.mrf.mxu3 }
 0x6eb   : > { %v9563_v31 = vadd.f32 %v3869_v18, %v3821_v27  ;;  %v9565_v26 = vpop.f32.mrf.mxu0 }
 0x6ed   : > { %10405 = vst [vmem:[#allocation17_spill] sm:$0xff] %v9563_v31  ;;  %4164 = vmatmul.bf16.gmra.mxu1 %v9560_v49  ;;  %v6421_v31 = vld [vmem:[#allocation8 + $0x16c] sm:$0xf] }
 0x6ee   : > { %4213 = vmatmul.bf16.gmra.mxu2 %v9558_v41 }
 0x6f0   : > { %v3778_v33 = vpop.f32.mrf.mxu1 }
 0x6f1   : > { %v3825_v43 = vpop.f32.mrf.mxu2 }
 0x6f2   : > { %v3826_v8 = vadd.f32 %v3825_v43, %v3776_v12  ;;  %v3871_v5 = vpop.f32.mrf.mxu3  ;;  %v6413_v12 = vld [vmem:[#allocation8 + $0x128] sm:$0xf0] }
 0x6f3   : > { %v9568_v63 = vadd.f32 %v3871_v5, %v3823_v56  ;;  %v3727_v46 = vpop.f32.mrf.mxu0  ;;  %v6157_v43 = vor.u32 %v6413_v12, %v6156_v22  ;;  %v6168_v12 = vld [vmem:[#allocation8 + $0x138] sm:$0xf] }
 0x6f4   : > { %v9571_v10 = vadd.f32 %v3727_v46, %v9295_v28 }
 0x6f5   : > { %10406 = vst [vmem:[#allocation37_spill] sm:$0xff] %v9568_v63 }
 0x6f6   : > { %4115 = vmatmul.bf16.gmra.mxu0 %v6145_v60 }
 0x6f8   : > { %4262 = vmatmul.bf16.gmra.mxu3 %v6145_v60  ;;  %v3781_v32 = vpop.f32.mrf.mxu1 }
 0x6f9   : > { %v3827_v27 = vpop.f32.mrf.mxu2 }
 0x6fa   : > { %v3828_v59 = vadd.f32 %v3827_v27, %v3778_v33  ;;  %v3874_v6 = vpop.f32.mrf.mxu3  ;;  %v6417_v33 = vld [vmem:[#allocation8 + $0x148] sm:$0xf0]  ;;  %v6415_v27 = vld [vmem:[#allocation8 + $0x13c] sm:$0xf] }
 0x6fb   : > { %v9578_v58 = vadd.f32 %v3874_v6, %v3826_v8  ;;  %v9580_v56 = vpop.f32.mrf.mxu0  ;;  %v9588_v46 = vor.u32 %v6417_v33, %v6176_v42 }
 0x6fd   : > { %10407 = vst [vmem:[#allocation39_spill] sm:$0xff] %v9578_v58  ;;  %4169 = vmatmul.bf16.gmra.mxu1 %v9575_v19 }
 0x6fe   : > { %4218 = vmatmul.bf16.gmra.mxu2 %v9573_v57 }
 0x700   : > { %v3783_v18 = vpop.f32.mrf.mxu1 }
 0x701   : > { %v3830_v28 = vpop.f32.mrf.mxu2 }
 0x702   : > { %v3831_v44 = vadd.f32 %v3830_v28, %v3781_v32  ;;  %v3876_v16 = vpop.f32.mrf.mxu3  ;;  %v9590_v32 = vor.u32 %v6415_v27, %v6170_v23 }
 0x703   : > { %v9583_v60 = vadd.f32 %v3876_v16, %v3828_v59  ;;  %v3732_v5 = vpop.f32.mrf.mxu0 }
 0x704   : > { %v9586_v17 = vadd.f32 %v3732_v5, %v9345_v35  ;;  %v6420_v5 = vld [vmem:[#allocation8 + $0x160] sm:$0xf0] }
 0x705   : > { %10408 = vst [vmem:[#allocation32_spill] sm:$0xff] %v9583_v60  ;;  %v6418_v60 = vld [vmem:[#allocation8 + $0x154] sm:$0xf] }
 0x706   : > { %4120 = vmatmul.bf16.gmra.mxu0 %v6157_v43 }
 0x708   : > { %4267 = vmatmul.bf16.gmra.mxu3 %v6157_v43  ;;  %v3786_v54 = vpop.f32.mrf.mxu1  ;;  %v6188_v43 = vld [vmem:[#allocation8 + $0x158] sm:$0xf] }
 0x709   : > { %v3832_v8 = vpop.f32.mrf.mxu2 }
 0x70a   : > { %v3833_v9 = vadd.f32 %v3832_v8, %v3783_v18  ;;  %v3879_v6 = vpop.f32.mrf.mxu3  ;;  %v6416_v18 = vld [vmem:[#allocation8 + $0x140] sm:$0xf0] }
 0x70b   : > { %v9593_v59 = vadd.f32 %v3879_v6, %v3831_v44  ;;  %v9595_v28 = vpop.f32.mrf.mxu0  ;;  %v6169_v42 = vor.u32 %v6416_v18, %v6168_v12 }
 0x70d   : > { %10409 = vst [vmem:[#allocation36_spill] sm:$0xff] %v9593_v59  ;;  %4174 = vmatmul.bf16.gmra.mxu1 %v9590_v32  ;;  %v9603_v59 = vor.u32 %v6420_v5, %v6188_v43  ;;  %v6419_v43 = vld [vmem:[#allocation8 + $0x158] sm:$0xf0] }
 0x70e   : > { %4223 = vmatmul.bf16.gmra.mxu2 %v9588_v46 }
 0x710   : > { %v3788_v16 = vpop.f32.mrf.mxu1 }
 0x711   : > { %v3835_v35 = vpop.f32.mrf.mxu2 }
 0x712   : > { %v3836_v22 = vadd.f32 %v3835_v35, %v3786_v54  ;;  %v3881_v33 = vpop.f32.mrf.mxu3  ;;  %v6182_v54 = vld [vmem:[#allocation8 + $0x15c] sm:$0xf0] }
 0x713   : > { %v9598_v8 = vadd.f32 %v3881_v33, %v3833_v9  ;;  %v3737_v27 = vpop.f32.mrf.mxu0  ;;  %v9605_v58 = vor.u32 %v6418_v60, %v6182_v54 }
 0x714   : > { %v9601_v23 = vadd.f32 %v3737_v27, %v9392_v61 }
 0x715   : > { %10410 = vst [vmem:[#allocation33_spill] sm:$0xff] %v9598_v8  ;;  %v6423_v8 = vld [vmem:[#allocation8 + $0x178] sm:$0xf0] }
 0x716   : > { %4125 = vmatmul.bf16.gmra.mxu0 %v6169_v42 }
 0x718   : > { %4272 = vmatmul.bf16.gmra.mxu3 %v6169_v42  ;;  %v3791_v35 = vpop.f32.mrf.mxu1  ;;  %v6200_v42 = vld [vmem:[#allocation8 + $0x170] sm:$0xf] }
 0x719   : > { %v3837_v44 = vpop.f32.mrf.mxu2 }
 0x71a   : > { %v3838_v6 = vadd.f32 %v3837_v44, %v3788_v16  ;;  %v3884_v12 = vpop.f32.mrf.mxu3  ;;  %v6180_v16 = vld [vmem:[#allocation8 + $0x150] sm:$0xf] }
 0x71b   : > { %v9608_v9 = vadd.f32 %v3884_v12, %v3836_v22  ;;  %v9610_v18 = vpop.f32.mrf.mxu0  ;;  %v6181_v27 = vor.u32 %v6419_v43, %v6180_v16 }
 0x71d   : > { %10411 = vst [vmem:[#allocation15_spill] sm:$0xff] %v9608_v9  ;;  %4179 = vmatmul.bf16.gmra.mxu1 %v9605_v58  ;;  %v9618_v9 = vor.u32 %v6423_v8, %v6200_v42  ;;  %v6422_v8 = vld [vmem:[#allocation8 + $0x170] sm:$0xf0] }
 0x71e   : > { %4228 = vmatmul.bf16.gmra.mxu2 %v9603_v59 }
 0x720   : > { %v3793_v5 = vpop.f32.mrf.mxu1 }
 0x721   : > { %v3840_v61 = vpop.f32.mrf.mxu2 }
 0x722   : > { %v3841_v33 = vadd.f32 %v3840_v61, %v3791_v35  ;;  %v3886_v44 = vpop.f32.mrf.mxu3  ;;  %v6194_v35 = vld [vmem:[#allocation8 + $0x174] sm:$0xf0] }
 0x723   : > { %v9613_v60 = vadd.f32 %v3886_v44, %v3838_v6  ;;  %v3742_v54 = vpop.f32.mrf.mxu0  ;;  %v9620_v34 = vor.u32 %v6421_v31, %v6194_v35 }
 0x724   : > { %v9616_v63 = vadd.f32 %v3742_v54, %v9421_v30 }
 0x725   : > { %10412 = vst [vmem:[#allocation21_spill] sm:$0xff] %v9613_v60  ;;  %v6425_v60 = vld [vmem:[#allocation8 + $0x188] sm:$0xf0] }
 0x726   : > { %4130 = vmatmul.bf16.gmra.mxu0 %v6181_v27 }
 0x728   : > { %4277 = vmatmul.bf16.gmra.mxu3 %v6181_v27  ;;  %v3796_v61 = vpop.f32.mrf.mxu1  ;;  %v6204_v27 = vld [vmem:[#allocation8 + $0x180] sm:$0xf] }
 0x729   : > { %v3842_v22 = vpop.f32.mrf.mxu2 }
 0x72a   : > { %v3843_v12 = vadd.f32 %v3842_v22, %v3793_v5  ;;  %v3889_v16 = vpop.f32.mrf.mxu3  ;;  %v6192_v5 = vld [vmem:[#allocation8 + $0x168] sm:$0xf] }
 0x72b   : > { %v9623_v6 = vadd.f32 %v3889_v16, %v3841_v33  ;;  %v9625_v43 = vpop.f32.mrf.mxu0  ;;  %v6193_v54 = vor.u32 %v6422_v8, %v6192_v5 }
 0x72d   : > { %10413 = vst [vmem:[#allocation38_spill] sm:$0xff] %v9623_v6  ;;  %4184 = vmatmul.bf16.gmra.mxu1 %v9620_v34  ;;  %v9633_v6 = vor.u32 %v6425_v60, %v6204_v27 }
 0x72e   : > { %4233 = vmatmul.bf16.gmra.mxu2 %v9618_v9 }
 0x730   : > { %v3798_v42 = vpop.f32.mrf.mxu1 }
 0x731   : > { %v3845_v30 = vpop.f32.mrf.mxu2 }
 0x732   : > { %v3846_v44 = vadd.f32 %v3845_v30, %v3796_v61  ;;  %v3891_v22 = vpop.f32.mrf.mxu3 }
 0x733   : > { %v9628_v31 = vadd.f32 %v3891_v22, %v3843_v12  ;;  %v3747_v35 = vpop.f32.mrf.mxu0 }
 0x734   : > { %v9631_v50 = vadd.f32 %v3747_v35, %v9445_v39  ;;  %v6424_v39 = vld [vmem:[#allocation8 + $0x184] sm:$0xf]  ;;  %v6206_v35 = vld [vmem:[#allocation8 + $0x18c] sm:$0xf0] }
 0x735   : > { %10414 = vst [vmem:[#allocation24_spill] sm:$0xff] %v9628_v31  ;;  %v9643_v27 = vor.u32 %v6424_v39, %v6206_v35  ;;  %v10421_v39 = vld [vmem:[#allocation34_spill] sm:$0xff] }
 0x736   : > { %4135 = vmatmul.bf16.gmra.mxu0 %v6193_v54  ;;  %v10422_v35 = vld [vmem:[#allocation26_spill] sm:$0xff] }
 0x738   : > { %4282 = vmatmul.bf16.gmra.mxu3 %v6193_v54  ;;  %v4150_v61 = vpop.f32.mrf.mxu1 }
 0x739   : > { %v3847_v33 = vpop.f32.mrf.mxu2 }
 0x73a   : > { %v3848_v16 = vadd.f32 %v3847_v33, %v3798_v42  ;;  %v3894_v30 = vpop.f32.mrf.mxu3  ;;  %v6428_v42 = vld [vmem:[#allocation8 + $0x1a0] sm:$0xf0] }
 0x73b   : > { %v9636_v5 = vadd.f32 %v3894_v30, %v3846_v44  ;;  %v9638_v8 = vpop.f32.mrf.mxu0  ;;  %v9646_v44 = vor.u32 %v6428_v42, %v6216_v15  ;;  %v6218_v42 = vld [vmem:[#allocation8 + $0x1a4] sm:$0xf0] }
 0x73c   : > { %10416 = vst [vmem:[#allocation28_spill] sm:$0xff] %v9638_v8 }
 0x73d   : > { %10415 = vst [vmem:[#allocation29_spill] sm:$0xff] %v9636_v5  ;;  %4345 = vmatmul.bf16.vlgmr.msrb.gmra.mxu1 %v9461_v11 }
 0x73e   : > { %4867 = vmatmul.bf16.vlgmr.msrb.gmra.mxu2 %v9633_v6  ;;  %10418 = vst [vmem:[#allocation18_spill] sm:$0xff] %v9646_v44 }
 0x740   : > { %v4152_v22 = vpop.f32.mrf.mxu1 }
 0x741   : > { %v4199_v12 = vpop.f32.mrf.mxu2 }
 0x742   : > { %v3896_v31 = vpop.f32.mrf.mxu3 }
 0x743   : > { %v9641_v60 = vadd.f32 %v3896_v31, %v3848_v16  ;;  %v4101_v54 = vpop.f32.mrf.mxu0 }
 0x744   : > { %v4151_v33 = vadd.f32 %v4150_v61, %v4101_v54  ;;  %v3666_v61 = vadd.f32 %v10422_v35, %v10421_v39 }
 0x745   : > { %10417 = vst [vmem:[#allocation40_spill] sm:$0xff] %v9641_v60 }
 0x746   : > { %4296 = vmatmul.bf16.vlgmr.msrb.gmra.mxu0 %v9463_v55  ;;  %v4200_v30 = vadd.f32 %v4199_v12, %v4151_v33  ;;  %v3715_v55 = vadd.f32 %v9503_v40, %v3666_v61 }
 0x748   : > { %4916 = vmatmul.bf16.vlgmr.msrb.gmra.mxu3 %v9643_v27  ;;  %v9650_v11 = vadd.f32 %v4200_v30, %v9482_v48  ;;  %v6427_v48 = vld [vmem:[#allocation8 + $0x19c] sm:$0xf] }
 0x749   : > { %v4201_v4 = vpop.f32.mrf.mxu2  ;;  %v9663_v8 = vor.u32 %v6427_v48, %v6218_v42  ;;  %v6240_v48 = vld [vmem:[#allocation8 + $0x1c8] sm:$0xf]  ;;  %v6434_v42 = vld [vmem:[#allocation8 + $0x1d0] sm:$0xf0] }
 0x74a   : > { %10419 = vst [vmem:[#allocation31_spill] sm:$0xff] %v9650_v11  ;;  %v4155_v5 = vpop.f32.mrf.mxu1  ;;  %v6228_v11 = vld [vmem:[#allocation8 + $0x1b0] sm:$0xf] }
 0x74b   : > { %v9653_v31 = vpop.f32.mrf.mxu3  ;;  %v4103_v16 = vpop.f32.mrf.mxu0 }
 0x74c   : > { %10420 = vst [vmem:[#allocation47_spill] sm:$0xff] %v9653_v31  ;;  %v4153_v54 = vadd.f32 %v4152_v22, %v4103_v16 }
 0x74d   : > { %4350 = vmatmul.bf16.gmra.mxu1 %v9489_v52 }
 0x74e   : > { %4872 = vmatmul.bf16.gmra.mxu2 %v9646_v44  ;;  %v4202_v15 = vadd.f32 %v4201_v4, %v4153_v54  ;;  %v6431_v44 = vld [vmem:[#allocation8 + $0x1b8] sm:$0xf0] }
 0x74f   : > { %v9666_v52 = vor.u32 %v6431_v44, %v6228_v11  ;;  %v6230_v11 = vld [vmem:[#allocation8 + $0x1bc] sm:$0xf0] }
 0x750   : > { %v9659_v12 = vadd.f32 %v4202_v15, %v3715_v55 }
 0x751   : > { %v4204_v60 = vpop.f32.mrf.mxu2 }
 0x752   : > { %v4157_v33 = vpop.f32.mrf.mxu1 }
 0x753   : > { %v9661_v30 = vpop.f32.mrf.mxu3  ;;  %v4106_v31 = vpop.f32.mrf.mxu0 }
 0x754   : > { %v4156_v39 = vadd.f32 %v4155_v5, %v4106_v31  ;;  %v3671_v5 = vadd.f32 %v9209_v3, %v9203_v45 }
 0x756   : > { %4301 = vmatmul.bf16.gmra.mxu0 %v9496_v47  ;;  %v4205_v40 = vadd.f32 %v4204_v60, %v4156_v39  ;;  %v3720_v47 = vadd.f32 %v9545_v2, %v3671_v5 }
 0x758   : > { %4921 = vmatmul.bf16.gmra.mxu3 %v9663_v8  ;;  %v9670_v4 = vadd.f32 %v4205_v40, %v9527_v62  ;;  %v6430_v62 = vld [vmem:[#allocation8 + $0x1b4] sm:$0xf] }
 0x759   : > { %v4206_v22 = vpop.f32.mrf.mxu2  ;;  %v9683_v40 = vor.u32 %v6430_v62, %v6230_v11  ;;  %v6242_v62 = vld [vmem:[#allocation8 + $0x1d4] sm:$0xf0] }
 0x75a   : > { %v4160_v16 = vpop.f32.mrf.mxu1 }
 0x75b   : > { %v9673_v35 = vpop.f32.mrf.mxu3  ;;  %v4108_v61 = vpop.f32.mrf.mxu0 }
 0x75c   : > { %v4158_v31 = vadd.f32 %v4157_v33, %v4108_v61 }
 0x75d   : > { %4355 = vmatmul.bf16.gmra.mxu1 %v9534_v37  ;;  %v9686_v37 = vor.u32 %v6434_v42, %v6240_v48  ;;  %v6252_v42 = vld [vmem:[#allocation8 + $0x1e0] sm:$0xf] }
 0x75e   : > { %4877 = vmatmul.bf16.gmra.mxu2 %v9666_v52  ;;  %v4207_v60 = vadd.f32 %v4206_v22, %v4158_v31 }
 0x760   : > { %v9679_v44 = vadd.f32 %v4207_v60, %v3720_v47 }
 0x761   : > { %v4209_v54 = vpop.f32.mrf.mxu2 }
 0x762   : > { %v4162_v55 = vpop.f32.mrf.mxu1 }
 0x763   : > { %v9681_v15 = vpop.f32.mrf.mxu3  ;;  %v4111_v39 = vpop.f32.mrf.mxu0 }
 0x764   : > { %v4161_v45 = vadd.f32 %v4160_v16, %v4111_v39  ;;  %v3676_v16 = vadd.f32 %v9253_v13, %v9251_v51  ;;  %v6437_v39 = vld [vmem:[#allocation8 + $0x1e8] sm:$0xf0] }
 0x766   : > { %4306 = vmatmul.bf16.gmra.mxu0 %v9539_v14  ;;  %v4210_v2 = vadd.f32 %v4209_v54, %v4161_v45  ;;  %v3725_v14 = vadd.f32 %v9565_v26, %v3676_v16 }
 0x768   : > { %4926 = vmatmul.bf16.gmra.mxu3 %v9683_v40  ;;  %v9690_v33 = vadd.f32 %v4210_v2, %v9555_v38  ;;  %v6433_v38 = vld [vmem:[#allocation8 + $0x1cc] sm:$0xf] }
 0x769   : > { %v4211_v3 = vpop.f32.mrf.mxu2  ;;  %v9703_v2 = vor.u32 %v6433_v38, %v6242_v62  ;;  %v6254_v38 = vld [vmem:[#allocation8 + $0x1ec] sm:$0xf0] }
 0x76a   : > { %v4165_v22 = vpop.f32.mrf.mxu1 }
 0x76b   : > { %v9693_v61 = vpop.f32.mrf.mxu3  ;;  %v4113_v5 = vpop.f32.mrf.mxu0 }
 0x76c   : > { %v4163_v31 = vadd.f32 %v4162_v55, %v4113_v5 }
 0x76d   : > { %4360 = vmatmul.bf16.gmra.mxu1 %v9558_v41  ;;  %v9706_v41 = vor.u32 %v6437_v39, %v6252_v42  ;;  %v6264_v39 = vld [vmem:[#allocation8 + $0x1f8] sm:$0xf] }
 0x76e   : > { %4882 = vmatmul.bf16.gmra.mxu2 %v9686_v37  ;;  %v4212_v54 = vadd.f32 %v4211_v3, %v4163_v31 }
 0x770   : > { %v9699_v60 = vadd.f32 %v4212_v54, %v3725_v14 }
 0x771   : > { %v4214_v47 = vpop.f32.mrf.mxu2 }
 0x772   : > { %v4167_v11 = vpop.f32.mrf.mxu1 }
 0x773   : > { %v9701_v48 = vpop.f32.mrf.mxu3  ;;  %v4116_v45 = vpop.f32.mrf.mxu0 }
 0x774   : > { %v4166_v51 = vadd.f32 %v4165_v22, %v4116_v45  ;;  %v3681_v22 = vadd.f32 %v9299_v24, %v9297_v29  ;;  %v6440_v45 = vld [vmem:[#allocation8 + $0x200] sm:$0xf0] }
 0x776   : > { %4311 = vmatmul.bf16.gmra.mxu0 %v9560_v49  ;;  %v4215_v26 = vadd.f32 %v4214_v47, %v4166_v51  ;;  %v3730_v49 = vadd.f32 %v9580_v56, %v3681_v22 }
 0x778   : > { %4931 = vmatmul.bf16.gmra.mxu3 %v9703_v2  ;;  %v9710_v55 = vadd.f32 %v4215_v26, %v9571_v10  ;;  %v6436_v10 = vld [vmem:[#allocation8 + $0x1e4] sm:$0xf] }
 0x779   : > { %v4216_v13 = vpop.f32.mrf.mxu2  ;;  %v9723_v26 = vor.u32 %v6436_v10, %v6254_v38  ;;  %v6266_v10 = vld [vmem:[#allocation8 + $0x204] sm:$0xf0] }
 0x77a   : > { %v4170_v3 = vpop.f32.mrf.mxu1 }
 0x77b   : > { %v9713_v5 = vpop.f32.mrf.mxu3  ;;  %v4118_v16 = vpop.f32.mrf.mxu0 }
 0x77c   : > { %v4168_v31 = vadd.f32 %v4167_v11, %v4118_v16 }
 0x77d   : > { %4365 = vmatmul.bf16.gmra.mxu1 %v9573_v57  ;;  %v9726_v57 = vor.u32 %v6440_v45, %v6264_v39  ;;  %v6276_v45 = vld [vmem:[#allocation8 + $0x210] sm:$0xf] }
 0x77e   : > { %4887 = vmatmul.bf16.gmra.mxu2 %v9706_v41  ;;  %v4217_v47 = vadd.f32 %v4216_v13, %v4168_v31 }
 0x780   : > { %v9719_v54 = vadd.f32 %v4217_v47, %v3730_v49 }
 0x781   : > { %v4219_v14 = vpop.f32.mrf.mxu2 }
 0x782   : > { %v4172_v62 = vpop.f32.mrf.mxu1 }
 0x783   : > { %v9721_v42 = vpop.f32.mrf.mxu3  ;;  %v4121_v51 = vpop.f32.mrf.mxu0 }
 0x784   : > { %v4171_v29 = vadd.f32 %v4170_v3, %v4121_v51  ;;  %v3686_v3 = vadd.f32 %v9350_v1, %v9348_v36  ;;  %v6443_v51 = vld [vmem:[#allocation8 + $0x218] sm:$0xf0] }
 0x786   : > { %4316 = vmatmul.bf16.gmra.mxu0 %v9575_v19  ;;  %v4220_v56 = vadd.f32 %v4219_v14, %v4171_v29  ;;  %v3735_v19 = vadd.f32 %v9595_v28, %v3686_v3 }
 0x788   : > { %4936 = vmatmul.bf16.gmra.mxu3 %v9723_v26  ;;  %v9730_v11 = vadd.f32 %v4220_v56, %v9586_v17  ;;  %v6439_v17 = vld [vmem:[#allocation8 + $0x1fc] sm:$0xf] }
 0x789   : > { %v4221_v24 = vpop.f32.mrf.mxu2  ;;  %v9743_v56 = vor.u32 %v6439_v17, %v6266_v10  ;;  %v6278_v17 = vld [vmem:[#allocation8 + $0x21c] sm:$0xf0] }
 0x78a   : > { %v4175_v13 = vpop.f32.mrf.mxu1 }
 0x78b   : > { %v9733_v16 = vpop.f32.mrf.mxu3  ;;  %v4123_v22 = vpop.f32.mrf.mxu0 }
 0x78c   : > { %v4173_v31 = vadd.f32 %v4172_v62, %v4123_v22 }
 0x78d   : > { %4370 = vmatmul.bf16.gmra.mxu1 %v9588_v46  ;;  %v9746_v46 = vor.u32 %v6443_v51, %v6276_v45  ;;  %v6288_v51 = vld [vmem:[#allocation8 + $0x228] sm:$0xf] }
 0x78e   : > { %4892 = vmatmul.bf16.gmra.mxu2 %v9726_v57  ;;  %v4222_v14 = vadd.f32 %v4221_v24, %v4173_v31 }
 0x790   : > { %v9739_v47 = vadd.f32 %v4222_v14, %v3735_v19 }
 0x791   : > { %v4224_v49 = vpop.f32.mrf.mxu2 }
 0x792   : > { %v4177_v38 = vpop.f32.mrf.mxu1 }
 0x793   : > { %v9741_v39 = vpop.f32.mrf.mxu3  ;;  %v4126_v29 = vpop.f32.mrf.mxu0 }
 0x794   : > { %v4176_v36 = vadd.f32 %v4175_v13, %v4126_v29  ;;  %v3691_v13 = vadd.f32 %v9397_v20, %v9395_v0  ;;  %v6446_v29 = vld [vmem:[#allocation8 + $0x230] sm:$0xf0] }
 0x796   : > { %4321 = vmatmul.bf16.gmra.mxu0 %v9590_v32  ;;  %v4225_v28 = vadd.f32 %v4224_v49, %v4176_v36  ;;  %v3740_v32 = vadd.f32 %v9610_v18, %v3691_v13 }
 0x798   : > { %4941 = vmatmul.bf16.gmra.mxu3 %v9743_v56  ;;  %v9750_v62 = vadd.f32 %v4225_v28, %v9601_v23  ;;  %v6442_v23 = vld [vmem:[#allocation8 + $0x214] sm:$0xf] }
 0x799   : > { %v4226_v1 = vpop.f32.mrf.mxu2  ;;  %v9763_v28 = vor.u32 %v6442_v23, %v6278_v17  ;;  %v6290_v23 = vld [vmem:[#allocation8 + $0x234] sm:$0xf0] }
 0x79a   : > { %v4180_v24 = vpop.f32.mrf.mxu1 }
 0x79b   : > { %v9753_v22 = vpop.f32.mrf.mxu3  ;;  %v4128_v3 = vpop.f32.mrf.mxu0 }
 0x79c   : > { %v4178_v31 = vadd.f32 %v4177_v38, %v4128_v3 }
 0x79d   : > { %4375 = vmatmul.bf16.gmra.mxu1 %v9603_v59  ;;  %v9766_v59 = vor.u32 %v6446_v29, %v6288_v51 }
 0x79e   : > { %4897 = vmatmul.bf16.gmra.mxu2 %v9746_v46  ;;  %v4227_v49 = vadd.f32 %v4226_v1, %v4178_v31 }
 0x7a0   : > { %v9759_v14 = vadd.f32 %v4227_v49, %v3740_v32 }
 0x7a1   : > { %v4229_v19 = vpop.f32.mrf.mxu2 }
 0x7a2   : > { %v4182_v10 = vpop.f32.mrf.mxu1 }
 0x7a3   : > { %v9761_v45 = vpop.f32.mrf.mxu3  ;;  %v4131_v36 = vpop.f32.mrf.mxu0 }
 0x7a4   : > { %v4181_v0 = vadd.f32 %v4180_v24, %v4131_v36  ;;  %v3696_v24 = vadd.f32 %v9430_v21, %v9428_v25 }
 0x7a6   : > { %4326 = vmatmul.bf16.gmra.mxu0 %v9605_v58  ;;  %v4230_v18 = vadd.f32 %v4229_v19, %v4181_v0  ;;  %v3745_v58 = vadd.f32 %v9625_v43, %v3696_v24 }
 0x7a8   : > { %4946 = vmatmul.bf16.gmra.mxu3 %v9763_v28  ;;  %v9770_v38 = vadd.f32 %v4230_v18, %v9616_v63  ;;  %v6445_v63 = vld [vmem:[#allocation8 + $0x22c] sm:$0xf] }
 0x7a9   : > { %v4231_v20 = vpop.f32.mrf.mxu2  ;;  %v9783_v36 = vor.u32 %v6445_v63, %v6290_v23 }
 0x7aa   : > { %v4185_v1 = vpop.f32.mrf.mxu1 }
 0x7ab   : > { %v9773_v3 = vpop.f32.mrf.mxu3  ;;  %v4133_v13 = vpop.f32.mrf.mxu0 }
 0x7ac   : > { %v4183_v31 = vadd.f32 %v4182_v10, %v4133_v13 }
 0x7ad   : > { %4380 = vmatmul.bf16.gmra.mxu1 %v9618_v9 }
 0x7ae   : > { %4902 = vmatmul.bf16.gmra.mxu2 %v9766_v59  ;;  %v4232_v19 = vadd.f32 %v4231_v20, %v4183_v31  ;;  %v3701_v20 = vadd.f32 %v9477_v7, %v9455_v53  ;;  %v10426_v7 = vld [vmem:[#allocation13_spill] sm:$0xff] }
 0x7b0   : > { %v9779_v49 = vadd.f32 %v4232_v19, %v3745_v58  ;;  %v6426_v58 = vld [vmem:[#allocation8 + $0x190] sm:$0xf0] }
 0x7b1   : > { %v4234_v32 = vpop.f32.mrf.mxu2 }
 0x7b2   : > { %v4187_v17 = vpop.f32.mrf.mxu1 }
 0x7b3   : > { %v9781_v51 = vpop.f32.mrf.mxu3  ;;  %v4136_v29 = vpop.f32.mrf.mxu0 }
 0x7b4   : > { %v4186_v0 = vadd.f32 %v4185_v1, %v4136_v29  ;;  %v10425_v29 = vld [vmem:[#allocation47_spill] sm:$0xff] }
 0x7b6   : > { %4331 = vmatmul.bf16.gmra.mxu0 %v9620_v34  ;;  %v4235_v25 = vadd.f32 %v4234_v32, %v4186_v0  ;;  %v10423_v34 = vld [vmem:[#allocation28_spill] sm:$0xff]  ;;  %v6212_v32 = vld [vmem:[#allocation8 + $0x188] sm:$0xf] }
 0x7b7   : > { %v3750_v24 = vadd.f32 %v10423_v34, %v3701_v20  ;;  %v6213_v19 = vor.u32 %v6426_v58, %v6212_v32  ;;  %v6224_v32 = vld [vmem:[#allocation8 + $0x1a0] sm:$0xf]  ;;  %v6429_v58 = vld [vmem:[#allocation8 + $0x1a8] sm:$0xf0] }
 0x7b8   : > { %4951 = vmatmul.bf16.gmra.mxu3 %v9783_v36  ;;  %v9788_v21 = vadd.f32 %v4235_v25, %v9631_v50 }
 0x7b9   : > { %v4236_v18 = vpop.f32.mrf.mxu2 }
 0x7ba   : > { %v4346_v9 = vpop.f32.mrf.mxu1 }
 0x7bb   : > { %v9791_v43 = vpop.f32.mrf.mxu3  ;;  %v4138_v10 = vpop.f32.mrf.mxu0 }
 0x7bc   : > { %v4188_v13 = vadd.f32 %v4187_v17, %v4138_v10 }
 0x7bd   : > { %5014 = vmatmul.bf16.vlgmr.msra.gmra.mxu1 %v9633_v6 }
 0x7be   : > { %5063 = vmatmul.bf16.vlgmr.msra.gmra.mxu2 %v9643_v27  ;;  %v4237_v31 = vadd.f32 %v4236_v18, %v4188_v13 }
 0x7c0   : > { %v9797_v50 = vadd.f32 %v4237_v31, %v3750_v24  ;;  %v10427_v24 = vld [vmem:[#allocation18_spill] sm:$0xff] }
 0x7c1   : > { %v4868_v1 = vpop.f32.mrf.mxu2 }
 0x7c2   : > { %10424 = vst [vmem:[#allocation25_spill] sm:$0xff] %v9797_v50  ;;  %v4348_v63 = vpop.f32.mrf.mxu1 }
 0x7c3   : > { %v9799_v27 = vpop.f32.mrf.mxu3  ;;  %v4297_v23 = vpop.f32.mrf.mxu0 }
 0x7c4   : > { %v4298_v0 = vadd.f32 %v4297_v23, %v10425_v29  ;;  %v6225_v23 = vor.u32 %v6429_v58, %v6224_v32  ;;  %v6236_v58 = vld [vmem:[#allocation8 + $0x1b8] sm:$0xf] }
 0x7c6   : > { %4965 = vmatmul.bf16.vlgmr.msra.gmra.mxu0 %v6213_v19  ;;  %v4347_v53 = vadd.f32 %v4346_v9, %v4298_v0  ;;  %v10428_v9 = vld [vmem:[#allocation14_spill] sm:$0xff] }
 0x7c8   : > { %5112 = vmatmul.bf16.vlgmr.msra.gmra.mxu3 %v6213_v19  ;;  %v9803_v6 = vadd.f32 %v4347_v53, %v10426_v7 }
 0x7c9   : > { %v4870_v25 = vpop.f32.mrf.mxu2 }
 0x7ca   : > { %v4351_v17 = vpop.f32.mrf.mxu1 }
 0x7cb   : > { %v4917_v18 = vpop.f32.mrf.mxu3  ;;  %v4299_v20 = vpop.f32.mrf.mxu0 }
 0x7cc   : > { %v9806_v10 = vadd.f32 %v4917_v18, %v4868_v1  ;;  %v4300_v13 = vadd.f32 %v4299_v20, %v9661_v30  ;;  %v10429_v18 = vld [vmem:[#allocation19_spill] sm:$0xff] }
 0x7cd   : > { %5019 = vmatmul.bf16.gmra.mxu1 %v10427_v24 }
 0x7ce   : > { %5068 = vmatmul.bf16.gmra.mxu2 %v9663_v8  ;;  %v4349_v31 = vadd.f32 %v4348_v63, %v4300_v13 }
 0x7d0   : > { %v9811_v19 = vadd.f32 %v4349_v31, %v10428_v9  ;;  %v6432_v9 = vld [vmem:[#allocation8 + $0x1c0] sm:$0xf0] }
 0x7d1   : > { %v4873_v34 = vpop.f32.mrf.mxu2 }
 0x7d2   : > { %v4353_v29 = vpop.f32.mrf.mxu1 }
 0x7d3   : > { %v4919_v0 = vpop.f32.mrf.mxu3  ;;  %v4302_v8 = vpop.f32.mrf.mxu0 }
 0x7d4   : > { %v9813_v53 = vadd.f32 %v4919_v0, %v4870_v25  ;;  %v4303_v1 = vadd.f32 %v4302_v8, %v9673_v35  ;;  %v6237_v0 = vor.u32 %v6432_v9, %v6236_v58  ;;  %v6248_v9 = vld [vmem:[#allocation8 + $0x1d0] sm:$0xf] }
 0x7d6   : > { %4970 = vmatmul.bf16.gmra.mxu0 %v6225_v23  ;;  %v4352_v30 = vadd.f32 %v4351_v17, %v4303_v1  ;;  %v10430_v17 = vld [vmem:[#allocation20_spill] sm:$0xff] }
 0x7d8   : > { %5117 = vmatmul.bf16.gmra.mxu3 %v6225_v23  ;;  %v9817_v20 = vadd.f32 %v4352_v30, %v10429_v18 }
 0x7d9   : > { %v4875_v7 = vpop.f32.mrf.mxu2 }
 0x7da   : > { %v4356_v63 = vpop.f32.mrf.mxu1 }
 0x7db   : > { %v4922_v13 = vpop.f32.mrf.mxu3  ;;  %v4304_v31 = vpop.f32.mrf.mxu0 }
 0x7dc   : > { %v9820_v24 = vadd.f32 %v4922_v13, %v4873_v34  ;;  %v4305_v25 = vadd.f32 %v4304_v31, %v9681_v15  ;;  %v10431_v13 = vld [vmem:[#allocation17_spill] sm:$0xff] }
 0x7dd   : > { %5024 = vmatmul.bf16.gmra.mxu1 %v9666_v52 }
 0x7de   : > { %5073 = vmatmul.bf16.gmra.mxu2 %v9683_v40  ;;  %v4354_v35 = vadd.f32 %v4353_v29, %v4305_v25 }
 0x7e0   : > { %v9825_v23 = vadd.f32 %v4354_v35, %v10430_v17  ;;  %v6435_v17 = vld [vmem:[#allocation8 + $0x1d8] sm:$0xf0] }
 0x7e1   : > { %v4878_v32 = vpop.f32.mrf.mxu2 }
 0x7e2   : > { %v4358_v8 = vpop.f32.mrf.mxu1 }
 0x7e3   : > { %v4924_v1 = vpop.f32.mrf.mxu3  ;;  %v4307_v40 = vpop.f32.mrf.mxu0 }
 0x7e4   : > { %v9827_v30 = vadd.f32 %v4924_v1, %v4875_v7  ;;  %v4308_v34 = vadd.f32 %v4307_v40, %v9693_v61  ;;  %v6249_v1 = vor.u32 %v6435_v17, %v6248_v9  ;;  %v6260_v17 = vld [vmem:[#allocation8 + $0x1e8] sm:$0xf] }
 0x7e6   : > { %4975 = vmatmul.bf16.gmra.mxu0 %v6237_v0  ;;  %v4357_v15 = vadd.f32 %v4356_v63, %v4308_v34  ;;  %v10432_v63 = vld [vmem:[#allocation37_spill] sm:$0xff] }
 0x7e8   : > { %5122 = vmatmul.bf16.gmra.mxu3 %v6237_v0  ;;  %v9831_v52 = vadd.f32 %v4357_v15, %v10431_v13 }
 0x7e9   : > { %v4880_v18 = vpop.f32.mrf.mxu2 }
 0x7ea   : > { %v4361_v29 = vpop.f32.mrf.mxu1 }
 0x7eb   : > { %v4927_v31 = vpop.f32.mrf.mxu3  ;;  %v4309_v35 = vpop.f32.mrf.mxu0 }
 0x7ec   : > { %v9834_v25 = vadd.f32 %v4927_v31, %v4878_v32  ;;  %v4310_v7 = vadd.f32 %v4309_v35, %v9701_v48  ;;  %v10433_v31 = vld [vmem:[#allocation39_spill] sm:$0xff] }
 0x7ed   : > { %5029 = vmatmul.bf16.gmra.mxu1 %v9686_v37 }
 0x7ee   : > { %5078 = vmatmul.bf16.gmra.mxu2 %v9703_v2  ;;  %v4359_v61 = vadd.f32 %v4358_v8, %v4310_v7 }
 0x7f0   : > { %v9839_v0 = vadd.f32 %v4359_v61, %v10432_v63  ;;  %v6438_v63 = vld [vmem:[#allocation8 + $0x1f0] sm:$0xf0] }
 0x7f1   : > { %v4883_v58 = vpop.f32.mrf.mxu2 }
 0x7f2   : > { %v4363_v40 = vpop.f32.mrf.mxu1 }
 0x7f3   : > { %v4929_v34 = vpop.f32.mrf.mxu3  ;;  %v4312_v2 = vpop.f32.mrf.mxu0 }
 0x7f4   : > { %v9841_v15 = vadd.f32 %v4929_v34, %v4880_v18  ;;  %v4313_v32 = vadd.f32 %v4312_v2, %v9713_v5  ;;  %v6261_v34 = vor.u32 %v6438_v63, %v6260_v17  ;;  %v6272_v63 = vld [vmem:[#allocation8 + $0x200] sm:$0xf] }
 0x7f6   : > { %4980 = vmatmul.bf16.gmra.mxu0 %v6249_v1  ;;  %v4362_v48 = vadd.f32 %v4361_v29, %v4313_v32  ;;  %v10434_v29 = vld [vmem:[#allocation32_spill] sm:$0xff] }
 0x7f8   : > { %5127 = vmatmul.bf16.gmra.mxu3 %v6249_v1  ;;  %v9845_v37 = vadd.f32 %v4362_v48, %v10433_v31 }
 0x7f9   : > { %v4885_v13 = vpop.f32.mrf.mxu2 }
 0x7fa   : > { %v4366_v8 = vpop.f32.mrf.mxu1 }
 0x7fb   : > { %v4932_v35 = vpop.f32.mrf.mxu3  ;;  %v4314_v61 = vpop.f32.mrf.mxu0 }
 0x7fc   : > { %v9848_v7 = vadd.f32 %v4932_v35, %v4883_v58  ;;  %v4315_v18 = vadd.f32 %v4314_v61, %v9721_v42  ;;  %v10435_v35 = vld [vmem:[#allocation36_spill] sm:$0xff] }
 0x7fd   : > { %5034 = vmatmul.bf16.gmra.mxu1 %v9706_v41 }
 0x7fe   : > { %5083 = vmatmul.bf16.gmra.mxu2 %v9723_v26  ;;  %v4364_v5 = vadd.f32 %v4363_v40, %v4315_v18 }
 0x800   : > { %v9853_v1 = vadd.f32 %v4364_v5, %v10434_v29  ;;  %v6441_v29 = vld [vmem:[#allocation8 + $0x208] sm:$0xf0] }
 0x801   : > { %v4888_v9 = vpop.f32.mrf.mxu2 }
 0x802   : > { %v4368_v2 = vpop.f32.mrf.mxu1 }
 0x803   : > { %v4934_v32 = vpop.f32.mrf.mxu3  ;;  %v4317_v26 = vpop.f32.mrf.mxu0 }
 0x804   : > { %v9855_v48 = vadd.f32 %v4934_v32, %v4885_v13  ;;  %v4318_v58 = vadd.f32 %v4317_v26, %v9733_v16  ;;  %v6273_v32 = vor.u32 %v6441_v29, %v6272_v63  ;;  %v6284_v29 = vld [vmem:[#allocation8 + $0x218] sm:$0xf] }
 0x806   : > { %4985 = vmatmul.bf16.gmra.mxu0 %v6261_v34  ;;  %v4367_v42 = vadd.f32 %v4366_v8, %v4318_v58  ;;  %v10436_v8 = vld [vmem:[#allocation33_spill] sm:$0xff] }
 0x808   : > { %5132 = vmatmul.bf16.gmra.mxu3 %v6261_v34  ;;  %v9859_v41 = vadd.f32 %v4367_v42, %v10435_v35 }
 0x809   : > { %v4890_v31 = vpop.f32.mrf.mxu2 }
 0x80a   : > { %v4371_v40 = vpop.f32.mrf.mxu1 }
 0x80b   : > { %v4937_v61 = vpop.f32.mrf.mxu3  ;;  %v4319_v5 = vpop.f32.mrf.mxu0 }
 0x80c   : > { %v9862_v18 = vadd.f32 %v4937_v61, %v4888_v9  ;;  %v4320_v13 = vadd.f32 %v4319_v5, %v9741_v39  ;;  %v10437_v61 = vld [vmem:[#allocation15_spill] sm:$0xff] }
 0x80d   : > { %5039 = vmatmul.bf16.gmra.mxu1 %v9726_v57 }
 0x80e   : > { %5088 = vmatmul.bf16.gmra.mxu2 %v9743_v56  ;;  %v4369_v16 = vadd.f32 %v4368_v2, %v4320_v13 }
 0x810   : > { %v9867_v34 = vadd.f32 %v4369_v16, %v10436_v8  ;;  %v6444_v8 = vld [vmem:[#allocation8 + $0x220] sm:$0xf0] }
 0x811   : > { %v4893_v17 = vpop.f32.mrf.mxu2 }
 0x812   : > { %v4373_v26 = vpop.f32.mrf.mxu1 }
 0x813   : > { %v4939_v58 = vpop.f32.mrf.mxu3  ;;  %v4322_v56 = vpop.f32.mrf.mxu0 }
 0x814   : > { %v9869_v42 = vadd.f32 %v4939_v58, %v4890_v31  ;;  %v4323_v9 = vadd.f32 %v4322_v56, %v9753_v22  ;;  %v6285_v58 = vor.u32 %v6444_v8, %v6284_v29  ;;  %v6296_v8 = vld [vmem:[#allocation8 + $0x230] sm:$0xf] }
 0x816   : > { %4990 = vmatmul.bf16.gmra.mxu0 %v6273_v32  ;;  %v4372_v39 = vadd.f32 %v4371_v40, %v4323_v9  ;;  %v10438_v40 = vld [vmem:[#allocation21_spill] sm:$0xff] }
 0x818   : > { %5137 = vmatmul.bf16.gmra.mxu3 %v6273_v32  ;;  %v9873_v57 = vadd.f32 %v4372_v39, %v10437_v61 }
 0x819   : > { %v4895_v35 = vpop.f32.mrf.mxu2 }
 0x81a   : > { %v4376_v2 = vpop.f32.mrf.mxu1 }
 0x81b   : > { %v4942_v5 = vpop.f32.mrf.mxu3  ;;  %v4324_v16 = vpop.f32.mrf.mxu0 }
 0x81c   : > { %v9876_v13 = vadd.f32 %v4942_v5, %v4893_v17  ;;  %v4325_v31 = vadd.f32 %v4324_v16, %v9761_v45  ;;  %v10439_v5 = vld [vmem:[#allocation38_spill] sm:$0xff] }
 0x81d   : > { %5044 = vmatmul.bf16.gmra.mxu1 %v9746_v46 }
 0x81e   : > { %5093 = vmatmul.bf16.gmra.mxu2 %v9763_v28  ;;  %v4374_v22 = vadd.f32 %v4373_v26, %v4325_v31 }
 0x820   : > { %v9881_v32 = vadd.f32 %v4374_v22, %v10438_v40  ;;  %v6447_v40 = vld [vmem:[#allocation8 + $0x238] sm:$0xf0] }
 0x821   : > { %v4898_v63 = vpop.f32.mrf.mxu2 }
 0x822   : > { %v4378_v56 = vpop.f32.mrf.mxu1 }
 0x823   : > { %v4944_v9 = vpop.f32.mrf.mxu3  ;;  %v4327_v28 = vpop.f32.mrf.mxu0 }
 0x824   : > { %v9883_v39 = vadd.f32 %v4944_v9, %v4895_v35  ;;  %v4328_v17 = vadd.f32 %v4327_v28, %v9773_v3  ;;  %v6297_v9 = vor.u32 %v6447_v40, %v6296_v8 }
 0x826   : > { %4995 = vmatmul.bf16.gmra.mxu0 %v6285_v58  ;;  %v4377_v45 = vadd.f32 %v4376_v2, %v4328_v17  ;;  %v10440_v2 = vld [vmem:[#allocation24_spill] sm:$0xff] }
 0x828   : > { %5142 = vmatmul.bf16.gmra.mxu3 %v6285_v58  ;;  %v9887_v46 = vadd.f32 %v4377_v45, %v10439_v5 }
 0x829   : > { %v4900_v61 = vpop.f32.mrf.mxu2 }
 0x82a   : > { %v4381_v26 = vpop.f32.mrf.mxu1 }
 0x82b   : > { %v4947_v16 = vpop.f32.mrf.mxu3  ;;  %v4329_v22 = vpop.f32.mrf.mxu0 }
 0x82c   : > { %v9890_v31 = vadd.f32 %v4947_v16, %v4898_v63  ;;  %v4330_v35 = vadd.f32 %v4329_v22, %v9781_v51  ;;  %v10441_v16 = vld [vmem:[#allocation29_spill] sm:$0xff] }
 0x82d   : > { %5049 = vmatmul.bf16.gmra.mxu1 %v9766_v59 }
 0x82e   : > { %5098 = vmatmul.bf16.gmra.mxu2 %v9783_v36  ;;  %v4379_v3 = vadd.f32 %v4378_v56, %v4330_v35 }
 0x830   : > { %v9895_v58 = vadd.f32 %v4379_v3, %v10440_v2  ;;  %v10443_v2 = vld [vmem:[#allocation40_spill] sm:$0xff] }
 0x831   : > { %v4903_v29 = vpop.f32.mrf.mxu2 }
 0x832   : > { %v4383_v28 = vpop.f32.mrf.mxu1 }
 0x833   : > { %v4949_v17 = vpop.f32.mrf.mxu3  ;;  %v4332_v36 = vpop.f32.mrf.mxu0 }
 0x834   : > { %v9897_v45 = vadd.f32 %v4949_v17, %v4900_v61  ;;  %v4333_v63 = vadd.f32 %v4332_v36, %v9791_v43 }
 0x836   : > { %5000 = vmatmul.bf16.gmra.mxu0 %v6297_v9  ;;  %v4382_v51 = vadd.f32 %v4381_v26, %v4333_v63 }
 0x838   : > { %5147 = vmatmul.bf16.gmra.mxu3 %v6297_v9  ;;  %v9901_v59 = vadd.f32 %v4382_v51, %v10441_v16 }
 0x839   : > { %v4905_v5 = vpop.f32.mrf.mxu2 }
 0x83a   : > { %10442 = vst [vmem:[#allocation23_spill] sm:$0xff] %v9901_v59  ;;  %v5015_v56 = vpop.f32.mrf.mxu1 }
 0x83b   : > { %v4952_v22 = vpop.f32.mrf.mxu3  ;;  %v4334_v3 = vpop.f32.mrf.mxu0 }
 0x83c   : > { %v9903_v35 = vadd.f32 %v4952_v22, %v4903_v29  ;;  %v4335_v8 = vadd.f32 %v4334_v3, %v9799_v27  ;;  %v10445_v29 = vld [vmem:[#allocation31_spill] sm:$0xff]  ;;  %v5300_v22 = vpop.permute.xlu0 %5299 }
 0x83e   : > { %v4384_v40 = vadd.f32 %v4383_v28, %v4335_v8  ;;  %v6529_v28 = vld [vmem:[%s6867_s16] sm:$0xff] }
 0x840   : > { %v9907_v17 = vadd.f32 %v4384_v40, %v10443_v2 }
 0x841   : > { %v5064_v61 = vpop.f32.mrf.mxu2 }
 0x842   : > { %10444 = vst [vmem:[#allocation43_spill] sm:$0xff] %v9907_v17  ;;  %v5017_v43 = vpop.f32.mrf.mxu1  ;;  %v5065_v50 = vadd.f32 %v5064_v61, %v5015_v56  ;;  %v5305_v61 = vpop.permute.xlu1 %5304 }
 0x843   : > { %v4954_v36 = vpop.f32.mrf.mxu3  ;;  %v4966_v9 = vpop.f32.mrf.mxu0 }
 0x844   : > { %v9909_v26 = vadd.f32 %v4954_v36, %v4905_v5  ;;  %v4967_v63 = vadd.f32 %v4966_v9, %v9806_v10 }
 0x846   : > { %v5185_v16 = vadd.f32 %v4967_v63, %v10445_v29 }
 0x848   : > { %v5377_v59 = vadd.f32 %v5300_v22, %v5185_v16 }
 0x849   : > { %v5066_v51 = vpop.f32.mrf.mxu2 }
 0x84a   : > { %v5020_v27 = vpop.f32.mrf.mxu1  ;;  %v5409_v3 = vadd.f32 %v6529_v28, %v5377_v59  ;;  %v5067_v29 = vadd.f32 %v5066_v51, %v5017_v43  ;;  %v5310_v43 = vpop.permute.xlu2 %5309 }
 0x84b   : > { %v5113_v8 = vpop.f32.mrf.mxu3  ;;  %v4968_v2 = vpop.f32.mrf.mxu0 }
 0x84c   : > { %v5114_v40 = vadd.f32 %v5113_v8, %v5065_v50  ;;  %v5441_v5 = vmax.f32 %v5409_v3, 0.0  ;;  %v4969_v36 = vadd.f32 %v4968_v2, %v9813_v53  ;;  %v6530_v50 = vld [vmem:[%s6867_s16 + $0x8] sm:$0xff]  ;;  %v6531_v53 = vld [vmem:[%s6867_s16 + $0x10] sm:$0xff] }
 0x84e   : > { %v5186_v10 = vadd.f32 %v5114_v40, %v9803_v6  ;;  %5473 = vst [vmem:[%s9918_s12] sm:$0xff] %v5441_v5  ;;  %v5187_v56 = vadd.f32 %v4969_v36, %v9659_v12 }
 0x850   : > { %v5378_v59 = vadd.f32 %v5300_v22, %v5186_v10  ;;  %v5379_v9 = vadd.f32 %v5305_v61, %v5187_v56 }
 0x851   : > { %v5069_v17 = vpop.f32.mrf.mxu2 }
 0x852   : > { %v5410_v63 = vadd.f32 %v6530_v50, %v5378_v59  ;;  %v5022_v16 = vpop.f32.mrf.mxu1  ;;  %v5411_v28 = vadd.f32 %v6531_v53, %v5379_v9  ;;  %v5070_v10 = vadd.f32 %v5069_v17, %v5020_v27  ;;  %v6532_v59 = vld [vmem:[%s6867_s16 + $0x18] sm:$0xff] }
 0x853   : > { %v5115_v6 = vpop.f32.mrf.mxu3  ;;  %v4971_v40 = vpop.f32.mrf.mxu0 }
 0x854   : > { %v5442_v3 = vmax.f32 %v5410_v63, 0.0  ;;  %v5116_v8 = vadd.f32 %v5115_v6, %v5067_v29  ;;  %v5443_v2 = vmax.f32 %v5411_v28, 0.0  ;;  %v4972_v12 = vadd.f32 %v4971_v40, %v9820_v24  ;;  %v6533_v63 = vld [vmem:[%s6867_s16 + $0x20] sm:$0xff] }
 0x856   : > { %5474 = vst [vmem:[%s9918_s12 + $0x8] sm:$0xff] %v5442_v3  ;;  %v5188_v22 = vadd.f32 %v5116_v8, %v9811_v19  ;;  %v5189_v36 = vadd.f32 %v4972_v12, %v9670_v4 }
 0x857   : > { %5475 = vst [vmem:[%s9918_s12 + $0x10] sm:$0xff] %v5443_v2  ;;  %v6534_v2 = vld [vmem:[%s6867_s16 + $0x28] sm:$0xff] }
 0x858   : > { %v5380_v51 = vadd.f32 %v5305_v61, %v5188_v22  ;;  %v5381_v56 = vadd.f32 %v5310_v43, %v5189_v36  ;;  %v5315_v61 = vpop.permute.xlu0 %5314 }
 0x859   : > { %v5071_v5 = vpop.f32.mrf.mxu2 }
 0x85a   : > { %v5412_v9 = vadd.f32 %v6532_v59, %v5380_v51  ;;  %v5025_v50 = vpop.f32.mrf.mxu1  ;;  %v5413_v29 = vadd.f32 %v6533_v63, %v5381_v56  ;;  %v5072_v22 = vadd.f32 %v5071_v5, %v5022_v16  ;;  %v6535_v51 = vld [vmem:[%s6867_s16 + $0x30] sm:$0xff]  ;;  %v5320_v16 = vpop.permute.xlu1 %5319 }
 0x85b   : > { %v5118_v24 = vpop.f32.mrf.mxu3  ;;  %v4973_v19 = vpop.f32.mrf.mxu0 }
 0x85c   : > { %v5444_v53 = vmax.f32 %v5412_v9, 0.0  ;;  %v5119_v28 = vadd.f32 %v5118_v24, %v5070_v10  ;;  %v5445_v6 = vmax.f32 %v5413_v29, 0.0  ;;  %v4974_v4 = vadd.f32 %v4973_v19, %v9827_v30 }
 0x85e   : > { %5476 = vst [vmem:[%s9918_s12 + $0x18] sm:$0xff] %v5444_v53  ;;  %v5190_v17 = vadd.f32 %v5119_v28, %v9817_v20  ;;  %v5191_v27 = vadd.f32 %v4974_v4, %v9679_v44  ;;  %v6536_v28 = vld [vmem:[%s6867_s16 + $0x38] sm:$0xff]  ;;  %v6537_v4 = vld [vmem:[%s6867_s16 + $0x40] sm:$0xff] }
 0x85f   : > { %5477 = vst [vmem:[%s9918_s12 + $0x20] sm:$0xff] %v5445_v6 }
 0x860   : > { %v5382_v8 = vadd.f32 %v5310_v43, %v5190_v17  ;;  %v5383_v40 = vadd.f32 %v5315_v61, %v5191_v27 }
 0x861   : > { %v5074_v3 = vpop.f32.mrf.mxu2 }
 0x862   : > { %v5414_v12 = vadd.f32 %v6534_v2, %v5382_v8  ;;  %v5027_v36 = vpop.f32.mrf.mxu1  ;;  %v5415_v10 = vadd.f32 %v6535_v51, %v5383_v40  ;;  %v5075_v24 = vadd.f32 %v5074_v3, %v5025_v50  ;;  %v6538_v51 = vld [vmem:[%s6867_s16 + $0x48] sm:$0xff] }
 0x863   : > { %v5120_v30 = vpop.f32.mrf.mxu3  ;;  %v4976_v20 = vpop.f32.mrf.mxu0 }
 0x864   : > { %v5446_v56 = vmax.f32 %v5414_v12, 0.0  ;;  %v5121_v59 = vadd.f32 %v5120_v30, %v5072_v22  ;;  %v5447_v9 = vmax.f32 %v5415_v10, 0.0  ;;  %v4977_v44 = vadd.f32 %v4976_v20, %v9834_v25 }
 0x866   : > { %5478 = vst [vmem:[%s9918_s12 + $0x28] sm:$0xff] %v5446_v56  ;;  %v5192_v43 = vadd.f32 %v5121_v59, %v9825_v23  ;;  %v5193_v29 = vadd.f32 %v4977_v44, %v9690_v33  ;;  %v6539_v59 = vld [vmem:[%s6867_s16 + $0x50] sm:$0xff] }
 0x867   : > { %5479 = vst [vmem:[%s9918_s12 + $0x30] sm:$0xff] %v5447_v9 }
 0x868   : > { %v5384_v5 = vadd.f32 %v5315_v61, %v5192_v43  ;;  %v5385_v53 = vadd.f32 %v5320_v16, %v5193_v29  ;;  %v5325_v61 = vpop.permute.xlu2 %5324 }
 0x869   : > { %v5076_v63 = vpop.f32.mrf.mxu2 }
 0x86a   : > { %v5416_v19 = vadd.f32 %v6536_v28, %v5384_v5  ;;  %v5030_v6 = vpop.f32.mrf.mxu1  ;;  %v5417_v17 = vadd.f32 %v6537_v4, %v5385_v53  ;;  %v5077_v30 = vadd.f32 %v5076_v63, %v5027_v36  ;;  %v5330_v36 = vpop.permute.xlu0 %5329  ;;  %v6540_v28 = vld [vmem:[%s6867_s16 + $0x58] sm:$0xff] }
 0x86b   : > { %v5123_v25 = vpop.f32.mrf.mxu3  ;;  %v4978_v23 = vpop.f32.mrf.mxu0 }
 0x86c   : > { %v5448_v27 = vmax.f32 %v5416_v19, 0.0  ;;  %v5124_v8 = vadd.f32 %v5123_v25, %v5075_v24  ;;  %v5449_v40 = vmax.f32 %v5417_v17, 0.0  ;;  %v4979_v33 = vadd.f32 %v4978_v23, %v9841_v15  ;;  %v6541_v17 = vld [vmem:[%s6867_s16 + $0x60] sm:$0xff] }
 0x86e   : > { %5480 = vst [vmem:[%s9918_s12 + $0x38] sm:$0xff] %v5448_v27  ;;  %v5194_v50 = vadd.f32 %v5124_v8, %v9831_v52  ;;  %v5195_v3 = vadd.f32 %v4979_v33, %v9699_v60 }
 0x86f   : > { %5481 = vst [vmem:[%s9918_s12 + $0x40] sm:$0xff] %v5449_v40 }
 0x870   : > { %v5386_v12 = vadd.f32 %v5320_v16, %v5194_v50  ;;  %v5387_v22 = vadd.f32 %v5325_v61, %v5195_v3 }
 0x871   : > { %v5079_v2 = vpop.f32.mrf.mxu2 }
 0x872   : > { %v5418_v10 = vadd.f32 %v6538_v51, %v5386_v12  ;;  %v5032_v56 = vpop.f32.mrf.mxu1  ;;  %v5419_v20 = vadd.f32 %v6539_v59, %v5387_v22  ;;  %v5080_v24 = vadd.f32 %v5079_v2, %v5030_v6  ;;  %v5335_v2 = vpop.permute.xlu1 %5334 }
 0x873   : > { %v5125_v15 = vpop.f32.mrf.mxu3  ;;  %v4981_v52 = vpop.f32.mrf.mxu0 }
 0x874   : > { %v5450_v9 = vmax.f32 %v5418_v10, 0.0  ;;  %v5126_v44 = vadd.f32 %v5125_v15, %v5077_v30  ;;  %v5451_v43 = vmax.f32 %v5419_v20, 0.0  ;;  %v4982_v60 = vadd.f32 %v4981_v52, %v9848_v7  ;;  %v6543_v10 = vld [vmem:[%s6867_s16 + $0x70] sm:$0xff] }
 0x876   : > { %5482 = vst [vmem:[%s9918_s12 + $0x48] sm:$0xff] %v5450_v9  ;;  %v5196_v16 = vadd.f32 %v5126_v44, %v9839_v0  ;;  %v5197_v5 = vadd.f32 %v4982_v60, %v9710_v55 }
 0x877   : > { %5483 = vst [vmem:[%s9918_s12 + $0x50] sm:$0xff] %v5451_v43 }
 0x878   : > { %v5388_v63 = vadd.f32 %v5325_v61, %v5196_v16  ;;  %v5389_v53 = vadd.f32 %v5330_v36, %v5197_v5  ;;  %v6542_v61 = vld [vmem:[%s6867_s16 + $0x68] sm:$0xff]  ;;  %v6544_v16 = vld [vmem:[%s6867_s16 + $0x78] sm:$0xff] }
 0x879   : > { %v5081_v29 = vpop.f32.mrf.mxu2 }
 0x87a   : > { %v5420_v19 = vadd.f32 %v6540_v28, %v5388_v63  ;;  %v5035_v4 = vpop.f32.mrf.mxu1  ;;  %v5421_v25 = vadd.f32 %v6541_v17, %v5389_v53  ;;  %v5082_v22 = vadd.f32 %v5081_v29, %v5032_v56  ;;  %v5340_v56 = vpop.permute.xlu2 %5339 }
 0x87b   : > { %v5128_v7 = vpop.f32.mrf.mxu3  ;;  %v4983_v0 = vpop.f32.mrf.mxu0 }
 0x87c   : > { %v5452_v27 = vmax.f32 %v5420_v19, 0.0  ;;  %v5129_v8 = vadd.f32 %v5128_v7, %v5080_v24  ;;  %v5453_v23 = vmax.f32 %v5421_v25, 0.0  ;;  %v4984_v55 = vadd.f32 %v4983_v0, %v9855_v48  ;;  %v5345_v7 = vpop.permute.xlu0 %5344  ;;  %v6546_v0 = vld [vmem:[%s6867_s16 + $0x88] sm:$0xff] }
 0x87e   : > { %5484 = vst [vmem:[%s9918_s12 + $0x58] sm:$0xff] %v5452_v27  ;;  %v5198_v6 = vadd.f32 %v5129_v8, %v9845_v37  ;;  %v5199_v33 = vadd.f32 %v4984_v55, %v9719_v54 }
 0x87f   : > { %5485 = vst [vmem:[%s9918_s12 + $0x60] sm:$0xff] %v5453_v23 }
 0x880   : > { %v5390_v50 = vadd.f32 %v5330_v36, %v5198_v6  ;;  %v5391_v3 = vadd.f32 %v5335_v2, %v5199_v33  ;;  %v6545_v36 = vld [vmem:[%s6867_s16 + $0x80] sm:$0xff] }
 0x881   : > { %v5084_v40 = vpop.f32.mrf.mxu2 }
 0x882   : > { %v5422_v12 = vadd.f32 %v6542_v61, %v5390_v50  ;;  %v5037_v51 = vpop.f32.mrf.mxu1  ;;  %v5423_v30 = vadd.f32 %v6543_v10, %v5391_v3  ;;  %v5085_v60 = vadd.f32 %v5084_v40, %v5035_v4  ;;  %v6547_v40 = vld [vmem:[%s6867_s16 + $0x90] sm:$0xff] }
 0x883   : > { %v5130_v48 = vpop.f32.mrf.mxu3  ;;  %v4986_v37 = vpop.f32.mrf.mxu0 }
 0x884   : > { %v5454_v59 = vmax.f32 %v5422_v12, 0.0  ;;  %v5131_v20 = vadd.f32 %v5130_v48, %v5082_v22  ;;  %v5455_v15 = vmax.f32 %v5423_v30, 0.0  ;;  %v4987_v54 = vadd.f32 %v4986_v37, %v9862_v18  ;;  %v6549_v37 = vld [vmem:[%s6867_s16 + $0xa0] sm:$0xff] }
 0x886   : > { %5486 = vst [vmem:[%s9918_s12 + $0x68] sm:$0xff] %v5454_v59  ;;  %v5200_v44 = vadd.f32 %v5131_v20, %v9853_v1  ;;  %v5201_v52 = vadd.f32 %v4987_v54, %v9730_v11  ;;  %v6548_v59 = vld [vmem:[%s6867_s16 + $0x98] sm:$0xff] }
 0x887   : > { %5487 = vst [vmem:[%s9918_s12 + $0x70] sm:$0xff] %v5455_v15 }
 0x888   : > { %v5392_v43 = vadd.f32 %v5335_v2, %v5200_v44  ;;  %v5393_v29 = vadd.f32 %v5340_v56, %v5201_v52 }
 0x889   : > { %v5086_v9 = vpop.f32.mrf.mxu2 }
 0x88a   : > { %v5424_v5 = vadd.f32 %v6544_v16, %v5392_v43  ;;  %v5425_v63 = vadd.f32 %v6545_v36, %v5393_v29  ;;  %v5040_v1 = vpop.f32.mrf.mxu1  ;;  %v5087_v55 = vadd.f32 %v5086_v9, %v5037_v51  ;;  %v5350_v51 = vpop.permute.xlu1 %5349  ;;  %v6550_v36 = vld [vmem:[%s6867_s16 + $0xa8] sm:$0xff] }
 0x88b   : > { %v5133_v24 = vpop.f32.mrf.mxu3  ;;  %v4988_v28 = vpop.f32.mrf.mxu0 }
 0x88c   : > { %v5456_v18 = vmax.f32 %v5424_v5, 0.0  ;;  %v5134_v53 = vadd.f32 %v5133_v24, %v5085_v60  ;;  %v5457_v19 = vmax.f32 %v5425_v63, 0.0  ;;  %v4989_v11 = vadd.f32 %v4988_v28, %v9869_v42  ;;  %v5355_v43 = vpop.permute.xlu2 %5354 }
 0x88e   : > { %5488 = vst [vmem:[%s9918_s12 + $0x78] sm:$0xff] %v5456_v18  ;;  %v5202_v4 = vadd.f32 %v5134_v53, %v9859_v41  ;;  %v5203_v25 = vadd.f32 %v4989_v11, %v9739_v47  ;;  %v6551_v18 = vld [vmem:[%s6867_s16 + $0xb0] sm:$0xff] }
 0x88f   : > { %5489 = vst [vmem:[%s9918_s12 + $0x80] sm:$0xff] %v5457_v19 }
 0x890   : > { %v5394_v27 = vadd.f32 %v5340_v56, %v5202_v4  ;;  %v5395_v8 = vadd.f32 %v5345_v7, %v5203_v25  ;;  %v5360_v4 = vpop.permute.xlu0 %5359 }
 0x891   : > { %v5089_v17 = vpop.f32.mrf.mxu2 }
 0x892   : > { %v5426_v23 = vadd.f32 %v6546_v0, %v5394_v27  ;;  %v5427_v6 = vadd.f32 %v6547_v40, %v5395_v8  ;;  %v5042_v61 = vpop.f32.mrf.mxu1  ;;  %v5090_v30 = vadd.f32 %v5089_v17, %v5040_v1  ;;  %v6552_v8 = vld [vmem:[%s6867_s16 + $0xb8] sm:$0xff] }
 0x893   : > { %v5135_v33 = vpop.f32.mrf.mxu3  ;;  %v4991_v50 = vpop.f32.mrf.mxu0 }
 0x894   : > { %v5458_v42 = vmax.f32 %v5426_v23, 0.0  ;;  %v5136_v2 = vadd.f32 %v5135_v33, %v5087_v55  ;;  %v5459_v41 = vmax.f32 %v5427_v6, 0.0  ;;  %v4992_v3 = vadd.f32 %v4991_v50, %v9876_v13  ;;  %v6553_v55 = vld [vmem:[%s6867_s16 + $0xc0] sm:$0xff] }
 0x896   : > { %5490 = vst [vmem:[%s9918_s12 + $0x88] sm:$0xff] %v5458_v42  ;;  %v5204_v47 = vadd.f32 %v5136_v2, %v9867_v34  ;;  %v5205_v12 = vadd.f32 %v4992_v3, %v9750_v62  ;;  %v5365_v3 = vpop.permute.xlu1 %5364 }
 0x897   : > { %5491 = vst [vmem:[%s9918_s12 + $0x90] sm:$0xff] %v5459_v41 }
 0x898   : > { %v5396_v10 = vadd.f32 %v5345_v7, %v5204_v47  ;;  %v5397_v48 = vadd.f32 %v5350_v51, %v5205_v12  ;;  %v6554_v12 = vld [vmem:[%s6867_s16 + $0xc8] sm:$0xff] }
 0x899   : > { %v5091_v22 = vpop.f32.mrf.mxu2 }
 0x89a   : > { %v5428_v20 = vadd.f32 %v6548_v59, %v5396_v10  ;;  %v5429_v15 = vadd.f32 %v6549_v37, %v5397_v48  ;;  %v5045_v29 = vpop.f32.mrf.mxu1  ;;  %v5092_v24 = vadd.f32 %v5091_v22, %v5042_v61  ;;  %v6555_v10 = vld [vmem:[%s6867_s16 + $0xd0] sm:$0xff] }
 0x89b   : > { %v5138_v13 = vpop.f32.mrf.mxu3  ;;  %v4993_v34 = vpop.f32.mrf.mxu0 }
 0x89c   : > { %v5460_v54 = vmax.f32 %v5428_v20, 0.0  ;;  %v5139_v9 = vadd.f32 %v5138_v13, %v5090_v30  ;;  %v5461_v44 = vmax.f32 %v5429_v15, 0.0  ;;  %v4994_v62 = vadd.f32 %v4993_v34, %v9883_v39 }
 0x89e   : > { %5492 = vst [vmem:[%s9918_s12 + $0x98] sm:$0xff] %v5460_v54  ;;  %v5206_v52 = vadd.f32 %v5139_v9, %v9873_v57  ;;  %v5207_v56 = vadd.f32 %v4994_v62, %v9759_v14  ;;  %v5370_v9 = vpop.permute.xlu2 %5369 }
 0x89f   : > { %5493 = vst [vmem:[%s9918_s12 + $0xa0] sm:$0xff] %v5461_v44 }
 0x8a0   : > { %v5398_v60 = vadd.f32 %v5350_v51, %v5206_v52  ;;  %v5399_v16 = vadd.f32 %v5355_v43, %v5207_v56  ;;  %v6556_v52 = vld [vmem:[%s6867_s16 + $0xd8] sm:$0xff] }
 0x8a1   : > { %v5094_v5 = vpop.f32.mrf.mxu2 }
 0x8a2   : > { %v5430_v63 = vadd.f32 %v6550_v36, %v5398_v60  ;;  %v5431_v53 = vadd.f32 %v6551_v18, %v5399_v16  ;;  %v5095_v7 = vadd.f32 %v5094_v5, %v5045_v29  ;;  %v5047_v23 = vpop.f32.mrf.mxu1 }
 0x8a3   : > { %v5140_v39 = vpop.f32.mrf.mxu3  ;;  %v4996_v1 = vpop.f32.mrf.mxu0 }
 0x8a4   : > { %v5462_v28 = vmax.f32 %v5430_v63, 0.0  ;;  %v5141_v57 = vadd.f32 %v5140_v39, %v5092_v24  ;;  %v5463_v19 = vmax.f32 %v5431_v53, 0.0  ;;  %v4997_v14 = vadd.f32 %v4996_v1, %v9890_v31  ;;  %v10447_v24 = vld [vmem:[#allocation25_spill] sm:$0xff] }
 0x8a6   : > { %5494 = vst [vmem:[%s9918_s12 + $0xa8] sm:$0xff] %v5462_v28  ;;  %v5208_v11 = vadd.f32 %v5141_v57, %v9881_v32  ;;  %v5209_v17 = vadd.f32 %v4997_v14, %v9770_v38  ;;  %v5375_v28 = vpop.permute.xlu0 %5374 }
 0x8a7   : > { %5495 = vst [vmem:[%s9918_s12 + $0xb0] sm:$0xff] %v5463_v19  ;;  %v6558_v19 = vld [vmem:[%s6867_s16 + $0xe8] sm:$0xff] }
 0x8a8   : > { %v5400_v25 = vadd.f32 %v5355_v43, %v5208_v11  ;;  %v5401_v27 = vadd.f32 %v5360_v4, %v5209_v17  ;;  %v6557_v43 = vld [vmem:[%s6867_s16 + $0xe0] sm:$0xff] }
 0x8a9   : > { %v5096_v31 = vpop.f32.mrf.mxu2 }
 0x8aa   : > { %v5432_v0 = vadd.f32 %v6552_v8, %v5400_v25  ;;  %v5433_v40 = vadd.f32 %v6553_v55, %v5401_v27  ;;  %v5097_v51 = vadd.f32 %v5096_v31, %v5047_v23  ;;  %v10448_v8 = vld [vmem:[#allocation43_spill] sm:$0xff]  ;;  %v6560_v55 = vld [vmem:[%s6867_s16 + $0xf8] sm:$0xff] }
 0x8ab   : > { %v5143_v6 = vpop.f32.mrf.mxu3  ;;  %v4998_v42 = vpop.f32.mrf.mxu0 }
 0x8ac   : > { %v5464_v33 = vmax.f32 %v5432_v0, 0.0  ;;  %v5144_v32 = vadd.f32 %v5143_v6, %v5095_v7  ;;  %v5465_v2 = vmax.f32 %v5433_v40, 0.0  ;;  %v4999_v38 = vadd.f32 %v4998_v42, %v9897_v45 }
 0x8ae   : > { %5496 = vst [vmem:[%s9918_s12 + $0xb8] sm:$0xff] %v5464_v33  ;;  %v5210_v50 = vadd.f32 %v5144_v32, %v9887_v46  ;;  %v5211_v41 = vadd.f32 %v4999_v38, %v9779_v49  ;;  %v5050_v49 = vpop.f32.mrf.mxu1 }
 0x8af   : > { %5497 = vst [vmem:[%s9918_s12 + $0xc0] sm:$0xff] %v5465_v2 }
 0x8b0   : > { %v5402_v47 = vadd.f32 %v5360_v4, %v5210_v50  ;;  %v5403_v61 = vadd.f32 %v5365_v3, %v5211_v41 }
 0x8b1   : > { %v5099_v15 = vpop.f32.mrf.mxu2 }
 0x8b2   : > { %v5434_v22 = vadd.f32 %v6554_v12, %v5402_v47  ;;  %v5435_v30 = vadd.f32 %v6555_v10, %v5403_v61  ;;  %v5100_v44 = vadd.f32 %v5099_v15, %v5050_v49 }
 0x8b3   : > { %v5145_v48 = vpop.f32.mrf.mxu3  ;;  %v5001_v20 = vpop.f32.mrf.mxu0 }
 0x8b4   : > { %v5466_v59 = vmax.f32 %v5434_v22, 0.0  ;;  %v5146_v45 = vadd.f32 %v5145_v48, %v5097_v51  ;;  %v5467_v46 = vmax.f32 %v5435_v30, 0.0  ;;  %v5002_v37 = vadd.f32 %v5001_v20, %v9903_v35 }
 0x8b6   : > { %5498 = vst [vmem:[%s9918_s12 + $0xc8] sm:$0xff] %v5466_v59  ;;  %v5212_v13 = vadd.f32 %v5146_v45, %v9895_v58  ;;  %v5213_v54 = vadd.f32 %v5002_v37, %v9788_v21  ;;  %v10446_v21 = vld [vmem:[#allocation23_spill] sm:$0xff]  ;;  %v5052_v53 = vpop.f32.mrf.mxu1 }
 0x8b7   : > { %5499 = vst [vmem:[%s9918_s12 + $0xd0] sm:$0xff] %v5467_v46 }
 0x8b8   : > { %v5404_v34 = vadd.f32 %v5365_v3, %v5212_v13  ;;  %v5405_v62 = vadd.f32 %v5370_v9, %v5213_v54 }
 0x8b9   : > { %v5101_v39 = vpop.f32.mrf.mxu2 }
 0x8ba   : > { %v5436_v56 = vadd.f32 %v6556_v52, %v5404_v34  ;;  %v5437_v60 = vadd.f32 %v6557_v43, %v5405_v62  ;;  %v5102_v11 = vadd.f32 %v5101_v39, %v5052_v53 }
 0x8bb   : > { %v5148_v35 = vpop.f32.mrf.mxu3  ;;  %v5003_v5 = vpop.f32.mrf.mxu0 }
 0x8bc   : > { %v5468_v29 = vmax.f32 %v5436_v56, 0.0  ;;  %v5149_v16 = vadd.f32 %v5148_v35, %v5100_v44  ;;  %v5469_v58 = vmax.f32 %v5437_v60, 0.0  ;;  %v5004_v36 = vadd.f32 %v5003_v5, %v9909_v26  ;;  %v6559_v26 = vld [vmem:[%s6867_s16 + $0xf0] sm:$0xff] }
 0x8be   : > { %5500 = vst [vmem:[%s9918_s12 + $0xd8] sm:$0xff] %v5468_v29  ;;  %v5214_v63 = vadd.f32 %v5149_v16, %v10446_v21  ;;  %v5215_v18 = vadd.f32 %v5004_v36, %v10447_v24 }
 0x8bf   : > { %5501 = vst [vmem:[%s9918_s12 + $0xe0] sm:$0xff] %v5469_v58 }
 0x8c0   : > { %v5406_v57 = vadd.f32 %v5370_v9, %v5214_v63  ;;  %v5407_v1 = vadd.f32 %v5375_v28, %v5215_v18 }
 0x8c2   : > { %v5438_v14 = vadd.f32 %v6558_v19, %v5406_v57  ;;  %v5439_v17 = vadd.f32 %v6559_v26, %v5407_v1 }
 0x8c3   : > { %v5150_v4 = vpop.f32.mrf.mxu3 }
 0x8c4   : > { %v5470_v25 = vmax.f32 %v5438_v14, 0.0  ;;  %v5151_v7 = vadd.f32 %v5150_v4, %v5102_v11  ;;  %v5471_v27 = vmax.f32 %v5439_v17, 0.0 }
 0x8c6   : > { %5502 = vst [vmem:[%s9918_s12 + $0xe8] sm:$0xff] %v5470_v25  ;;  %v5216_v0 = vadd.f32 %v5151_v7, %v10448_v8 }
 0x8c7   : > { %5503 = vst [vmem:[%s9918_s12 + $0xf0] sm:$0xff] %v5471_v27 }
 0x8c8   : > { %v5408_v23 = vadd.f32 %v5375_v28, %v5216_v0 }
 0x8ca   : > { %v5440_v40 = vadd.f32 %v6560_v55, %v5408_v23 }
 0x8cc   : > { %v5472_v6 = vmax.f32 %v5440_v40, 0.0 }
 0x8ce   : > { %5504 = vst [vmem:[%s9918_s12 + $0xf8] sm:$0xff] %v5472_v6 }
 0x8cf   : > { %6678 = shalt.err (!%p6675_p10)
}
 0x8d0   : > { %s6734_s8 = smov 256  }
 0x8d1   : > { %6459 = dma.vmem_to_hbm [thread:$0]  (%p6831_p3), %s5519_s24, 4096, %s5521_s9, %s5506_s22, %s6734_s8, %s6734_s8, %s6730_s29  }
 0x8d2 PF: > { %s5535_s16 = sand.u32 1, %s6709_s18   ;;  %p10449_p12 = scmp.ge.s32.totalorder %s6721_s21, 2 }
 0x8d3   : > { %s5536_s12 = scalar_lea.sflag [#allocation5], %s5535_s16 }
 0x8d4   : > { %p6473_p13 = pnand %p10449_p12, %p6800_p6 }
 0x8d6   : > { %p6474_p0 = pneg %p6473_p13 }
 0x8d8   : > { %6704 = dma.done.wait (%p6474_p0), %s5536_s12, 4096  }
 0x8d9   : > { %6706 = vsyncadd (%p6474_p0), %s5536_s12, 4294963200  ;;  %p19_p5 = scmp.ge.s32.totalorder %s6821_s14, 4   ;;  %s10450_s18 = smov %s6713_s19 }
 0x8da   : > { %s10451_s19 = smov %s6717_s20  ;;  %s10452_s20 = smov %s6837_s23 }
 0x8db   : > { %s10453_s21 = smov %s6821_s14  ;;  %21 = sbr.rel (!%p19_p5) target bundleno = 6 (0x6), region = 97 }
 0x8e0   :  { %5542 = vsyncpa [#allocation4], 1 }
 0x8e1   :  { %5544 = vsyncpa [#allocation4 + $0x1], 1 }
 0x8e2   :  { %5545 = vsyncpa [#allocation7], 1 }
 0x8e3   :  { %5546 = vsyncpa [#allocation5], 1 }
 0x8e4   :  { %5548 = vsyncpa [#allocation5 + $0x1], 1 }

</bundles_post_ra>
